<compile_context>
chip_gen: v5e
topology: v5e:2x2
jax: 0.10.0
libtpu: 0.0.40
codegen_flags: <defaults>
</compile_context>

<pallas_src>
import numpy as np
import jax
import jax.numpy as jnp
from jax.experimental import pallas as pl
from jax.experimental.pallas import tpu as pltpu  # noqa: F401  (TPU backend import)

# ------------------------- static configuration -------------------------
BATCH = 2
N_CHANNELS = 4
WINDOW = 16                                       # ts_length
HIDDEN = 32
FILTERS = (2 * HIDDEN, 2 * HIDDEN, HIDDEN)        # (64, 64, 32)
KERNELS = (3, 3, 2)
DILATION = 1
RP_GROUP, RP_DIM = 2, 3
LSTM_DIM = 128
N_CLASSES = 2
FC_INPUT = RP_GROUP * FILTERS[2] + LSTM_DIM       # 192
MAP_LAYERS = (FC_INPUT, 2 * HIDDEN, HIDDEN)       # (192, 64, 32)
DEC_HIDDEN = 32
BN_EPS = 1e-5
LEAKY_SLOPE = 0.01
INV_SQRT2 = 0.7071067811865476


# ------------------------- parameter-slab layout (static, known at trace time) -------------------------
def _round8(n):
    return ((n + 7) // 8) * 8


_SLAB_WIDTH = 128

# LSTM slab: (rows, 4*LSTM_DIM) = (152, 512); section starts are 8-row aligned.
_LSTM_WIH_OFF = 0
_LSTM_WHH_OFF = WINDOW                            # 16
_LSTM_B_OFF = WINDOW + LSTM_DIM                   # 144
_LSTM_ROWS = _round8(_LSTM_B_OFF + 1)             # 152

# Weight-matrix slab: (rows, 128); each section row-start is 8-aligned, lanes 0:width used.
_WMAT_SECTIONS = (
    ('w1', KERNELS[0] * N_CHANNELS, RP_GROUP * FILTERS[0]),   # (12, 128) groups concat on out dim
    ('w2', KERNELS[1] * FILTERS[0], FILTERS[1]),              # (192, 64)
    ('w3', KERNELS[2] * FILTERS[1], FILTERS[2]),              # (128, 32)
    ('mw0', MAP_LAYERS[0], MAP_LAYERS[1]),                    # (192, 64)
    ('mw1', MAP_LAYERS[1], MAP_LAYERS[2]),                    # (64, 32)
    ('dw0', MAP_LAYERS[2], DEC_HIDDEN),                       # (32, 32)
    ('dw1', DEC_HIDDEN, N_CLASSES),                           # (32, 2)
)
_WMAT_OFF = {}
_off = 0
for _name, _rows, _width in _WMAT_SECTIONS:
    _WMAT_OFF[_name] = (_off, _rows, _width)
    _off += _round8(_rows)
_WMAT_ROWS = _off                                 # 656

# Vector slab: (16, 128); one (1, width) bias / BN-affine vector per row, lanes 0:width used.
(_VEC_B1, _VEC_G1, _VEC_BE1,
 _VEC_B2, _VEC_G2, _VEC_BE2,
 _VEC_B3, _VEC_G3, _VEC_BE3,
 _VEC_MB0, _VEC_MG, _VEC_MBE,
 _VEC_MB1, _VEC_DB0, _VEC_DB1) = range(15)
_VEC_ROWS = _round8(15)                           # 16


# ------------------------- small math helpers (traced inside the kernel) -------------------------
def _bn_lrelu_g(h_flat, gamma, beta, groups):
    # BatchNorm1d train mode (per-group batch statistics, biased variance) + LeakyReLU.
    # h_flat: (groups*rows, C), group-major rows; stats reduce over rows only (single pass).
    hg = h_flat.reshape(groups, -1, h_flat.shape[-1])
    m = jnp.mean(hg, axis=1, keepdims=True)
    m2 = jnp.mean(hg * hg, axis=1, keepdims=True)
    var = m2 - m * m
    hn = (hg - m) * jax.lax.rsqrt(var + BN_EPS) * gamma + beta
    hn = jnp.where(hn >= 0, hn, LEAKY_SLOPE * hn)
    return hn.reshape(h_flat.shape)


# ------------------------- fused Pallas kernel -------------------------
def _tapnet_kernel(x_ref, lstm_ref, wmat_ref, vec_ref, out_ref):
    n_b, t_len, n_ch = x_ref.shape                # (B, T, C)
    f0, f1, f2 = FILTERS

    def vec(row, width):                          # static slice of the packed vector slab
        return vec_ref[row:row + 1, 0:width]

    def wmat(name):                               # static slice of the packed weight slab
        off, rows, width = _WMAT_OFF[name]
        return wmat_ref[off:off + rows, 0:width]

    x = x_ref[...]                                # (B, T, C): the only input DMA

    # ---------------- LSTM branch ----------------
    # PyTorch applies LSTM to (B, C, T): seq axis = B, "batch" axis = C, feature = T.
    # The (B,C,T) view is built in VMEM (tiny transpose); the input projection is
    # hoisted out of the recurrent loop as ONE flattened-M dot (M=B*C), bias added once.
    wih = lstm_ref[_LSTM_WIH_OFF:_LSTM_WIH_OFF + WINDOW, :]        # (T, 4H)
    whh = lstm_ref[_LSTM_WHH_OFF:_LSTM_WHH_OFF + LSTM_DIM, :]      # (H, 4H)
    lb = lstm_ref[_LSTM_B_OFF:_LSTM_B_OFF + 1, :]                  # (1, 4H)
    x_ct = jnp.transpose(x, (0, 2, 1)).reshape(n_b * n_ch, t_len)  # (B*C, T)
    xw = jnp.dot(x_ct, wih, preferred_element_type=jnp.float32)    # (B*C, 4H)
    xw = xw.reshape(n_b, n_ch, 4 * LSTM_DIM) + lb

    h = jnp.zeros((n_ch, LSTM_DIM), jnp.float32)
    cell = jnp.zeros((n_ch, LSTM_DIM), jnp.float32)
    lstm_rows = []
    for step in range(n_b):                       # tiny static trip count -> unrolled
        gates = xw[step] + jnp.dot(h, whh, preferred_element_type=jnp.float32)
        i_g = jax.nn.sigmoid(gates[:, 0 * LSTM_DIM:1 * LSTM_DIM])
        f_g = jax.nn.sigmoid(gates[:, 1 * LSTM_DIM:2 * LSTM_DIM])
        g_g = jnp.tanh(gates[:, 2 * LSTM_DIM:3 * LSTM_DIM])
        o_g = jax.nn.sigmoid(gates[:, 3 * LSTM_DIM:4 * LSTM_DIM])
        cell = f_g * cell + i_g * g_g
        h = o_g * jnp.tanh(cell)
        lstm_rows.append(jnp.mean(h, axis=0, keepdims=True))       # mean over channel axis
    x_lstm = jnp.concatenate(lstm_rows, axis=0)                    # (B, 128), stays in VMEM

    # ---------------- CNN branch (both rp groups fused, no grid, no per-group loop) ----------------
    # conv_1: both groups folded into one (12, 128) weight (zero rows encode the rp channel
    # selection) -> ONE dot with M=B*L1; 128-lane output = exactly one vreg wide.
    l1 = t_len - DILATION * (KERNELS[0] - 1)                       # 14
    p1 = jnp.concatenate(
        [x[:, t * DILATION:t * DILATION + l1, :] for t in range(KERNELS[0])], axis=-1)
    p1 = p1.reshape(n_b * l1, KERNELS[0] * n_ch)                   # (28, 12)
    h1 = jnp.dot(p1, wmat('w1'), preferred_element_type=jnp.float32) + vec(_VEC_B1, 2 * f0)
    # per-lane stats over the 28 rows == per-group BN batch stats (groups live in lanes)
    h1 = _bn_lrelu_g(h1, vec(_VEC_G1, 2 * f0), vec(_VEC_BE1, 2 * f0), 1)   # (28, 128)

    # move the group axis from lanes to the M axis so conv_2 / conv_3 run ONE dot per tap
    h1g = jnp.concatenate([h1[:, 0:f0], h1[:, f0:2 * f0]], axis=0)         # (2*28, 64)
    h1g = h1g.reshape(RP_GROUP * n_b, l1, f0)                              # (G*B, 14, 64)

    # conv_2: tap-sum, one flattened-M (M=G*B*L2=48) dot per tap, K=64 (single MXU pass everywhere)
    l2 = l1 - (KERNELS[1] - 1)                                             # 12
    m2 = RP_GROUP * n_b * l2
    w2 = wmat('w2')                                                        # (192, 64)
    acc2 = jnp.dot(h1g[:, 0:l2, :].reshape(m2, f0), w2[0:f0, :],
                   preferred_element_type=jnp.float32)
    for t in range(1, KERNELS[1]):
        acc2 = acc2 + jnp.dot(h1g[:, t:t + l2, :].reshape(m2, f0),
                              w2[t * f0:(t + 1) * f0, :],
                              preferred_element_type=jnp.float32)
    acc2 = acc2 + vec(_VEC_B2, f1)
    h2 = _bn_lrelu_g(acc2, vec(_VEC_G2, f1), vec(_VEC_BE2, f1), RP_GROUP)  # (48, 64), per-group stats
    h2g = h2.reshape(RP_GROUP * n_b, l2, f1)                               # (G*B, 12, 64)

    # conv_3: tap-sum, M=G*B*L3=44, K=64
    l3 = l2 - (KERNELS[2] - 1)                                             # 11
    m3 = RP_GROUP * n_b * l3
    w3 = wmat('w3')                                                        # (128, 32)
    acc3 = jnp.dot(h2g[:, 0:l3, :].reshape(m3, f1), w3[0:f1, :],
                   preferred_element_type=jnp.float32)
    for t in range(1, KERNELS[2]):
        acc3 = acc3 + jnp.dot(h2g[:, t:t + l3, :].reshape(m3, f1),
                              w3[t * f1:(t + 1) * f1, :],
                              preferred_element_type=jnp.float32)
    acc3 = acc3 + vec(_VEC_B3, f2)
    h3 = _bn_lrelu_g(acc3, vec(_VEC_G3, f2), vec(_VEC_BE3, f2), RP_GROUP)  # (44, 32)

    # global average pool over time -> (G*B, 32), group-major rows
    pooled = jnp.mean(h3.reshape(RP_GROUP * n_b, l3, f2), axis=1)

    # ---------------- mapping: Linear(192,64) -> BN -> LeakyReLU -> Linear(64,32) ----------------
    # feat = [conv_g0 | conv_g1 | x_lstm]; fc_0 is evaluated on the pieces by splitting the
    # weight rows, so the (B,192) concat is never materialized.
    mw0 = wmat('mw0')                                                      # (192, 64)
    hmap = vec(_VEC_MB0, MAP_LAYERS[1]) + jnp.dot(
        x_lstm, mw0[RP_GROUP * f2:, :], preferred_element_type=jnp.float32)
    for g in range(RP_GROUP):
        hmap = hmap + jnp.dot(pooled[g * n_b:(g + 1) * n_b],
                              mw0[g * f2:(g + 1) * f2, :],
                              preferred_element_type=jnp.float32)
    hmap = _bn_lrelu_g(hmap, vec(_VEC_MG, MAP_LAYERS[1]), vec(_VEC_MBE, MAP_LAYERS[1]), 1)
    hmap = jnp.dot(hmap, wmat('mw1'),
                   preferred_element_type=jnp.float32) + vec(_VEC_MB1, MAP_LAYERS[2])

    # ---------------- decoder: Linear -> GELU(exact erf) -> Linear ----------------
    hd = jnp.dot(hmap, wmat('dw0'),
                 preferred_element_type=jnp.float32) + vec(_VEC_DB0, DEC_HIDDEN)
    hd = 0.5 * hd * (1.0 + jax.lax.erf(hd * INV_SQRT2))
    out_ref[...] = jnp.dot(hd, wmat('dw1'),
                           preferred_element_type=jnp.float32) + vec(_VEC_DB1, N_CLASSES)


# ------------------------- wrapper -------------------------
@jax.jit
def tapnet_forward(x, p, y, packed):
    """x: (B, WINDOW, N_CHANNELS). p (labels) / y only feed the dead code after the module's
    `return {'prob': z}`, so they are accepted for signature parity only."""
    del p, y
    x = x.astype(jnp.float32)
    n = x.shape[0]
    z = pl.pallas_call(
        _tapnet_kernel,
        out_shape=jax.ShapeDtypeStruct((n, N_CLASSES), jnp.float32),
        cost_estimate=pl.CostEstimate(flops=3_000_000, transcendentals=6_000,
                                      bytes_accessed=700_000),
    )(x, packed['lstm'], packed['wmat'], packed['vec'])
    return {'prob': z}


# ------------------------- host-side parameter packing (one-time) -------------------------
def pack_params(params, rp_idx):
    f0, f1, f2 = FILTERS

    # LSTM slab (rows x 512): W_ih^T, W_hh^T, combined bias.
    lstm = np.zeros((_LSTM_ROWS, 4 * LSTM_DIM), np.float32)
    lstm[_LSTM_WIH_OFF:_LSTM_WIH_OFF + WINDOW] = np.asarray(params['lstm_wih_t'])
    lstm[_LSTM_WHH_OFF:_LSTM_WHH_OFF + LSTM_DIM] = np.asarray(params['lstm_whh_t'])
    lstm[_LSTM_B_OFF] = np.asarray(params['lstm_b'])[0]

    # conv_1: fold rp channel selection into zero rows and concat groups along the output dim.
    w1_flat = np.asarray(params['w1_flat'])                  # (G, K0*RP_DIM, F0)
    w1_comb = np.zeros((KERNELS[0] * N_CHANNELS, RP_GROUP * f0), np.float32)
    for g, idx in enumerate(rp_idx):
        for t in range(KERNELS[0]):
            for j, ch in enumerate(idx):
                w1_comb[t * N_CHANNELS + ch, g * f0:(g + 1) * f0] = w1_flat[g, t * RP_DIM + j, :]

    # Weight-matrix slab (rows x 128).
    wmat = np.zeros((_WMAT_ROWS, _SLAB_WIDTH), np.float32)

    def put(name, arr):
        off, rows, width = _WMAT_OFF[name]
        assert arr.shape == (rows, width), (name, arr.shape, (rows, width))
        wmat[off:off + rows, 0:width] = arr

    put('w1', w1_comb)
    put('w2', np.asarray(params['w2_flat']))
    put('w3', np.asarray(params['w3_flat']))
    put('mw0', np.asarray(params['map_w0']))
    put('mw1', np.asarray(params['map_w1']))
    put('dw0', np.asarray(params['dec_w0']))
    put('dw1', np.asarray(params['dec_w1']))

    # Vector slab (rows x 128): all biases + BN affine parameters, one per row.
    vec = np.zeros((_VEC_ROWS, _SLAB_WIDTH), np.float32)
    b1 = np.asarray(params['b1'])                            # (G, 1, F0)
    g1 = np.asarray(params['g1'])[0]
    be1 = np.asarray(params['be1'])[0]
    vec[_VEC_B1, 0:RP_GROUP * f0] = np.concatenate([b1[g, 0] for g in range(RP_GROUP)])
    vec[_VEC_G1, 0:RP_GROUP * f0] = np.concatenate([g1] * RP_GROUP)   # shared BN affine, tiled
    vec[_VEC_BE1, 0:RP_GROUP * f0] = np.concatenate([be1] * RP_GROUP)
    vec[_VEC_B2, 0:f1] = np.asarray(params['b2'])[0]
    vec[_VEC_G2, 0:f1] = np.asarray(params['g2'])[0]
    vec[_VEC_BE2, 0:f1] = np.asarray(params['be2'])[0]
    vec[_VEC_B3, 0:f2] = np.asarray(params['b3'])[0]
    vec[_VEC_G3, 0:f2] = np.asarray(params['g3'])[0]
    vec[_VEC_BE3, 0:f2] = np.asarray(params['be3'])[0]
    vec[_VEC_MB0, 0:MAP_LAYERS[1]] = np.asarray(params['map_b0'])[0]
    vec[_VEC_MG, 0:MAP_LAYERS[1]] = np.asarray(params['map_g'])[0]
    vec[_VEC_MBE, 0:MAP_LAYERS[1]] = np.asarray(params['map_be'])[0]
    vec[_VEC_MB1, 0:MAP_LAYERS[2]] = np.asarray(params['map_b1'])[0]
    vec[_VEC_DB0, 0:DEC_HIDDEN] = np.asarray(params['dec_b0'])[0]
    vec[_VEC_DB1, 0:N_CLASSES] = np.asarray(params['dec_b1'])[0]

    return {'lstm': jnp.asarray(lstm), 'wmat': jnp.asarray(wmat), 'vec': jnp.asarray(vec)}


# ------------------------- pure-JAX/XLA reference (validation only) -------------------------
def _bn_lrelu_ref(h, gamma, beta, axes):
    mean = jnp.mean(h, axis=axes, keepdims=True)
    var = jnp.mean((h - mean) ** 2, axis=axes, keepdims=True)
    h = (h - mean) * jax.lax.rsqrt(var + BN_EPS) * gamma + beta
    return jnp.where(h >= 0, h, LEAKY_SLOPE * h)


def reference_forward(x, params, rp_idx):
    """Independent formulation of the same forward math (per-tap convs, per-step LSTM input
    projection, explicit channel gather, per-group conv loop), with HIGHEST matmul precision."""
    hp = jax.lax.Precision.HIGHEST
    x = x.astype(jnp.float32)
    x_ncl = jnp.transpose(x, (0, 2, 1))

    # LSTM: seq axis = batch dim of x, "batch" axis = channels; mean over channels.
    h = jnp.zeros((N_CHANNELS, LSTM_DIM), jnp.float32)
    cell = jnp.zeros_like(h)
    rows = []
    for t in range(x.shape[0]):
        gates = (jnp.dot(x_ncl[t], params['lstm_wih_t'], precision=hp)
                 + jnp.dot(h, params['lstm_whh_t'], precision=hp) + params['lstm_b'])
        i_g = jax.nn.sigmoid(gates[:, :LSTM_DIM])
        f_g = jax.nn.sigmoid(gates[:, LSTM_DIM:2 * LSTM_DIM])
        g_g = jnp.tanh(gates[:, 2 * LSTM_DIM:3 * LSTM_DIM])
        o_g = jax.nn.sigmoid(gates[:, 3 * LSTM_DIM:])
        cell = f_g * cell + i_g * g_g
        h = o_g * jnp.tanh(cell)
        rows.append(jnp.mean(h, axis=0))
    x_lstm = jnp.stack(rows, axis=0)

    def conv1d(xi, w_tap, bias, dil):
        k = w_tap.shape[0]
        lout = xi.shape[1] - dil * (k - 1)
        acc = jnp.zeros((xi.shape[0], lout, w_tap.shape[2]), jnp.float32)
        for t in range(k):
            acc = acc + jnp.einsum('nlc,co->nlo', xi[:, t * dil:t * dil + lout, :],
                                   w_tap[t], precision=hp)
        return acc + bias

    w1_tap = params['w1_flat'].reshape(RP_GROUP, KERNELS[0], RP_DIM, FILTERS[0])
    w2_tap = params['w2_flat'].reshape(KERNELS[1], FILTERS[0], FILTERS[1])
    w3_tap = params['w3_flat'].reshape(KERNELS[2], FILTERS[1], FILTERS[2])
    convs = []
    for g, idx in enumerate(rp_idx):
        xi = jnp.stack([x[:, :, i] for i in idx], axis=-1)            # (B, T, RP_DIM)
        hh = _bn_lrelu_ref(conv1d(xi, w1_tap[g], params['b1'][g], DILATION),
                           params['g1'], params['be1'], (0, 1))
        hh = _bn_lrelu_ref(conv1d(hh, w2_tap, params['b2'], 1),
                           params['g2'], params['be2'], (0, 1))
        hh = _bn_lrelu_ref(conv1d(hh, w3_tap, params['b3'], 1),
                           params['g3'], params['be3'], (0, 1))
        convs.append(jnp.mean(hh, axis=1))
    feat = jnp.concatenate(convs + [x_lstm], axis=1)

    hh = jnp.dot(feat, params['map_w0'], precision=hp) + params['map_b0']
    hh = _bn_lrelu_ref(hh, params['map_g'], params['map_be'], (0,))
    hh = jnp.dot(hh, params['map_w1'], precision=hp) + params['map_b1']
    hh = jnp.dot(hh, params['dec_w0'], precision=hp) + params['dec_b0']
    hh = 0.5 * hh * (1.0 + jax.lax.erf(hh * INV_SQRT2))
    return jnp.dot(hh, params['dec_w1'], precision=hp) + params['dec_b1']


# ------------------------- deterministic parameter init -------------------------
def init_params(key):
    keys = jax.random.split(key, 32)
    k_it = iter(keys)

    def nrm(shape, scale=0.1):
        return scale * jax.random.normal(next(k_it), shape, jnp.float32)

    p = {}
    # LSTM(ts_length -> 128): PyTorch holds W_ih (4H, T), W_hh (4H, H); stored transposed.
    p['lstm_wih_t'] = nrm((WINDOW, 4 * LSTM_DIM))
    p['lstm_whh_t'] = nrm((LSTM_DIM, 4 * LSTM_DIM))
    p['lstm_b'] = nrm((1, 4 * LSTM_DIM))                              # b_ih + b_hh combined
    # conv_1 per rp group over the selected channels, flattened (K*RP_DIM, F0).
    p['w1_flat'] = nrm((RP_GROUP, KERNELS[0] * RP_DIM, FILTERS[0]))
    p['b1'] = nrm((RP_GROUP, 1, FILTERS[0]))
    # conv_2 / conv_3 shared across groups, flattened (K*Cin, Cout), tap-major rows.
    p['w2_flat'] = nrm((KERNELS[1] * FILTERS[0], FILTERS[1]))
    p['b2'] = nrm((1, FILTERS[1]))
    p['w3_flat'] = nrm((KERNELS[2] * FILTERS[1], FILTERS[2]))
    p['b3'] = nrm((1, FILTERS[2]))
    # BatchNorm1d affine params.
    p['g1'] = 1.0 + nrm((1, FILTERS[0])); p['be1'] = nrm((1, FILTERS[0]))
    p['g2'] = 1.0 + nrm((1, FILTERS[1])); p['be2'] = nrm((1, FILTERS[1]))
    p['g3'] = 1.0 + nrm((1, FILTERS[2])); p['be3'] = nrm((1, FILTERS[2]))
    # mapping: Linear(192,64) -> BN(64) -> LeakyReLU -> Linear(64,32)
    p['map_w0'] = nrm((MAP_LAYERS[0], MAP_LAYERS[1])); p['map_b0'] = nrm((1, MAP_LAYERS[1]))
    p['map_g'] = 1.0 + nrm((1, MAP_LAYERS[1])); p['map_be'] = nrm((1, MAP_LAYERS[1]))
    p['map_w1'] = nrm((MAP_LAYERS[1], MAP_LAYERS[2])); p['map_b1'] = nrm((1, MAP_LAYERS[2]))
    # decoder: Linear(32,32) -> GELU -> Linear(32, n_classes)
    p['dec_w0'] = nrm((MAP_LAYERS[2], DEC_HIDDEN)); p['dec_b0'] = nrm((1, DEC_HIDDEN))
    p['dec_w1'] = nrm((DEC_HIDDEN, N_CLASSES)); p['dec_b1'] = nrm((1, N_CLASSES))
    return p


if __name__ == "__main__":
    key = jax.random.PRNGKey(0)
    kx, kparam = jax.random.split(key)

    # deterministic random-projection channel indices (np.random.permutation in the module)
    rng = np.random.default_rng(0)
    rp_idx = tuple(tuple(int(i) for i in rng.permutation(N_CHANNELS)[:RP_DIM])
                   for _ in range(RP_GROUP))

    params = init_params(kparam)
    packed = pack_params(params, rp_idx)          # one-time host-side slab packing

    # inputs: x (B, window, n_channels); p labels / y unused by the live forward path
    x = jax.random.normal(kx, (BATCH, WINDOW, N_CHANNELS), jnp.float32)
    p_lbl = jnp.array([0, 1], jnp.int32)
    y = jnp.zeros((BATCH,), jnp.float32)

    out = tapnet_forward(x, p_lbl, y, packed)
    z = jax.block_until_ready(out['prob'])

    # Validate the fused Pallas kernel against a pure-JAX/XLA reference of the same math.
    ref_fn = jax.jit(reference_forward, static_argnums=2)
    z_ref = jax.block_until_ready(ref_fn(x, params, rp_idx))
    np.testing.assert_allclose(np.asarray(z), np.asarray(z_ref), rtol=1e-2, atol=1e-2)
    assert z.shape == (BATCH, N_CLASSES) and np.all(np.isfinite(np.asarray(z)))

    print("KERNEL_OK")
</pallas_src>

<mosaic_0001>
module attributes {stable_mosaic.version = 11 : i64} {
  func.func @_tapnet_kernel(%arg0: memref<2x16x4xf32, #tpu.memory_space<vmem>>, %arg1: memref<152x512xf32, #tpu.memory_space<vmem>>, %arg2: memref<656x128xf32, #tpu.memory_space<vmem>>, %arg3: memref<16x128xf32, #tpu.memory_space<vmem>>, %arg4: memref<2x2xf32, #tpu.memory_space<vmem>>) attributes {dimension_semantics = [], scalar_prefetch = 0 : i64, scratch_operands = 0 : i64, tpu.core_type = #tpu.core_type<tc>} {
    %c0 = arith.constant 0 : index
    %c0_0 = arith.constant 0 : index
    %c0_1 = arith.constant 0 : index
    %0 = vector.load %arg0[%c0, %c0_0, %c0_1] : memref<2x16x4xf32, #tpu.memory_space<vmem>>, vector<2x16x4xf32>
    %c0_2 = arith.constant 0 : index
    %c0_3 = arith.constant 0 : index
    %1 = vector.load %arg1[%c0_2, %c0_3] : memref<152x512xf32, #tpu.memory_space<vmem>>, vector<16x512xf32>
    %c16 = arith.constant 16 : index
    %c0_4 = arith.constant 0 : index
    %2 = vector.load %arg1[%c16, %c0_4] : memref<152x512xf32, #tpu.memory_space<vmem>>, vector<128x512xf32>
    %c144 = arith.constant 144 : index
    %c0_5 = arith.constant 0 : index
    %3 = vector.load %arg1[%c144, %c0_5] : memref<152x512xf32, #tpu.memory_space<vmem>>, vector<1x512xf32>
    %4 = tpu.transpose %0, [0, 2, 1] : vector<2x16x4xf32> -> vector<2x4x16xf32>
    %5 = vector.shape_cast %4 : vector<2x4x16xf32> to vector<8x16xf32>
    %cst = arith.constant dense<0.000000e+00> : vector<8x512xf32>
    %6 = tpu.matmul %5, %1, %cst {dimension_numbers = #tpu.dot_dimension_numbers<[1], [0], [0], [1], [0, 0, 1, 1], [], []>} : vector<8x16xf32>, vector<16x512xf32>, vector<8x512xf32> -> vector<8x512xf32>
    %7 = vector.shape_cast %6 : vector<8x512xf32> to vector<2x4x512xf32>
    %8 = vector.shape_cast %3 : vector<1x512xf32> to vector<1x1x512xf32>
    %9 = vector.broadcast %8 : vector<1x1x512xf32> to vector<2x4x512xf32>
    %10 = arith.addf %7, %9 : vector<2x4x512xf32>
    %cst_6 = arith.constant 0.000000e+00 : f32
    %11 = vector.broadcast %cst_6 : f32 to vector<4x128xf32>
    %cst_7 = arith.constant 0.000000e+00 : f32
    %12 = vector.broadcast %cst_7 : f32 to vector<4x128xf32>
    %13 = vector.extract_strided_slice %10 {offsets = [0, 0, 0], sizes = [1, 4, 512], strides = [1, 1, 1]} : vector<2x4x512xf32> to vector<1x4x512xf32>
    %14 = vector.shape_cast %13 : vector<1x4x512xf32> to vector<4x512xf32>
    %cst_8 = arith.constant dense<0.000000e+00> : vector<4x512xf32>
    %15 = tpu.matmul %11, %2, %cst_8 {dimension_numbers = #tpu.dot_dimension_numbers<[1], [0], [0], [1], [0, 0, 1, 1], [], []>} : vector<4x128xf32>, vector<128x512xf32>, vector<4x512xf32> -> vector<4x512xf32>
    %16 = arith.addf %14, %15 : vector<4x512xf32>
    %17 = vector.extract_strided_slice %16 {offsets = [0, 0], sizes = [4, 128], strides = [1, 1]} : vector<4x512xf32> to vector<4x128xf32>
    %18 = arith.negf %17 : vector<4x128xf32>
    %19 = math.exp %18 : vector<4x128xf32>
    %cst_9 = arith.constant 1.000000e+00 : f32
    %20 = vector.broadcast %cst_9 : f32 to vector<4x128xf32>
    %21 = arith.addf %20, %19 : vector<4x128xf32>
    %22 = arith.divf %20, %21 : vector<4x128xf32>
    %23 = vector.extract_strided_slice %16 {offsets = [0, 128], sizes = [4, 128], strides = [1, 1]} : vector<4x512xf32> to vector<4x128xf32>
    %24 = arith.negf %23 : vector<4x128xf32>
    %25 = math.exp %24 : vector<4x128xf32>
    %cst_10 = arith.constant 1.000000e+00 : f32
    %26 = vector.broadcast %cst_10 : f32 to vector<4x128xf32>
    %27 = arith.addf %26, %25 : vector<4x128xf32>
    %28 = arith.divf %26, %27 : vector<4x128xf32>
    %29 = vector.extract_strided_slice %16 {offsets = [0, 256], sizes = [4, 128], strides = [1, 1]} : vector<4x512xf32> to vector<4x128xf32>
    %30 = math.tanh %29 : vector<4x128xf32>
    %31 = vector.extract_strided_slice %16 {offsets = [0, 384], sizes = [4, 128], strides = [1, 1]} : vector<4x512xf32> to vector<4x128xf32>
    %32 = arith.negf %31 : vector<4x128xf32>
    %33 = math.exp %32 : vector<4x128xf32>
    %cst_11 = arith.constant 1.000000e+00 : f32
    %34 = vector.broadcast %cst_11 : f32 to vector<4x128xf32>
    %35 = arith.addf %34, %33 : vector<4x128xf32>
    %36 = arith.divf %34, %35 : vector<4x128xf32>
    %37 = arith.mulf %28, %12 : vector<4x128xf32>
    %38 = arith.mulf %22, %30 : vector<4x128xf32>
    %39 = arith.addf %37, %38 : vector<4x128xf32>
    %40 = math.tanh %39 : vector<4x128xf32>
    %41 = arith.mulf %36, %40 : vector<4x128xf32>
    %cst_12 = arith.constant dense<0.000000e+00> : vector<128xf32>
    %42 = vector.multi_reduction <add>, %41, %cst_12 [0] : vector<4x128xf32> to vector<128xf32>
    %43 = vector.shape_cast %42 : vector<128xf32> to vector<1x128xf32>
    %cst_13 = arith.constant 4.000000e+00 : f32
    %44 = vector.broadcast %cst_13 : f32 to vector<1x128xf32>
    %45 = arith.divf %43, %44 : vector<1x128xf32>
    %46 = vector.extract_strided_slice %10 {offsets = [1, 0, 0], sizes = [1, 4, 512], strides = [1, 1, 1]} : vector<2x4x512xf32> to vector<1x4x512xf32>
    %47 = vector.shape_cast %46 : vector<1x4x512xf32> to vector<4x512xf32>
    %cst_14 = arith.constant dense<0.000000e+00> : vector<4x512xf32>
    %48 = tpu.matmul %41, %2, %cst_14 {dimension_numbers = #tpu.dot_dimension_numbers<[1], [0], [0], [1], [0, 0, 1, 1], [], []>} : vector<4x128xf32>, vector<128x512xf32>, vector<4x512xf32> -> vector<4x512xf32>
    %49 = arith.addf %47, %48 : vector<4x512xf32>
    %50 = vector.extract_strided_slice %49 {offsets = [0, 0], sizes = [4, 128], strides = [1, 1]} : vector<4x512xf32> to vector<4x128xf32>
    %51 = arith.negf %50 : vector<4x128xf32>
    %52 = math.exp %51 : vector<4x128xf32>
    %cst_15 = arith.constant 1.000000e+00 : f32
    %53 = vector.broadcast %cst_15 : f32 to vector<4x128xf32>
    %54 = arith.addf %53, %52 : vector<4x128xf32>
    %55 = arith.divf %53, %54 : vector<4x128xf32>
    %56 = vector.extract_strided_slice %49 {offsets = [0, 128], sizes = [4, 128], strides = [1, 1]} : vector<4x512xf32> to vector<4x128xf32>
    %57 = arith.negf %56 : vector<4x128xf32>
    %58 = math.exp %57 : vector<4x128xf32>
    %cst_16 = arith.constant 1.000000e+00 : f32
    %59 = vector.broadcast %cst_16 : f32 to vector<4x128xf32>
    %60 = arith.addf %59, %58 : vector<4x128xf32>
    %61 = arith.divf %59, %60 : vector<4x128xf32>
    %62 = vector.extract_strided_slice %49 {offsets = [0, 256], sizes = [4, 128], strides = [1, 1]} : vector<4x512xf32> to vector<4x128xf32>
    %63 = math.tanh %62 : vector<4x128xf32>
    %64 = vector.extract_strided_slice %49 {offsets = [0, 384], sizes = [4, 128], strides = [1, 1]} : vector<4x512xf32> to vector<4x128xf32>
    %65 = arith.negf %64 : vector<4x128xf32>
    %66 = math.exp %65 : vector<4x128xf32>
    %cst_17 = arith.constant 1.000000e+00 : f32
    %67 = vector.broadcast %cst_17 : f32 to vector<4x128xf32>
    %68 = arith.addf %67, %66 : vector<4x128xf32>
    %69 = arith.divf %67, %68 : vector<4x128xf32>
    %70 = arith.mulf %61, %39 : vector<4x128xf32>
    %71 = arith.mulf %55, %63 : vector<4x128xf32>
    %72 = arith.addf %70, %71 : vector<4x128xf32>
    %73 = math.tanh %72 : vector<4x128xf32>
    %74 = arith.mulf %69, %73 : vector<4x128xf32>
    %cst_18 = arith.constant dense<0.000000e+00> : vector<128xf32>
    %75 = vector.multi_reduction <add>, %74, %cst_18 [0] : vector<4x128xf32> to vector<128xf32>
    %76 = vector.shape_cast %75 : vector<128xf32> to vector<1x128xf32>
    %cst_19 = arith.constant 4.000000e+00 : f32
    %77 = vector.broadcast %cst_19 : f32 to vector<1x128xf32>
    %78 = arith.divf %76, %77 : vector<1x128xf32>
    %79 = tpu.concatenate %45, %78 in 0 : vector<1x128xf32>, vector<1x128xf32> -> vector<2x128xf32>
    %80 = vector.extract_strided_slice %0 {offsets = [0, 0, 0], sizes = [2, 14, 4], strides = [1, 1, 1]} : vector<2x16x4xf32> to vector<2x14x4xf32>
    %81 = vector.extract_strided_slice %0 {offsets = [0, 1, 0], sizes = [2, 14, 4], strides = [1, 1, 1]} : vector<2x16x4xf32> to vector<2x14x4xf32>
    %82 = vector.extract_strided_slice %0 {offsets = [0, 2, 0], sizes = [2, 14, 4], strides = [1, 1, 1]} : vector<2x16x4xf32> to vector<2x14x4xf32>
    %83 = tpu.concatenate %80, %81, %82 in 2 : vector<2x14x4xf32>, vector<2x14x4xf32>, vector<2x14x4xf32> -> vector<2x14x12xf32>
    %84 = vector.shape_cast %83 : vector<2x14x12xf32> to vector<28x12xf32>
    %c0_20 = arith.constant 0 : index
    %c0_21 = arith.constant 0 : index
    %85 = vector.load %arg2[%c0_20, %c0_21] : memref<656x128xf32, #tpu.memory_space<vmem>>, vector<12x128xf32>
    %cst_22 = arith.constant dense<0.000000e+00> : vector<28x128xf32>
    %86 = tpu.matmul %84, %85, %cst_22 {dimension_numbers = #tpu.dot_dimension_numbers<[1], [0], [0], [1], [0, 0, 1, 1], [], []>} : vector<28x12xf32>, vector<12x128xf32>, vector<28x128xf32> -> vector<28x128xf32>
    %c0_23 = arith.constant 0 : index
    %c0_24 = arith.constant 0 : index
    %87 = vector.load %arg3[%c0_23, %c0_24] : memref<16x128xf32, #tpu.memory_space<vmem>>, vector<1x128xf32>
    %88 = vector.broadcast %87 : vector<1x128xf32> to vector<28x128xf32>
    %89 = arith.addf %86, %88 : vector<28x128xf32>
    %c1 = arith.constant 1 : index
    %c0_25 = arith.constant 0 : index
    %90 = vector.load %arg3[%c1, %c0_25] : memref<16x128xf32, #tpu.memory_space<vmem>>, vector<1x128xf32>
    %c2 = arith.constant 2 : index
    %c0_26 = arith.constant 0 : index
    %91 = vector.load %arg3[%c2, %c0_26] : memref<16x128xf32, #tpu.memory_space<vmem>>, vector<1x128xf32>
    %92 = vector.shape_cast %89 : vector<28x128xf32> to vector<1x28x128xf32>
    %cst_27 = arith.constant dense<0.000000e+00> : vector<1x128xf32>
    %93 = vector.multi_reduction <add>, %92, %cst_27 [1] : vector<1x28x128xf32> to vector<1x128xf32>
    %94 = vector.shape_cast %93 : vector<1x128xf32> to vector<1x1x128xf32>
    %cst_28 = arith.constant 2.800000e+01 : f32
    %95 = vector.broadcast %cst_28 : f32 to vector<1x1x128xf32>
    %96 = arith.divf %94, %95 : vector<1x1x128xf32>
    %97 = arith.mulf %92, %92 : vector<1x28x128xf32>
    %cst_29 = arith.constant dense<0.000000e+00> : vector<1x128xf32>
    %98 = vector.multi_reduction <add>, %97, %cst_29 [1] : vector<1x28x128xf32> to vector<1x128xf32>
    %99 = vector.shape_cast %98 : vector<1x128xf32> to vector<1x1x128xf32>
    %cst_30 = arith.constant 2.800000e+01 : f32
    %100 = vector.broadcast %cst_30 : f32 to vector<1x1x128xf32>
    %101 = arith.divf %99, %100 : vector<1x1x128xf32>
    %102 = arith.mulf %96, %96 : vector<1x1x128xf32>
    %103 = arith.subf %101, %102 : vector<1x1x128xf32>
    %104 = vector.broadcast %96 : vector<1x1x128xf32> to vector<1x28x128xf32>
    %105 = arith.subf %92, %104 : vector<1x28x128xf32>
    %cst_31 = arith.constant 9.99999974E-6 : f32
    %106 = vector.broadcast %cst_31 : f32 to vector<1x1x128xf32>
    %107 = arith.addf %103, %106 : vector<1x1x128xf32>
    %108 = math.rsqrt %107 : vector<1x1x128xf32>
    %109 = vector.broadcast %108 : vector<1x1x128xf32> to vector<1x28x128xf32>
    %110 = arith.mulf %105, %109 : vector<1x28x128xf32>
    %111 = vector.shape_cast %90 : vector<1x128xf32> to vector<1x1x128xf32>
    %112 = vector.broadcast %111 : vector<1x1x128xf32> to vector<1x28x128xf32>
    %113 = arith.mulf %110, %112 : vector<1x28x128xf32>
    %114 = vector.shape_cast %91 : vector<1x128xf32> to vector<1x1x128xf32>
    %115 = vector.broadcast %114 : vector<1x1x128xf32> to vector<1x28x128xf32>
    %116 = arith.addf %113, %115 : vector<1x28x128xf32>
    %cst_32 = arith.constant 0.000000e+00 : f32
    %117 = vector.broadcast %cst_32 : f32 to vector<1x28x128xf32>
    %118 = arith.cmpf oge, %116, %117 : vector<1x28x128xf32>
    %cst_33 = arith.constant 0.00999999977 : f32
    %119 = vector.broadcast %cst_33 : f32 to vector<1x28x128xf32>
    %120 = arith.mulf %119, %116 : vector<1x28x128xf32>
    %121 = arith.select %118, %116, %120 : vector<1x28x128xi1>, vector<1x28x128xf32>
    %122 = vector.shape_cast %121 : vector<1x28x128xf32> to vector<28x128xf32>
    %123 = vector.extract_strided_slice %122 {offsets = [0, 0], sizes = [28, 64], strides = [1, 1]} : vector<28x128xf32> to vector<28x64xf32>
    %124 = vector.extract_strided_slice %122 {offsets = [0, 64], sizes = [28, 64], strides = [1, 1]} : vector<28x128xf32> to vector<28x64xf32>
    %125 = tpu.concatenate %123, %124 in 0 : vector<28x64xf32>, vector<28x64xf32> -> vector<56x64xf32>
    %126 = vector.shape_cast %125 : vector<56x64xf32> to vector<4x14x64xf32>
    %c16_34 = arith.constant 16 : index
    %c0_35 = arith.constant 0 : index
    %127 = vector.load %arg2[%c16_34, %c0_35] : memref<656x128xf32, #tpu.memory_space<vmem>>, vector<192x64xf32>
    %128 = vector.extract_strided_slice %126 {offsets = [0, 0, 0], sizes = [4, 12, 64], strides = [1, 1, 1]} : vector<4x14x64xf32> to vector<4x12x64xf32>
    %129 = vector.shape_cast %128 : vector<4x12x64xf32> to vector<48x64xf32>
    %130 = vector.extract_strided_slice %127 {offsets = [0, 0], sizes = [64, 64], strides = [1, 1]} : vector<192x64xf32> to vector<64x64xf32>
    %cst_36 = arith.constant dense<0.000000e+00> : vector<48x64xf32>
    %131 = tpu.matmul %129, %130, %cst_36 {dimension_numbers = #tpu.dot_dimension_numbers<[1], [0], [0], [1], [0, 0, 1, 1], [], []>} : vector<48x64xf32>, vector<64x64xf32>, vector<48x64xf32> -> vector<48x64xf32>
    %132 = vector.extract_strided_slice %126 {offsets = [0, 1, 0], sizes = [4, 12, 64], strides = [1, 1, 1]} : vector<4x14x64xf32> to vector<4x12x64xf32>
    %133 = vector.shape_cast %132 : vector<4x12x64xf32> to vector<48x64xf32>
    %134 = vector.extract_strided_slice %127 {offsets = [64, 0], sizes = [64, 64], strides = [1, 1]} : vector<192x64xf32> to vector<64x64xf32>
    %cst_37 = arith.constant dense<0.000000e+00> : vector<48x64xf32>
    %135 = tpu.matmul %133, %134, %cst_37 {dimension_numbers = #tpu.dot_dimension_numbers<[1], [0], [0], [1], [0, 0, 1, 1], [], []>} : vector<48x64xf32>, vector<64x64xf32>, vector<48x64xf32> -> vector<48x64xf32>
    %136 = arith.addf %131, %135 : vector<48x64xf32>
    %137 = vector.extract_strided_slice %126 {offsets = [0, 2, 0], sizes = [4, 12, 64], strides = [1, 1, 1]} : vector<4x14x64xf32> to vector<4x12x64xf32>
    %138 = vector.shape_cast %137 : vector<4x12x64xf32> to vector<48x64xf32>
    %139 = vector.extract_strided_slice %127 {offsets = [128, 0], sizes = [64, 64], strides = [1, 1]} : vector<192x64xf32> to vector<64x64xf32>
    %cst_38 = arith.constant dense<0.000000e+00> : vector<48x64xf32>
    %140 = tpu.matmul %138, %139, %cst_38 {dimension_numbers = #tpu.dot_dimension_numbers<[1], [0], [0], [1], [0, 0, 1, 1], [], []>} : vector<48x64xf32>, vector<64x64xf32>, vector<48x64xf32> -> vector<48x64xf32>
    %141 = arith.addf %136, %140 : vector<48x64xf32>
    %c3 = arith.constant 3 : index
    %c0_39 = arith.constant 0 : index
    %142 = vector.load %arg3[%c3, %c0_39] : memref<16x128xf32, #tpu.memory_space<vmem>>, vector<1x64xf32>
    %143 = vector.broadcast %142 : vector<1x64xf32> to vector<48x64xf32>
    %144 = arith.addf %141, %143 : vector<48x64xf32>
    %c4 = arith.constant 4 : index
    %c0_40 = arith.constant 0 : index
    %145 = vector.load %arg3[%c4, %c0_40] : memref<16x128xf32, #tpu.memory_space<vmem>>, vector<1x64xf32>
    %c5 = arith.constant 5 : index
    %c0_41 = arith.constant 0 : index
    %146 = vector.load %arg3[%c5, %c0_41] : memref<16x128xf32, #tpu.memory_space<vmem>>, vector<1x64xf32>
    %147 = vector.shape_cast %144 : vector<48x64xf32> to vector<2x24x64xf32>
    %cst_42 = arith.constant dense<0.000000e+00> : vector<2x64xf32>
    %148 = vector.multi_reduction <add>, %147, %cst_42 [1] : vector<2x24x64xf32> to vector<2x64xf32>
    %149 = vector.shape_cast %148 : vector<2x64xf32> to vector<2x1x64xf32>
    %cst_43 = arith.constant 2.400000e+01 : f32
    %150 = vector.broadcast %cst_43 : f32 to vector<2x1x64xf32>
    %151 = arith.divf %149, %150 : vector<2x1x64xf32>
    %152 = arith.mulf %147, %147 : vector<2x24x64xf32>
    %cst_44 = arith.constant dense<0.000000e+00> : vector<2x64xf32>
    %153 = vector.multi_reduction <add>, %152, %cst_44 [1] : vector<2x24x64xf32> to vector<2x64xf32>
    %154 = vector.shape_cast %153 : vector<2x64xf32> to vector<2x1x64xf32>
    %cst_45 = arith.constant 2.400000e+01 : f32
    %155 = vector.broadcast %cst_45 : f32 to vector<2x1x64xf32>
    %156 = arith.divf %154, %155 : vector<2x1x64xf32>
    %157 = arith.mulf %151, %151 : vector<2x1x64xf32>
    %158 = arith.subf %156, %157 : vector<2x1x64xf32>
    %159 = vector.broadcast %151 : vector<2x1x64xf32> to vector<2x24x64xf32>
    %160 = arith.subf %147, %159 : vector<2x24x64xf32>
    %cst_46 = arith.constant 9.99999974E-6 : f32
    %161 = vector.broadcast %cst_46 : f32 to vector<2x1x64xf32>
    %162 = arith.addf %158, %161 : vector<2x1x64xf32>
    %163 = math.rsqrt %162 : vector<2x1x64xf32>
    %164 = vector.broadcast %163 : vector<2x1x64xf32> to vector<2x24x64xf32>
    %165 = arith.mulf %160, %164 : vector<2x24x64xf32>
    %166 = vector.shape_cast %145 : vector<1x64xf32> to vector<1x1x64xf32>
    %167 = vector.broadcast %166 : vector<1x1x64xf32> to vector<2x24x64xf32>
    %168 = arith.mulf %165, %167 : vector<2x24x64xf32>
    %169 = vector.shape_cast %146 : vector<1x64xf32> to vector<1x1x64xf32>
    %170 = vector.broadcast %169 : vector<1x1x64xf32> to vector<2x24x64xf32>
    %171 = arith.addf %168, %170 : vector<2x24x64xf32>
    %cst_47 = arith.constant 0.000000e+00 : f32
    %172 = vector.broadcast %cst_47 : f32 to vector<2x24x64xf32>
    %173 = arith.cmpf oge, %171, %172 : vector<2x24x64xf32>
    %cst_48 = arith.constant 0.00999999977 : f32
    %174 = vector.broadcast %cst_48 : f32 to vector<2x24x64xf32>
    %175 = arith.mulf %174, %171 : vector<2x24x64xf32>
    %176 = arith.select %173, %171, %175 : vector<2x24x64xi1>, vector<2x24x64xf32>
    %177 = vector.shape_cast %176 : vector<2x24x64xf32> to vector<48x64xf32>
    %178 = vector.shape_cast %177 : vector<48x64xf32> to vector<4x12x64xf32>
    %c208 = arith.constant 208 : index
    %c0_49 = arith.constant 0 : index
    %179 = vector.load %arg2[%c208, %c0_49] : memref<656x128xf32, #tpu.memory_space<vmem>>, vector<128x32xf32>
    %180 = vector.extract_strided_slice %178 {offsets = [0, 0, 0], sizes = [4, 11, 64], strides = [1, 1, 1]} : vector<4x12x64xf32> to vector<4x11x64xf32>
    %181 = vector.shape_cast %180 : vector<4x11x64xf32> to vector<44x64xf32>
    %182 = vector.extract_strided_slice %179 {offsets = [0, 0], sizes = [64, 32], strides = [1, 1]} : vector<128x32xf32> to vector<64x32xf32>
    %cst_50 = arith.constant dense<0.000000e+00> : vector<44x32xf32>
    %183 = tpu.matmul %181, %182, %cst_50 {dimension_numbers = #tpu.dot_dimension_numbers<[1], [0], [0], [1], [0, 0, 1, 1], [], []>} : vector<44x64xf32>, vector<64x32xf32>, vector<44x32xf32> -> vector<44x32xf32>
    %184 = vector.extract_strided_slice %178 {offsets = [0, 1, 0], sizes = [4, 11, 64], strides = [1, 1, 1]} : vector<4x12x64xf32> to vector<4x11x64xf32>
    %185 = vector.shape_cast %184 : vector<4x11x64xf32> to vector<44x64xf32>
    %186 = vector.extract_strided_slice %179 {offsets = [64, 0], sizes = [64, 32], strides = [1, 1]} : vector<128x32xf32> to vector<64x32xf32>
    %cst_51 = arith.constant dense<0.000000e+00> : vector<44x32xf32>
    %187 = tpu.matmul %185, %186, %cst_51 {dimension_numbers = #tpu.dot_dimension_numbers<[1], [0], [0], [1], [0, 0, 1, 1], [], []>} : vector<44x64xf32>, vector<64x32xf32>, vector<44x32xf32> -> vector<44x32xf32>
    %188 = arith.addf %183, %187 : vector<44x32xf32>
    %c6 = arith.constant 6 : index
    %c0_52 = arith.constant 0 : index
    %189 = vector.load %arg3[%c6, %c0_52] : memref<16x128xf32, #tpu.memory_space<vmem>>, vector<1x32xf32>
    %190 = vector.broadcast %189 : vector<1x32xf32> to vector<44x32xf32>
    %191 = arith.addf %188, %190 : vector<44x32xf32>
    %c7 = arith.constant 7 : index
    %c0_53 = arith.constant 0 : index
    %192 = vector.load %arg3[%c7, %c0_53] : memref<16x128xf32, #tpu.memory_space<vmem>>, vector<1x32xf32>
    %c8 = arith.constant 8 : index
    %c0_54 = arith.constant 0 : index
    %193 = vector.load %arg3[%c8, %c0_54] : memref<16x128xf32, #tpu.memory_space<vmem>>, vector<1x32xf32>
    %194 = vector.shape_cast %191 : vector<44x32xf32> to vector<2x22x32xf32>
    %cst_55 = arith.constant dense<0.000000e+00> : vector<2x32xf32>
    %195 = vector.multi_reduction <add>, %194, %cst_55 [1] : vector<2x22x32xf32> to vector<2x32xf32>
    %196 = vector.shape_cast %195 : vector<2x32xf32> to vector<2x1x32xf32>
    %cst_56 = arith.constant 2.200000e+01 : f32
    %197 = vector.broadcast %cst_56 : f32 to vector<2x1x32xf32>
    %198 = arith.divf %196, %197 : vector<2x1x32xf32>
    %199 = arith.mulf %194, %194 : vector<2x22x32xf32>
    %cst_57 = arith.constant dense<0.000000e+00> : vector<2x32xf32>
    %200 = vector.multi_reduction <add>, %199, %cst_57 [1] : vector<2x22x32xf32> to vector<2x32xf32>
    %201 = vector.shape_cast %200 : vector<2x32xf32> to vector<2x1x32xf32>
    %cst_58 = arith.constant 2.200000e+01 : f32
    %202 = vector.broadcast %cst_58 : f32 to vector<2x1x32xf32>
    %203 = arith.divf %201, %202 : vector<2x1x32xf32>
    %204 = arith.mulf %198, %198 : vector<2x1x32xf32>
    %205 = arith.subf %203, %204 : vector<2x1x32xf32>
    %206 = vector.broadcast %198 : vector<2x1x32xf32> to vector<2x22x32xf32>
    %207 = arith.subf %194, %206 : vector<2x22x32xf32>
    %cst_59 = arith.constant 9.99999974E-6 : f32
    %208 = vector.broadcast %cst_59 : f32 to vector<2x1x32xf32>
    %209 = arith.addf %205, %208 : vector<2x1x32xf32>
    %210 = math.rsqrt %209 : vector<2x1x32xf32>
    %211 = vector.broadcast %210 : vector<2x1x32xf32> to vector<2x22x32xf32>
    %212 = arith.mulf %207, %211 : vector<2x22x32xf32>
    %213 = vector.shape_cast %192 : vector<1x32xf32> to vector<1x1x32xf32>
    %214 = vector.broadcast %213 : vector<1x1x32xf32> to vector<2x22x32xf32>
    %215 = arith.mulf %212, %214 : vector<2x22x32xf32>
    %216 = vector.shape_cast %193 : vector<1x32xf32> to vector<1x1x32xf32>
    %217 = vector.broadcast %216 : vector<1x1x32xf32> to vector<2x22x32xf32>
    %218 = arith.addf %215, %217 : vector<2x22x32xf32>
    %cst_60 = arith.constant 0.000000e+00 : f32
    %219 = vector.broadcast %cst_60 : f32 to vector<2x22x32xf32>
    %220 = arith.cmpf oge, %218, %219 : vector<2x22x32xf32>
    %cst_61 = arith.constant 0.00999999977 : f32
    %221 = vector.broadcast %cst_61 : f32 to vector<2x22x32xf32>
    %222 = arith.mulf %221, %218 : vector<2x22x32xf32>
    %223 = arith.select %220, %218, %222 : vector<2x22x32xi1>, vector<2x22x32xf32>
    %224 = vector.shape_cast %223 : vector<2x22x32xf32> to vector<44x32xf32>
    %225 = vector.shape_cast %224 : vector<44x32xf32> to vector<4x11x32xf32>
    %cst_62 = arith.constant dense<0.000000e+00> : vector<4x32xf32>
    %226 = vector.multi_reduction <add>, %225, %cst_62 [1] : vector<4x11x32xf32> to vector<4x32xf32>
    %cst_63 = arith.constant 1.100000e+01 : f32
    %227 = vector.broadcast %cst_63 : f32 to vector<4x32xf32>
    %228 = arith.divf %226, %227 : vector<4x32xf32>
    %c336 = arith.constant 336 : index
    %c0_64 = arith.constant 0 : index
    %229 = vector.load %arg2[%c336, %c0_64] : memref<656x128xf32, #tpu.memory_space<vmem>>, vector<192x64xf32>
    %c9 = arith.constant 9 : index
    %c0_65 = arith.constant 0 : index
    %230 = vector.load %arg3[%c9, %c0_65] : memref<16x128xf32, #tpu.memory_space<vmem>>, vector<1x64xf32>
    %231 = vector.extract_strided_slice %229 {offsets = [64, 0], sizes = [128, 64], strides = [1, 1]} : vector<192x64xf32> to vector<128x64xf32>
    %cst_66 = arith.constant dense<0.000000e+00> : vector<2x64xf32>
    %232 = tpu.matmul %79, %231, %cst_66 {dimension_numbers = #tpu.dot_dimension_numbers<[1], [0], [0], [1], [0, 0, 1, 1], [], []>} : vector<2x128xf32>, vector<128x64xf32>, vector<2x64xf32> -> vector<2x64xf32>
    %233 = vector.broadcast %230 : vector<1x64xf32> to vector<2x64xf32>
    %234 = arith.addf %233, %232 : vector<2x64xf32>
    %235 = vector.extract_strided_slice %228 {offsets = [0, 0], sizes = [2, 32], strides = [1, 1]} : vector<4x32xf32> to vector<2x32xf32>
    %236 = vector.extract_strided_slice %229 {offsets = [0, 0], sizes = [32, 64], strides = [1, 1]} : vector<192x64xf32> to vector<32x64xf32>
    %cst_67 = arith.constant dense<0.000000e+00> : vector<2x64xf32>
    %237 = tpu.matmul %235, %236, %cst_67 {dimension_numbers = #tpu.dot_dimension_numbers<[1], [0], [0], [1], [0, 0, 1, 1], [], []>} : vector<2x32xf32>, vector<32x64xf32>, vector<2x64xf32> -> vector<2x64xf32>
    %238 = arith.addf %234, %237 : vector<2x64xf32>
    %239 = vector.extract_strided_slice %228 {offsets = [2, 0], sizes = [2, 32], strides = [1, 1]} : vector<4x32xf32> to vector<2x32xf32>
    %240 = vector.extract_strided_slice %229 {offsets = [32, 0], sizes = [32, 64], strides = [1, 1]} : vector<192x64xf32> to vector<32x64xf32>
    %cst_68 = arith.constant dense<0.000000e+00> : vector<2x64xf32>
    %241 = tpu.matmul %239, %240, %cst_68 {dimension_numbers = #tpu.dot_dimension_numbers<[1], [0], [0], [1], [0, 0, 1, 1], [], []>} : vector<2x32xf32>, vector<32x64xf32>, vector<2x64xf32> -> vector<2x64xf32>
    %242 = arith.addf %238, %241 : vector<2x64xf32>
    %c10 = arith.constant 10 : index
    %c0_69 = arith.constant 0 : index
    %243 = vector.load %arg3[%c10, %c0_69] : memref<16x128xf32, #tpu.memory_space<vmem>>, vector<1x64xf32>
    %c11 = arith.constant 11 : index
    %c0_70 = arith.constant 0 : index
    %244 = vector.load %arg3[%c11, %c0_70] : memref<16x128xf32, #tpu.memory_space<vmem>>, vector<1x64xf32>
    %245 = vector.shape_cast %242 : vector<2x64xf32> to vector<1x2x64xf32>
    %cst_71 = arith.constant dense<0.000000e+00> : vector<1x64xf32>
    %246 = vector.multi_reduction <add>, %245, %cst_71 [1] : vector<1x2x64xf32> to vector<1x64xf32>
    %247 = vector.shape_cast %246 : vector<1x64xf32> to vector<1x1x64xf32>
    %cst_72 = arith.constant 2.000000e+00 : f32
    %248 = vector.broadcast %cst_72 : f32 to vector<1x1x64xf32>
    %249 = arith.divf %247, %248 : vector<1x1x64xf32>
    %250 = arith.mulf %245, %245 : vector<1x2x64xf32>
    %cst_73 = arith.constant dense<0.000000e+00> : vector<1x64xf32>
    %251 = vector.multi_reduction <add>, %250, %cst_73 [1] : vector<1x2x64xf32> to vector<1x64xf32>
    %252 = vector.shape_cast %251 : vector<1x64xf32> to vector<1x1x64xf32>
    %cst_74 = arith.constant 2.000000e+00 : f32
    %253 = vector.broadcast %cst_74 : f32 to vector<1x1x64xf32>
    %254 = arith.divf %252, %253 : vector<1x1x64xf32>
    %255 = arith.mulf %249, %249 : vector<1x1x64xf32>
    %256 = arith.subf %254, %255 : vector<1x1x64xf32>
    %257 = vector.broadcast %249 : vector<1x1x64xf32> to vector<1x2x64xf32>
    %258 = arith.subf %245, %257 : vector<1x2x64xf32>
    %cst_75 = arith.constant 9.99999974E-6 : f32
    %259 = vector.broadcast %cst_75 : f32 to vector<1x1x64xf32>
    %260 = arith.addf %256, %259 : vector<1x1x64xf32>
    %261 = math.rsqrt %260 : vector<1x1x64xf32>
    %262 = vector.broadcast %261 : vector<1x1x64xf32> to vector<1x2x64xf32>
    %263 = arith.mulf %258, %262 : vector<1x2x64xf32>
    %264 = vector.shape_cast %243 : vector<1x64xf32> to vector<1x1x64xf32>
    %265 = vector.broadcast %264 : vector<1x1x64xf32> to vector<1x2x64xf32>
    %266 = arith.mulf %263, %265 : vector<1x2x64xf32>
    %267 = vector.shape_cast %244 : vector<1x64xf32> to vector<1x1x64xf32>
    %268 = vector.broadcast %267 : vector<1x1x64xf32> to vector<1x2x64xf32>
    %269 = arith.addf %266, %268 : vector<1x2x64xf32>
    %cst_76 = arith.constant 0.000000e+00 : f32
    %270 = vector.broadcast %cst_76 : f32 to vector<1x2x64xf32>
    %271 = arith.cmpf oge, %269, %270 : vector<1x2x64xf32>
    %cst_77 = arith.constant 0.00999999977 : f32
    %272 = vector.broadcast %cst_77 : f32 to vector<1x2x64xf32>
    %273 = arith.mulf %272, %269 : vector<1x2x64xf32>
    %274 = arith.select %271, %269, %273 : vector<1x2x64xi1>, vector<1x2x64xf32>
    %275 = vector.shape_cast %274 : vector<1x2x64xf32> to vector<2x64xf32>
    %c528 = arith.constant 528 : index
    %c0_78 = arith.constant 0 : index
    %276 = vector.load %arg2[%c528, %c0_78] : memref<656x128xf32, #tpu.memory_space<vmem>>, vector<64x32xf32>
    %cst_79 = arith.constant dense<0.000000e+00> : vector<2x32xf32>
    %277 = tpu.matmul %275, %276, %cst_79 {dimension_numbers = #tpu.dot_dimension_numbers<[1], [0], [0], [1], [0, 0, 1, 1], [], []>} : vector<2x64xf32>, vector<64x32xf32>, vector<2x32xf32> -> vector<2x32xf32>
    %c12 = arith.constant 12 : index
    %c0_80 = arith.constant 0 : index
    %278 = vector.load %arg3[%c12, %c0_80] : memref<16x128xf32, #tpu.memory_space<vmem>>, vector<1x32xf32>
    %279 = vector.broadcast %278 : vector<1x32xf32> to vector<2x32xf32>
    %280 = arith.addf %277, %279 : vector<2x32xf32>
    %c592 = arith.constant 592 : index
    %c0_81 = arith.constant 0 : index
    %281 = vector.load %arg2[%c592, %c0_81] : memref<656x128xf32, #tpu.memory_space<vmem>>, vector<32x32xf32>
    %cst_82 = arith.constant dense<0.000000e+00> : vector<2x32xf32>
    %282 = tpu.matmul %280, %281, %cst_82 {dimension_numbers = #tpu.dot_dimension_numbers<[1], [0], [0], [1], [0, 0, 1, 1], [], []>} : vector<2x32xf32>, vector<32x32xf32>, vector<2x32xf32> -> vector<2x32xf32>
    %c13 = arith.constant 13 : index
    %c0_83 = arith.constant 0 : index
    %283 = vector.load %arg3[%c13, %c0_83] : memref<16x128xf32, #tpu.memory_space<vmem>>, vector<1x32xf32>
    %284 = vector.broadcast %283 : vector<1x32xf32> to vector<2x32xf32>
    %285 = arith.addf %282, %284 : vector<2x32xf32>
    %cst_84 = arith.constant 5.000000e-01 : f32
    %286 = vector.broadcast %cst_84 : f32 to vector<2x32xf32>
    %287 = arith.mulf %286, %285 : vector<2x32xf32>
    %cst_85 = arith.constant 0.707106769 : f32
    %288 = vector.broadcast %cst_85 : f32 to vector<2x32xf32>
    %289 = arith.mulf %285, %288 : vector<2x32xf32>
    %290 = math.erf %289 : vector<2x32xf32>
    %cst_86 = arith.constant 1.000000e+00 : f32
    %291 = vector.broadcast %cst_86 : f32 to vector<2x32xf32>
    %292 = arith.addf %291, %290 : vector<2x32xf32>
    %293 = arith.mulf %287, %292 : vector<2x32xf32>
    %c624 = arith.constant 624 : index
    %c0_87 = arith.constant 0 : index
    %294 = vector.load %arg2[%c624, %c0_87] : memref<656x128xf32, #tpu.memory_space<vmem>>, vector<32x2xf32>
    %cst_88 = arith.constant dense<0.000000e+00> : vector<2x2xf32>
    %295 = tpu.matmul %293, %294, %cst_88 {dimension_numbers = #tpu.dot_dimension_numbers<[1], [0], [0], [1], [0, 0, 1, 1], [], []>} : vector<2x32xf32>, vector<32x2xf32>, vector<2x2xf32> -> vector<2x2xf32>
    %c14 = arith.constant 14 : index
    %c0_89 = arith.constant 0 : index
    %296 = vector.load %arg3[%c14, %c0_89] : memref<16x128xf32, #tpu.memory_space<vmem>>, vector<1x2xf32>
    %297 = vector.broadcast %296 : vector<1x2xf32> to vector<2x2xf32>
    %298 = arith.addf %295, %297 : vector<2x2xf32>
    %c0_90 = arith.constant 0 : index
    %c0_91 = arith.constant 0 : index
    %299 = vector.load %arg4[%c0_90, %c0_91] : memref<2x2xf32, #tpu.memory_space<vmem>>, vector<2x2xf32>
    tpu.vector_store %arg4[%c0_90, %c0_91], %298 {strides = array<i32>} : memref<2x2xf32, #tpu.memory_space<vmem>>, vector<2x2xf32>,
    return
  }
}

</mosaic_0001>

<bundles_post_ra>
// kernel: tapnet_forward.1
= control target key start
LH: loop header
LB: loop body
LE: loop exit
PB: predicated region body
PF: predicated region fallthrough
CT: control target
= control target key end

     0   :  { %9 = vsyncpa [#allocation3], 0  ;;  %s4869_s0 = inlined_call_operand.vmem [shape: f32[2,16,4], index: 0, kind: input, shape index: {}]   ;;  %s4870_s1 = inlined_call_operand.hbm [shape: f32[152,512], index: 1, kind: input, shape index: {}]   ;;  %s4871_s2 = inlined_call_operand.hbm [shape: f32[656,128], index: 2, kind: input, shape index: {}]   ;;  %s4872_s3 = inlined_call_operand.vmem [shape: f32[16,128], index: 3, kind: input, shape index: {}]   ;;  %s4873_s4 = inlined_call_operand.hbm [shape: f32[2,2], index: 4, kind: output, shape index: {}]  }
   0x1   :  { %10 = vsyncpa [#allocation6], 0 }
   0x2   :  { %11 = vsyncpa [#allocation4], 0  ;;  %s18_s17 = sshll.u32 %s4870_s1, 4  ;;  %s3154_s18 = smov [#allocation2]   ;;  %s19_s17 = int_to_ptr.hbm [resolvable:$true] %s18_s17 }
   0x3   :  { %s20_s19 = sshll.u32 %s3154_s18, 4  ;;  %s31_s22 = sshll.u32 %s4871_s2, 4  ;;  %s21_s19 = int_to_ptr.vmem [resolvable:$true] %s20_s19  ;;  %s32_s22 = int_to_ptr.hbm [resolvable:$true] %s31_s22 }
   0x4   :  { %s3155_s23 = smov 512   ;;  %s3156_s24 = smov 32  }
   0x5   :  { %26 = dma.hbm_to_vmem [thread:$0]  %s19_s17, 9728, %s21_s19, [#allocation3], %s3155_s23, %s3155_s23, %s3156_s24  }
   0x6   :  { %s3157_s25 = smov [#allocation5]   ;;  %s3158_s27 = smov 128  }
   0x7   :  { %s33_s26 = sshll.u32 %s3157_s25, 4  ;;  %s3159_s28 = smov 8   ;;  %s34_s26 = int_to_ptr.vmem [resolvable:$true] %s33_s26 }
   0x8   :  { %39 = dma.hbm_to_vmem [thread:$0]  %s32_s22, 10496, %s34_s26, [#allocation6], %s3158_s27, %s3158_s27, %s3159_s28  }
   0x9   :  { %3148 = dma.done.wait [#allocation3], 9728  }
   0xa   :  { %3149 = vsyncadd [#allocation3], 4294957568 }
   0xb   :  { %3150 = dma.done.wait [#allocation6], 10496  }
   0xc   :  { %3151 = vsyncadd [#allocation6], 4294956800  ;;  %v3205_v0 = vld [vmem:[%s4869_s0 + $0x10] sm:$0xff]  ;;  %v3210_v1 = vld [vmem:[%s4869_s0] sm:$0xff]  ;;  %vm664_vm0 = vcmask 1046528   ;;  %vm683_vm1 = vcmask 1045504  }
   0xd   :  { %4900 = vst [vmem:[#allocation11_spill] sm:$0xff] %v3210_v1  ;;  %160 = vxpose.xlu1.b32.start [1/2] (short) (narrow) %v3205_v0, 8  ;;  %128 = vxpose.xlu0.b32.start [1/2] (short) (narrow) %v3210_v1, 8  ;;  %v59_v2 = vld [vmem:[#allocation2 + $0x28] sm:$0xff]  ;;  %v61_v3 = vld [vmem:[#allocation2 + $0x38] sm:$0xff]  ;;  %v58_v4 = vld [vmem:[#allocation2 + $0x20] sm:$0xff] }
   0xe   :  { %235 = vmatpush.msra.mxu1 %v59_v2  ;;  %275 = vmatpush.msra.mxu3 %v61_v3  ;;  %v55_v5 = vld [vmem:[#allocation2 + $0x8] sm:$0xff]  ;;  %v60_v6 = vld [vmem:[#allocation2 + $0x30] sm:$0xff]  ;;  %v57_v7 = vld [vmem:[#allocation2 + $0x18] sm:$0xff]  ;;  %vm198_vm2 = vcmask 130048   ;;  %vm702_vm3 = vcmask 31744   ;;  %vm707_vm4 = vcmask 64512  }
   0xf   :  { %215 = vmatpush.msra.mxu0 %v58_v4  ;;  %255 = vmatpush.msra.mxu2 %v60_v6  ;;  %v3214_v8 = vld [vmem:[#allocation2 + $0x228] sm:$0xff]  ;;  %v3216_v9 = vld [vmem:[#allocation2 + $0x238] sm:$0xff]  ;;  %v54_v10 = vld [vmem:[#allocation2] sm:$0xff]  ;;  %vm287_vm5 = vcmask 1043456   ;;  %s3164_s15 = smov 64   ;;  %s3169_s11 = smov [#allocation7]  }
  0x10   :  { %236 = vmatpush.msra.mxu1 %v55_v5  ;;  %276 = vmatpush.msra.mxu3 %v57_v7  ;;  %v56_v11 = vld [vmem:[#allocation2 + $0x10] sm:$0xff]  ;;  %v3218_v12 = vld [vmem:[#allocation2 + $0x220] sm:$0xff]  ;;  %v3222_v13 = vld [vmem:[#allocation2 + $0x208] sm:$0xff]  ;;  %s2913_s12 = sshll.u32 %s3169_s11, 4  ;;  %s2914_s12 = int_to_ptr.vmem [resolvable:$true] %s2913_s12 }
  0x11   :  { %v3224_v14 = vld [vmem:[#allocation2 + $0x230] sm:$0xff]  ;;  %v3226_v15 = vld [vmem:[#allocation2 + $0x218] sm:$0xff]  ;;  %v3236_v17 = vld [vmem:[%s4869_s0 + $0x8] sm:$0xff]  ;;  %216 = vmatpush.msra.mxu0 %v54_v10  ;;  %256 = vmatpush.msra.mxu2 %v56_v11 }
  0x12   :  { %333 = vmatpush.msrb.mxu1 %v3214_v8  ;;  %373 = vmatpush.msrb.mxu3 %v3216_v9  ;;  %v3231_v16 = vld [vmem:[%s4869_s0 + $0x18] sm:$0xff]  ;;  %4901 = vst [vmem:[#allocation12_spill] sm:$0xff] %v3236_v17  ;;  %v3240_v18 = vld [vmem:[#allocation2 + $0x200] sm:$0xff]  ;;  %v3242_v19 = vld [vmem:[#allocation2 + $0x1e8] sm:$0xff]  ;;  %s3160_s0 = smov 4  }
  0x13   :  { %313 = vmatpush.msrb.mxu0 %v3218_v12  ;;  %353 = vmatpush.msrb.mxu2 %v3224_v14  ;;  %v3246_v20 = vld [vmem:[#allocation2 + $0x210] sm:$0xff]  ;;  %v3248_v21 = vld [vmem:[#allocation2 + $0x1f8] sm:$0xff]  ;;  %v3252_v22 = vld [vmem:[#allocation2 + $0x1e0] sm:$0xff] }
  0x14   :  { %334 = vmatpush.msrb.mxu1 %v3222_v13  ;;  %374 = vmatpush.msrb.mxu3 %v3226_v15  ;;  %v3254_v23 = vld [vmem:[#allocation2 + $0x1c8] sm:$0xff]  ;;  %v3258_v24 = vld [vmem:[#allocation2 + $0x1f0] sm:$0xff]  ;;  %v3260_v25 = vld [vmem:[#allocation2 + $0x1d8] sm:$0xff] }
  0x15   :  { %161 = vxpose.xlu1.b32.end [2/2] (short) (narrow) %v3231_v16, 8  ;;  %129 = vxpose.xlu0.b32.end [2/2] (short) (narrow) %v3236_v17, 8  ;;  %v3262_v26 = vld [vmem:[#allocation2 + $0x1c0] sm:$0xff]  ;;  %v3266_v27 = vld [vmem:[#allocation2 + $0x1a8] sm:$0xff]  ;;  %v3268_v28 = vld [vmem:[#allocation2 + $0x1d0] sm:$0xff] }
  0x16   :  { %314 = vmatpush.msrb.mxu0 %v3240_v18  ;;  %335 = vmatpush.msrb.mxu1 %v3242_v19  ;;  %v3270_v29 = vld [vmem:[#allocation2 + $0x1b8] sm:$0xff]  ;;  %v3274_v30 = vld [vmem:[#allocation2 + $0x1a0] sm:$0xff]  ;;  %v3276_v31 = vld [vmem:[#allocation2 + $0x188] sm:$0xff] }
  0x17   :  { %354 = vmatpush.msrb.mxu2 %v3246_v20  ;;  %375 = vmatpush.msrb.mxu3 %v3248_v21  ;;  %v3278_v32 = vld [vmem:[#allocation2 + $0x1b0] sm:$0xff]  ;;  %v3282_v33 = vld [vmem:[#allocation2 + $0x198] sm:$0xff]  ;;  %v3284_v34 = vld [vmem:[#allocation2 + $0x180] sm:$0xff] }
  0x18   :  { %315 = vmatpush.msrb.mxu0 %v3252_v22  ;;  %336 = vmatpush.msrb.mxu1 %v3254_v23  ;;  %v3286_v35 = vld [vmem:[#allocation2 + $0x168] sm:$0xff]  ;;  %v3290_v36 = vld [vmem:[#allocation2 + $0x190] sm:$0xff]  ;;  %v3292_v37 = vld [vmem:[#allocation2 + $0x178] sm:$0xff] }
  0x19   :  { %355 = vmatpush.msrb.mxu2 %v3258_v24  ;;  %376 = vmatpush.msrb.mxu3 %v3260_v25  ;;  %v3296_v38 = vld [vmem:[#allocation2 + $0x160] sm:$0xff]  ;;  %v3298_v39 = vld [vmem:[#allocation2 + $0x148] sm:$0xff]  ;;  %v3306_v40 = vld [vmem:[#allocation2 + $0x170] sm:$0xff] }
  0x1a   :  { %316 = vmatpush.msrb.mxu0 %v3262_v26  ;;  %337 = vmatpush.msrb.mxu1 %v3266_v27  ;;  %v3308_v41 = vld [vmem:[#allocation2 + $0x158] sm:$0xff]  ;;  %v3316_v42 = vld [vmem:[#allocation2 + $0x140] sm:$0xff]  ;;  %v3318_v43 = vld [vmem:[#allocation2 + $0x128] sm:$0xff] }
  0x1b   :  { %356 = vmatpush.msrb.mxu2 %v3268_v28  ;;  %377 = vmatpush.msrb.mxu3 %v3270_v29  ;;  %v3320_v44 = vld [vmem:[#allocation2 + $0x150] sm:$0xff]  ;;  %v3324_v45 = vld [vmem:[#allocation2 + $0x138] sm:$0xff]  ;;  %v3328_v46 = vld [vmem:[#allocation2 + $0x120] sm:$0xff] }
  0x1c   :  { %317 = vmatpush.msrb.mxu0 %v3274_v30  ;;  %338 = vmatpush.msrb.mxu1 %v3276_v31  ;;  %v3330_v47 = vld [vmem:[#allocation2 + $0x108] sm:$0xff]  ;;  %v3332_v48 = vld [vmem:[#allocation2 + $0x130] sm:$0xff]  ;;  %v3336_v49 = vld [vmem:[#allocation2 + $0x118] sm:$0xff] }
  0x1d   :  { %357 = vmatpush.msrb.mxu2 %v3278_v32  ;;  %378 = vmatpush.msrb.mxu3 %v3282_v33  ;;  %v3340_v50 = vld [vmem:[#allocation2 + $0x100] sm:$0xff]  ;;  %v3342_v51 = vld [vmem:[#allocation2 + $0xe8] sm:$0xff]  ;;  %v3344_v52 = vld [vmem:[#allocation2 + $0x110] sm:$0xff] }
  0x1e   :  { %318 = vmatpush.msrb.mxu0 %v3284_v34  ;;  %339 = vmatpush.msrb.mxu1 %v3286_v35  ;;  %v3348_v53 = vld [vmem:[#allocation2 + $0xf8] sm:$0xff]  ;;  %v3352_v54 = vld [vmem:[#allocation2 + $0xe0] sm:$0xff]  ;;  %v3354_v55 = vld [vmem:[#allocation2 + $0xc8] sm:$0xff] }
  0x1f   :  { %358 = vmatpush.msrb.mxu2 %v3290_v36  ;;  %379 = vmatpush.msrb.mxu3 %v3292_v37  ;;  %v3356_v56 = vld [vmem:[#allocation2 + $0xf0] sm:$0xff]  ;;  %v3360_v57 = vld [vmem:[#allocation2 + $0xd8] sm:$0xff]  ;;  %v3364_v58 = vld [vmem:[#allocation2 + $0xc0] sm:$0xff] }
  0x20   :  { %319 = vmatpush.msrb.mxu0 %v3296_v38  ;;  %340 = vmatpush.msrb.mxu1 %v3298_v39  ;;  %v3366_v59 = vld [vmem:[#allocation2 + $0xa8] sm:$0xff]  ;;  %v3368_v60 = vld [vmem:[#allocation2 + $0xd0] sm:$0xff]  ;;  %v3372_v61 = vld [vmem:[#allocation2 + $0xb8] sm:$0xff] }
  0x21   :  { %359 = vmatpush.msrb.mxu2 %v3306_v40  ;;  %380 = vmatpush.msrb.mxu3 %v3308_v41  ;;  %4902 = vst [vmem:[#allocation13_spill] sm:$0xff] %v3372_v61  ;;  %v3374_v62 = vld [vmem:[#allocation2 + $0xa0] sm:$0xff]  ;;  %v3376_v63 = vld [vmem:[#allocation2 + $0x88] sm:$0xff]  ;;  %v3380_v2 = vld [vmem:[#allocation2 + $0xb0] sm:$0xff] }
  0x22   :  { %320 = vmatpush.msrb.mxu0 %v3316_v42  ;;  %341 = vmatpush.msrb.mxu1 %v3318_v43  ;;  %4903 = vst [vmem:[#allocation14_spill] sm:$0xff] %v3376_v63  ;;  %v3382_v3 = vld [vmem:[#allocation2 + $0x98] sm:$0xff]  ;;  %v3384_v4 = vld [vmem:[#allocation2 + $0x80] sm:$0xff]  ;;  %v3388_v5 = vld [vmem:[#allocation2 + $0x68] sm:$0xff] }
  0x23   :  { %360 = vmatpush.msrb.mxu2 %v3320_v44  ;;  %381 = vmatpush.msrb.mxu3 %v3324_v45  ;;  %4904 = vst [vmem:[#allocation15_spill] sm:$0xff] %v3380_v2  ;;  %v3390_v6 = vld [vmem:[#allocation2 + $0x90] sm:$0xff]  ;;  %v3392_v7 = vld [vmem:[#allocation2 + $0x78] sm:$0xff]  ;;  %v3396_v10 = vld [vmem:[#allocation2 + $0x60] sm:$0xff] }
  0x24   :  { %321 = vmatpush.msrb.mxu0 %v3328_v46  ;;  %342 = vmatpush.msrb.mxu1 %v3330_v47  ;;  %4905 = vst [vmem:[#allocation16_spill] sm:$0xff] %v3382_v3  ;;  %v3398_v11 = vld [vmem:[#allocation2 + $0x48] sm:$0xff] }
  0x25   :  { %361 = vmatpush.msrb.mxu2 %v3332_v48  ;;  %382 = vmatpush.msrb.mxu3 %v3336_v49  ;;  %4906 = vst [vmem:[#allocation17_spill] sm:$0xff] %v3384_v4 }
  0x26   :  { %322 = vmatpush.msrb.mxu0 %v3340_v50  ;;  %343 = vmatpush.msrb.mxu1 %v3342_v51  ;;  %4907 = vst [vmem:[#allocation18_spill] sm:$0xff] %v3388_v5 }
  0x27   :  { %362 = vmatpush.msrb.mxu2 %v3344_v52  ;;  %383 = vmatpush.msrb.mxu3 %v3348_v53  ;;  %4908 = vst [vmem:[#allocation19_spill] sm:$0xff] %v3390_v6 }
  0x28   :  { %323 = vmatpush.msrb.mxu0 %v3352_v54  ;;  %344 = vmatpush.msrb.mxu1 %v3354_v55  ;;  %4909 = vst [vmem:[#allocation20_spill] sm:$0xff] %v3392_v7 }
  0x29   :  { %363 = vmatpush.msrb.mxu2 %v3356_v56  ;;  %384 = vmatpush.msrb.mxu3 %v3360_v57  ;;  %4910 = vst [vmem:[#allocation21_spill] sm:$0xff] %v3398_v11 }
  0x2a   :  { %324 = vmatpush.msrb.mxu0 %v3364_v58  ;;  %345 = vmatpush.msrb.mxu1 %v3366_v59 }
  0x2b   :  { %364 = vmatpush.msrb.mxu2 %v3368_v60  ;;  %385 = vmatpush.msrb.mxu3 %v3372_v61  ;;  %v3402_v61 = vld [vmem:[#allocation2 + $0x70] sm:$0xff] }
  0x2c   :  { %325 = vmatpush.msrb.mxu0 %v3374_v62  ;;  %346 = vmatpush.msrb.mxu1 %v3376_v63  ;;  %v3404_v63 = vld [vmem:[#allocation2 + $0x58] sm:$0xff] }
  0x2d   :  { %365 = vmatpush.msrb.mxu2 %v3380_v2  ;;  %386 = vmatpush.msrb.mxu3 %v3382_v3  ;;  %4911 = vst [vmem:[#allocation22_spill] sm:$0xff] %v3404_v63  ;;  %v3412_v3 = vld [vmem:[#allocation2 + $0x40] sm:$0xff]  ;;  %v666_v2 = vrot.slane %v3236_v17, 1 }
  0x2e   :  { %326 = vmatpush.msrb.mxu0 %v3384_v4  ;;  %347 = vmatpush.msrb.mxu1 %v3388_v5  ;;  %4912 = vst [vmem:[#allocation23_spill] sm:$0xff] %v3412_v3  ;;  %v3414_v4 = vld [vmem:[#allocation2 + $0x50] sm:$0xff]  ;;  %v665_v5 = vrot.slane %v3210_v1, 1 }
  0x2f   :  { %366 = vmatpush.msrb.mxu2 %v3390_v6  ;;  %387 = vmatpush.msrb.mxu3 %v3392_v7  ;;  %4913 = vst [vmem:[#allocation24_spill] sm:$0xff] %v3414_v4  ;;  %v685_v6 = vrot.slane %v3236_v17, 2  ;;  %v668_v17 = vrot.slane %v3205_v0, 1 }
  0x30   :  { %327 = vmatpush.msrb.mxu0 %v3396_v10  ;;  %348 = vmatpush.msrb.mxu1 %v3398_v11  ;;  %v667_v11 = vsel %vm664_vm0, %v665_v5, %v666_v2 }
  0x31   :  { %367 = vmatpush.msrb.mxu2 %v3402_v61  ;;  %388 = vmatpush.msrb.mxu3 %v3404_v63  ;;  %v684_v63 = vrot.slane %v3210_v1, 2  ;;  %v688_v1 = vrot.slane %v3231_v16, 2 }
  0x32   :  { %328 = vmatpush.msrb.mxu0 %v3412_v3  ;;  %671 = vrot.lane.b32.xlu2 %v667_v11, %s3160_s0  ;;  %v687_v11 = vrot.slane %v3205_v0, 2 }
  0x33   :  { %368 = vmatpush.msrb.mxu2 %v3414_v4  ;;  %v686_v7 = vsel %vm683_vm1, %v684_v63, %v685_v6  ;;  %v669_v4 = vrot.slane %v3231_v16, 1 }
  0x3a   :  { %690 = vrot.lane.b32.xlu2 %v686_v7, %s3159_s28 }
  0x6f   :  { %692 = vrot.lane.b32.xlu1 %v685_v6, %s3159_s28  ;;  %v689_v6 = vsel %vm683_vm1, %v687_v11, %v688_v1 }
  0x83   :  { %673 = vrot.lane.b32.xlu0 %v666_v2, %s3160_s0  ;;  %v670_v2 = vsel %vm664_vm0, %v668_v17, %v669_v4  ;;  %v4920_v17 = vld [vmem:[#allocation18_spill] sm:$0xff] }
  0x84   :  { %675 = vrot.lane.b32.xlu2 %v670_v2, %s3160_s0 }
  0x8c   :  { %694 = vrot.lane.b32.xlu2 %v689_v6, %s3159_s28 }
  0x94   :  { %677 = vrot.lane.b32.xlu2 %v669_v4, %s3160_s0 }
  0x9c   :  { %696 = vrot.lane.b32.xlu2 %v688_v1, %s3159_s28  ;;  %v4914_v1 = vld [vmem:[#allocation15_spill] sm:$0xff] }
  0xb1   :  { %v176_v3 = vpop.trf.xlu1  ;;  %v144_v5 = vpop.trf.xlu0 }
  0xb2   :  { %196 = vst [vmem:[#allocation1 + $0x1] ss:$2 sm:$0xff] %v176_v3 }
  0xb3   :  { %194 = vst [vmem:[#allocation1] ss:$2 sm:$0xff] %v144_v5 }
  0xba   :  { %v197_v63 = vld.sshfl [vmem:[#allocation1] sm:$0xff pattern:$0x75316420] }
  0xbb   :  { %2926 = vmatmul.msk.f32.vlgmr.msra.gmra.mxu0 %vm198_vm2, %v197_v63  ;;  %2927 = vmatmul.msk.f32.vlgmr.msra.gmra.mxu1 %vm198_vm2, %v197_v63 }
  0xbc   :  { %2928 = vmatmul.msk.f32.vlgmr.msra.gmra.mxu2 %vm198_vm2, %v197_v63  ;;  %2929 = vmatmul.msk.f32.vlgmr.msra.gmra.mxu3 %vm198_vm2, %v197_v63  ;;  %vm755_vm2 = vcmask 97280  }
  0xbd   :  { %489 = vmatpush.msra.mxu0 %v3218_v12  ;;  %509 = vmatpush.msra.mxu1 %v3214_v8  ;;  %v3161_v8 = vmov 0.0   ;;  %v4916_v12 = vld [vmem:[#allocation17_spill] sm:$0xff] }
  0xbe   :  { %529 = vmatpush.msra.mxu2 %v3224_v14  ;;  %549 = vmatpush.msra.mxu3 %v3216_v9  ;;  %v4915_v9 = vld [vmem:[#allocation13_spill] sm:$0xff]  ;;  %v4918_v14 = vld [vmem:[#allocation19_spill] sm:$0xff] }
  0xbf   :  { %490 = vmatpush.msra.mxu0 %v3240_v18  ;;  %510 = vmatpush.msra.mxu1 %v3222_v13  ;;  %v4917_v13 = vld [vmem:[#allocation14_spill] sm:$0xff]  ;;  %v4921_v18 = vld [vmem:[#allocation20_spill] sm:$0xff] }
  0xc0   :  { %530 = vmatpush.msra.mxu2 %v3246_v20  ;;  %550 = vmatpush.msra.mxu3 %v3226_v15  ;;  %v4919_v15 = vld [vmem:[#allocation16_spill] sm:$0xff]  ;;  %v4923_v20 = vld [vmem:[#allocation21_spill] sm:$0xff] }
  0xc1   :  { %491 = vmatpush.msra.mxu0 %v3252_v22  ;;  %511 = vmatpush.msra.mxu1 %v3242_v19  ;;  %v4922_v19 = vld [vmem:[#allocation23_spill] sm:$0xff]  ;;  %v4925_v22 = vld [vmem:[#allocation22_spill] sm:$0xff] }
  0xc2   :  { %531 = vmatpush.msra.mxu2 %v3258_v24  ;;  %551 = vmatpush.msra.mxu3 %v3248_v21  ;;  %v4924_v21 = vld [vmem:[#allocation24_spill] sm:$0xff] }
  0xc3   :  { %349 = vmatmul.f32.vlgmr.msrb.gmra.mxu1 %v3161_v8  ;;  %329 = vmatmul.f32.vlgmr.msrb.gmra.mxu0 %v3161_v8 }
  0xc4   :  { %389 = vmatmul.f32.vlgmr.msrb.gmra.mxu3 %v3161_v8  ;;  %369 = vmatmul.f32.vlgmr.msrb.gmra.mxu2 %v3161_v8 }
  0xc5   :  { %492 = vmatpush.msra.mxu0 %v3262_v26  ;;  %512 = vmatpush.msra.mxu1 %v3254_v23  ;;  %v672_v23 = vpop.permute.xlu2 %671  ;;  %v127_v26 = vld [vmem:[#allocation2 + $0x240] ss:$8 sm:$0xf] }
  0xc6   :  { %532 = vmatpush.msra.mxu2 %v3268_v28  ;;  %552 = vmatpush.msra.mxu3 %v3260_v25  ;;  %v4926_v28 = vld [vmem:[#allocation11_spill] sm:$0xff] }
  0xc7   :  { %493 = vmatpush.msra.mxu0 %v3274_v30  ;;  %513 = vmatpush.msra.mxu1 %v3266_v27  ;;  %v300_v27 = vperm.slane %v127_v26, 1 }
  0xc8   :  { %533 = vmatpush.msra.mxu2 %v3278_v32  ;;  %553 = vmatpush.msra.mxu3 %v3270_v29  ;;  %v703_v29 = vsel %vm702_vm3, %v4926_v28, %v672_v23  ;;  %v299_v32 = vperm.slane %v127_v26, 0 }
  0xc9   :  { %494 = vmatpush.msra.mxu0 %v3284_v34  ;;  %514 = vmatpush.msra.mxu1 %v3276_v31 }
  0xca   :  { %534 = vmatpush.msra.mxu2 %v3290_v36  ;;  %554 = vmatpush.msra.mxu3 %v3282_v33  ;;  %v303_v33 = vrot.slane %v300_v27, 4 }
  0xcb   :  { %495 = vmatpush.msra.mxu0 %v3296_v38  ;;  %515 = vmatpush.msra.mxu1 %v3286_v35 }
  0xcc   :  { %535 = vmatpush.msra.mxu2 %v3306_v40  ;;  %555 = vmatpush.msra.mxu3 %v3292_v37 }
  0xcd   :  { %496 = vmatpush.msra.mxu0 %v3316_v42  ;;  %516 = vmatpush.msra.mxu1 %v3298_v39  ;;  %v691_v24 = vpop.permute.xlu2 %690  ;;  %v302_v42 = vperm.slane %v127_v26, 3 }
  0xce   :  { %536 = vmatpush.msra.mxu2 %v3320_v44  ;;  %556 = vmatpush.msra.mxu3 %v3308_v41  ;;  %v708_v34 = vsel %vm707_vm4, %v703_v29, %v691_v24 }
  0xcf   :  { %497 = vmatpush.msra.mxu0 %v3328_v46  ;;  %517 = vmatpush.msra.mxu1 %v3318_v43  ;;  %v716_v36 = vrot.slane %v708_v34, 2  ;;  %v717_v37 = vrot.slane %v708_v34, 4  ;;  %v718_v38 = vrot.slane %v708_v34, 6  ;;  %730 = vst [vmem:[#allocation1] ss:$4 sm:$0xff] %v708_v34  ;;  %v305_v43 = vsel %vm287_vm5, %v299_v32, %v303_v33  ;;  %v726_v34 = vld [vmem:[#allocation5] sm:$0xff] }
  0xd0   :  { %537 = vmatpush.msra.mxu2 %v3332_v48  ;;  %557 = vmatpush.msra.mxu3 %v3324_v45  ;;  %v727_v33 = vld [vmem:[#allocation5 + $0x8] sm:$0xf] }
  0xd1   :  { %498 = vmatpush.msra.mxu0 %v3340_v50  ;;  %518 = vmatpush.msra.mxu1 %v3330_v47  ;;  %732 = vst [vmem:[#allocation1 + $0x1] ss:$4 sm:$0xff] %v716_v36 }
  0xd2   :  { %538 = vmatpush.msra.mxu2 %v3344_v52  ;;  %558 = vmatpush.msra.mxu3 %v3336_v49  ;;  %734 = vst [vmem:[#allocation1 + $0x2] ss:$4 sm:$0xff] %v717_v37  ;;  %v304_v52 = vrot.slane %v302_v42, 4 }
  0xd3   :  { %499 = vmatpush.msra.mxu0 %v3352_v54  ;;  %519 = vmatpush.msra.mxu1 %v3342_v51  ;;  %736 = vst [vmem:[#allocation1 + $0x3] ss:$4 sm:$0xff] %v718_v38  ;;  %v301_v51 = vperm.slane %v127_v26, 2 }
  0xd4   :  { %539 = vmatpush.msra.mxu2 %v3356_v56  ;;  %559 = vmatpush.msra.mxu3 %v3348_v53 }
  0xd5   :  { %500 = vmatpush.msra.mxu0 %v3364_v58  ;;  %520 = vmatpush.msra.mxu1 %v3354_v55 }
  0xd6   :  { %540 = vmatpush.msra.mxu2 %v3368_v60  ;;  %560 = vmatpush.msra.mxu3 %v3360_v57 }
  0xd7   :  { %501 = vmatpush.msra.mxu0 %v3374_v62  ;;  %521 = vmatpush.msra.mxu1 %v3366_v59  ;;  %v4927_v59 = vld [vmem:[#allocation12_spill] sm:$0xff] }
  0xd8   :  { %541 = vmatpush.msra.mxu2 %v4914_v1  ;;  %561 = vmatpush.msra.mxu3 %v4915_v9 }
  0xd9   :  { %502 = vmatpush.msra.mxu0 %v4916_v12  ;;  %522 = vmatpush.msra.mxu1 %v4917_v13 }
  0xda   :  { %542 = vmatpush.msra.mxu2 %v4918_v14  ;;  %562 = vmatpush.msra.mxu3 %v4919_v15  ;;  %v3522_v15 = vld.sshfl [vmem:[#allocation1] sm:$0xff pattern:$0x73625140] }
  0xdb   :  { %503 = vmatpush.msra.mxu0 %v3396_v10  ;;  %523 = vmatpush.msra.mxu1 %v4920_v17  ;;  %v306_v10 = vsel %vm287_vm5, %v301_v51, %v304_v52 }
  0xdc   :  { %543 = vmatpush.msra.mxu2 %v3402_v61  ;;  %563 = vmatpush.msra.mxu3 %v4921_v18 }
  0xdd   :  { %504 = vmatpush.msra.mxu0 %v4922_v19  ;;  %524 = vmatpush.msra.mxu1 %v4923_v20 }
  0xde   :  { %544 = vmatpush.msra.mxu2 %v4924_v21  ;;  %564 = vmatpush.msra.mxu3 %v4925_v22  ;;  %v676_v25 = vpop.permute.xlu2 %675 }
  0xdf   :  { %v705_v58 = vsel %vm702_vm3, %v3205_v0, %v676_v25  ;;  %2936 = vmatpush.msk.msrb.mxu0 %vm287_vm5, %v727_v33  ;;  %v3162_v33 = vmov 28.0  }
  0xe1   :  { %v693_v55 = vpop.permute.xlu1 %692  ;;  %782 = vmatpush.msrb.mxu0 %v726_v34  ;;  %v3005_v34 = vld [vmem:[%s4872_s3] ss:$0 sm:$0xff] }
  0xe6   :  { %v695_v39 = vpop.permute.xlu2 %694 }
  0xe7   :  { %v710_v4 = vsel %vm707_vm4, %v705_v58, %v695_v39 }
  0xe8   :  { %744 = vst [vmem:[#allocation1 + $0x23] ss:$4 sm:$0xff] %v710_v4  ;;  %v721_v14 = vrot.slane %v710_v4, 2  ;;  %v722_v18 = vrot.slane %v710_v4, 4  ;;  %v723_v19 = vrot.slane %v710_v4, 6 }
  0xea   :  { %747 = vst [vmem:[#allocation1] ss:$4 sm:$0xff] %v721_v14 }
  0xeb   :  { %748 = vst [vmem:[#allocation1 + $0x1] ss:$4 sm:$0xff] %v722_v18 }
  0xec   :  { %749 = vst [vmem:[#allocation1 + $0x2] ss:$4 sm:$0xff] %v723_v19 }
  0xee   :  { %v678_v61 = vpop.permute.xlu2 %677 }
  0xef   :  { %v706_v20 = vsel %vm702_vm3, %v3231_v16, %v678_v61 }
  0xf5   :  { %v674_v54 = vpop.permute.xlu0 %673 }
  0xf6   :  { %v704_v60 = vsel %vm702_vm3, %v4927_v59, %v674_v54  ;;  %v697_v22 = vpop.permute.xlu2 %696 }
  0xf7   :  { %v709_v5 = vsel %vm707_vm4, %v704_v60, %v693_v55  ;;  %v711_v24 = vsel %vm707_vm4, %v706_v20, %v697_v22 }
  0xf8   :  { %v719_v11 = vrot.slane %v709_v5, 2  ;;  %v720_v63 = vrot.slane %v709_v5, 4  ;;  %738 = vst [vmem:[#allocation1 + $0x20] ss:$4 sm:$0xff] %v709_v5  ;;  %v724_v25 = vrot.slane %v711_v24, 2  ;;  %v725_v27 = vrot.slane %v711_v24, 4 }
  0xf9   :  { %750 = vst [vmem:[#allocation1 + $0x3] ss:$4 sm:$0xff] %v711_v24 }
  0xfa   :  { %740 = vst [vmem:[#allocation1 + $0x21] ss:$4 sm:$0xff] %v719_v11 }
  0xfb   :  { %742 = vst [vmem:[#allocation1 + $0x22] ss:$4 sm:$0xff] %v720_v63 }
 0x138   :  { %v218_v30 = vpop.f32.mrf.mxu0  ;;  %v238_v31 = vpop.f32.mrf.mxu1 }
 0x139   :  { %v285_v35 = vrot.slane %v238_v31, 4  ;;  %v3528_v31 = vld.sshfl [vmem:[#allocation1 + $0x20] sm:$0xff pattern:$0x73625140] }
 0x13a   :  { %751 = vst [vmem:[#allocation1 + $0x20] ss:$4 sm:$0xff] %v724_v25 }
 0x13b   :  { %v290_v40 = vsel %vm287_vm5, %v285_v35, %v218_v30  ;;  %v288_v45 = vsel %vm287_vm5, %v218_v30, %v285_v35  ;;  %752 = vst [vmem:[#allocation1 + $0x21] ss:$4 sm:$0xff] %v725_v27 }
 0x13c   :  { %v291_v41 = vrot.slane %v290_v40, 4  ;;  %v309_v57 = vadd.f32 %v305_v43, %v288_v45 }
 0x13e   :  { %v3507_v44 = vadd.f32 %v305_v43, %v291_v41 }
 0x13f   :  { %v258_v46 = vpop.f32.mrf.mxu2  ;;  %v278_v47 = vpop.f32.mrf.mxu3 }
 0x140   :  { %v286_v48 = vrot.slane %v278_v47, 4  ;;  %v350_v49 = vpop.f32.mrf.mxu1  ;;  %v330_v50 = vpop.f32.mrf.mxu0 }
 0x141   :  { %v397_v53 = vrot.slane %v350_v49, 4 }
 0x142   :  { %v292_v56 = vsel %vm287_vm5, %v286_v48, %v258_v46  ;;  %v289_v0 = vsel %vm287_vm5, %v258_v46, %v286_v48 }
 0x143   :  { %v293_v62 = vrot.slane %v292_v56, 4  ;;  %v399_v3 = vsel %vm287_vm5, %v330_v50, %v397_v53  ;;  %v310_v17 = vadd.f32 %v306_v10, %v289_v0 }
 0x144   :  { %v403_v7 = vadd.f32 %v399_v3, %v309_v57 }
 0x145   :  { %v3519_v2 = vadd.f32 %v306_v10, %v293_v62 }
 0x146   :  { %v2930_v6 = vmul.f32 -1.442695, %v403_v7  ;;  %v425_v8 = vrot.slane %v403_v7, 4 }
 0x147   :  { %v390_v1 = vpop.f32.mrf.mxu3  ;;  %v370_v9 = vpop.f32.mrf.mxu2 }
 0x148   :  { %3018 = vpow2.f32 %v2930_v6  ;;  %v2931_v12 = vmul.f32 -1.442695, %v425_v8  ;;  %v398_v13 = vrot.slane %v390_v1, 4 }
 0x14a   :  { %3020 = vpow2.f32 %v2931_v12  ;;  %v400_v21 = vsel %vm287_vm5, %v370_v9, %v398_v13  ;;  %v753_v9 = vld.sshfl [vmem:[#allocation1] sm:$0xff pattern:$0x73625140] }
 0x14b   :  { %v404_v23 = vadd.f32 %v400_v21, %v310_v17  ;;  %v754_v12 = vld.sshfl [vmem:[#allocation1 + $0x20] sm:$0xff pattern:$0x73625140] }
 0x14d   :  { %v448_v26 = vrot.slane %v404_v23, 4 }
 0x14e   :  { %v3019_v28 = vpop.eup %3018 }
 0x14f   :  { %v408_v29 = vadd.f32 1.0, %v3019_v28  ;;  %v2932_v30 = vmul.f32 -1.442695, %v448_v26 }
 0x150   :  { %v3021_v16 = vpop.eup %3020 }
 0x151   :  { %3022 = vrcp.f32 %v408_v29  ;;  %v430_v32 = vadd.f32 1.0, %v3021_v16  ;;  %v420_v42 = vand.u32 2147483648, %v408_v29  ;;  %v418_v46 = vand.u32 2147483647, %v408_v29 }
 0x152   :  { %3024 = vpow2.f32 %v2932_v30  ;;  %vm414_vm7 = vweird.f32 %v408_v29 }
 0x153   :  { %3026 = vrcp.f32 %v430_v32  ;;  %v442_v47 = vand.u32 2147483648, %v430_v32  ;;  %v440_v50 = vand.u32 2147483647, %v430_v32  ;;  %v421_v51 = vor.u32 1.1754944e-38, %v420_v42 }
 0x154   :  { %vm436_vm10 = vweird.f32 %v430_v32  ;;  %vm419_vm11 = vcmp.eq.f32.partialorder %v418_v46, 8.507059e+37  ;;  %v3163_v42 = vmov 4.0  }
 0x155   :  { %v443_v56 = vor.u32 1.1754944e-38, %v442_v47  ;;  %vm441_vm13 = vcmp.eq.f32.partialorder %v440_v50, 8.507059e+37 }
 0x157   :  { %v3023_v35 = vpop.eup %3022 }
 0x158   :  { %v3025_v36 = vpop.eup %3024  ;;  %v410_v37 = vmul.f32 %v3023_v35, %v408_v29  ;;  %vm415_vm6 = vweird.f32 %v3023_v35 }
 0x159   :  { %v3027_v38 = vpop.eup %3026  ;;  %v453_v39 = vadd.f32 1.0, %v3025_v36  ;;  %vm416_vm9 = vmor %vm414_vm7, %vm415_vm6 }
 0x15a   :  { %v411_v40 = vsub.f32 1.0, %v410_v37  ;;  %v432_v41 = vmul.f32 %v3027_v38, %v430_v32  ;;  %vm437_vm8 = vweird.f32 %v3027_v38 }
 0x15b   :  { %3028 = vrcp.f32 %v453_v39  ;;  %vm438_vm12 = vmor %vm436_vm10, %vm437_vm8  ;;  %v465_v5 = vand.u32 2147483648, %v453_v39  ;;  %vm459_vm15 = vweird.f32 %v453_v39  ;;  %v463_v11 = vand.u32 2147483647, %v453_v39 }
 0x15c   :  { %v433_v43 = vsub.f32 1.0, %v432_v41  ;;  %v412_v45 = vmul.f32 %v3023_v35, %v411_v40  ;;  %3030 = vtanh.f32 %v404_v23 }
 0x15d   :  { %v466_v0 = vor.u32 1.1754944e-38, %v465_v5  ;;  %vm464_vm1 = vcmp.eq.f32.partialorder %v463_v11, 8.507059e+37 }
 0x15e   :  { %v434_v48 = vmul.f32 %v3027_v38, %v433_v43  ;;  %v413_v49 = vadd.f32 %v3023_v35, %v412_v45 }
 0x160   :  { %v417_v52 = vsel %vm416_vm9, %v3023_v35, %v413_v49  ;;  %v435_v53 = vadd.f32 %v3027_v38, %v434_v48 }
 0x161   :  { %v3029_v54 = vpop.eup %3028  ;;  %v422_v55 = vsel %vm419_vm11, %v421_v51, %v417_v52 }
 0x162   :  { %v439_v57 = vsel %vm438_vm12, %v3027_v38, %v435_v53  ;;  %v455_v58 = vmul.f32 %v3029_v54, %v453_v39  ;;  %v3031_v59 = vpop.eup %3030  ;;  %vm460_vm14 = vweird.f32 %v3029_v54 }
 0x163   :  { %v444_v60 = vsel %vm441_vm13, %v443_v56, %v439_v57  ;;  %v470_v3 = vmul.f32 %v3031_v59, %v422_v55  ;;  %vm461_vm0 = vmor %vm459_vm15, %vm460_vm14 }
 0x164   :  { %v456_v61 = vsub.f32 1.0, %v455_v58  ;;  %v469_v62 = vmul.f32 0.0, %v444_v60 }
 0x166   :  { %v3531_v4 = vadd.f32 %v470_v3, %v469_v62  ;;  %v457_v7 = vmul.f32 %v3029_v54, %v456_v61 }
 0x168   :  { %3032 = vtanh.f32 %v3531_v4  ;;  %v458_v10 = vadd.f32 %v3029_v54, %v457_v7 }
 0x16a   :  { %v462_v63 = vsel %vm461_vm0, %v3029_v54, %v458_v10 }
 0x16b   :  { %v467_v8 = vsel %vm464_vm1, %v466_v0, %v462_v63 }
 0x16e   :  { %v3033_v6 = vpop.eup %3032 }
 0x16f   :  { %v473_v1 = vmul.f32 %v3033_v6, %v467_v8 }
 0x171   :  { %505 = vmatmul.f32.vlgmr.msra.gmra.mxu0 %v473_v1  ;;  %525 = vmatmul.f32.vlgmr.msra.gmra.mxu1 %v473_v1  ;;  %v3552_v47 = vsel %vm287_vm5, %v473_v1, 0.0 }
 0x172   :  { %545 = vmatmul.f32.vlgmr.msra.gmra.mxu2 %v473_v1  ;;  %565 = vmatmul.f32.vlgmr.msra.gmra.mxu3 %v473_v1 }
 0x179   :  { %2937 = vmatmul.msk.f32.vlgmr.msrb.gmra.mxu0 %vm755_vm2, %v3522_v15 }
 0x181   :  { %2938 = vmatmul.msk.f32.gmra.mxu0 %vm755_vm2, %v3528_v31 }
 0x189   :  { %2939 = vmatmul.msk.f32.gmra.mxu0 %vm755_vm2, %v753_v9 }
 0x191   :  { %2940 = vmatmul.msk.f32.gmra.mxu0 %vm755_vm2, %v754_v12  ;;  %vm658_vm2 = vcmask 1040384  }
 0x1ee   :  { %v506_v13 = vpop.f32.mrf.mxu0  ;;  %v526_v14 = vpop.f32.mrf.mxu1 }
 0x1ef   :  { %v573_v17 = vrot.slane %v526_v14, 4 }
 0x1f1   :  { %v575_v18 = vsel %vm287_vm5, %v506_v13, %v573_v17 }
 0x1f2   :  { %v579_v19 = vadd.f32 %v575_v18, %v3507_v44 }
 0x1f4   :  { %v2933_v20 = vmul.f32 -1.442695, %v579_v19  ;;  %v601_v21 = vrot.slane %v579_v19, 4 }
 0x1f5   :  { %v566_v22 = vpop.f32.mrf.mxu3  ;;  %v546_v25 = vpop.f32.mrf.mxu2 }
 0x1f6   :  { %3034 = vpow2.f32 %v2933_v20  ;;  %v2934_v23 = vmul.f32 -1.442695, %v601_v21  ;;  %v574_v24 = vrot.slane %v566_v22, 4  ;;  %v784_v15 = vpop.f32.mrf.mxu0 }
 0x1f7   :  { %v3545_v40 = vadd.f32 %v3005_v34, %v784_v15 }
 0x1f8   :  { %3036 = vpow2.f32 %v2934_v23  ;;  %v576_v26 = vsel %vm287_vm5, %v546_v25, %v574_v24 }
 0x1f9   :  { %v580_v27 = vadd.f32 %v576_v26, %v3519_v2  ;;  %v816_v55 = vmul.f32 %v3545_v40, %v3545_v40 }
 0x1fb   :  { %v624_v28 = vrot.slane %v580_v27, 4 }
 0x1fc   :  { %v3035_v29 = vpop.eup %3034 }
 0x1fd   :  { %v584_v30 = vadd.f32 1.0, %v3035_v29  ;;  %v2935_v31 = vmul.f32 -1.442695, %v624_v28 }
 0x1fe   :  { %v3037_v16 = vpop.eup %3036  ;;  %v787_v32 = vpop.f32.mrf.mxu0 }
 0x1ff   :  { %3038 = vrcp.f32 %v584_v30  ;;  %v606_v44 = vadd.f32 1.0, %v3037_v16  ;;  %v3547_v41 = vadd.f32 %v3005_v34, %v787_v32  ;;  %v594_v49 = vand.u32 2147483647, %v584_v30 }
 0x200   :  { %3040 = vpow2.f32 %v2935_v31  ;;  %v596_v50 = vand.u32 2147483648, %v584_v30  ;;  %vm590_vm6 = vweird.f32 %v584_v30 }
 0x201   :  { %3042 = vrcp.f32 %v606_v44  ;;  %v618_v48 = vand.u32 2147483648, %v606_v44  ;;  %v616_v54 = vand.u32 2147483647, %v606_v44  ;;  %v817_v56 = vmul.f32 %v3547_v41, %v3547_v41 }
 0x202   :  { %3044 = vrcp.f32 %v3162_v33  ;;  %vm612_vm7 = vweird.f32 %v606_v44  ;;  %vm595_vm9 = vcmp.eq.f32.partialorder %v594_v49, 8.507059e+37  ;;  %v597_v61 = vor.u32 1.1754944e-38, %v596_v50 }
 0x203   :  { %3046 = vrcp.f32 %v3163_v42  ;;  %v798_v62 = vadd.f32 %v3547_v41, %v3545_v40  ;;  %v619_v7 = vor.u32 1.1754944e-38, %v618_v48  ;;  %vm617_vm11 = vcmp.eq.f32.partialorder %v616_v54, 8.507059e+37 }
 0x204   :  { %3048 = vtanh.f32 %v580_v27  ;;  %v820_v8 = vadd.f32 %v817_v56, %v816_v55 }
 0x205   :  { %v3039_v35 = vpop.eup %3038 }
 0x206   :  { %v3041_v36 = vpop.eup %3040  ;;  %v586_v37 = vmul.f32 %v3039_v35, %v584_v30  ;;  %v790_v2 = vpop.f32.mrf.mxu0  ;;  %vm591_vm3 = vweird.f32 %v3039_v35  ;;  %v475_v30 = vrot.slane %v3552_v47, 4 }
 0x207   :  { %v3043_v38 = vpop.eup %3042  ;;  %v3543_v39 = vadd.f32 1.0, %v3041_v36  ;;  %v3555_v53 = vadd.f32 %v3005_v34, %v790_v2  ;;  %vm592_vm8 = vmor %vm590_vm6, %vm591_vm3 }
 0x208   :  { %v3549_v43 = vpop.eup %3044  ;;  %v587_v45 = vsub.f32 1.0, %v586_v37  ;;  %v608_v46 = vmul.f32 %v3043_v38, %v606_v44  ;;  %vm613_vm4 = vweird.f32 %v3043_v38  ;;  %v476_v36 = vadd.f32 %v475_v30, %v3552_v47 }
 0x209   :  { %3050 = vrcp.f32 %v3543_v39  ;;  %v809_v57 = vmul.f32 28.0, %v3549_v43  ;;  %v3562_v60 = vpop.eup %3046  ;;  %v818_v11 = vmul.f32 %v3555_v53, %v3555_v53  ;;  %vm614_vm10 = vmor %vm612_vm7, %vm613_vm4  ;;  %v799_v14 = vadd.f32 %v798_v62, %v3555_v53 }
 0x20a   :  { %v609_v51 = vsub.f32 1.0, %v608_v46  ;;  %v588_v52 = vmul.f32 %v3039_v35, %v587_v45  ;;  %v3049_v3 = vpop.eup %3048  ;;  %v641_v31 = vand.u32 2147483648, %v3543_v39  ;;  %vm635_vm13 = vweird.f32 %v3543_v39 }
 0x20b   :  { %v810_v19 = vsub.f32 1.0, %v809_v57  ;;  %v821_v23 = vadd.f32 %v820_v8, %v818_v11  ;;  %vm813_vm15 = vweird.f32 %v3549_v43  ;;  %v482_v45 = vmul.f32 4.0, %v3562_v60 }
 0x20c   :  { %v610_v58 = vmul.f32 %v3043_v38, %v609_v51  ;;  %v589_v59 = vadd.f32 %v3039_v35, %v588_v52  ;;  %v642_v42 = vor.u32 1.1754944e-38, %v641_v31  ;;  %v477_v55 = vrot.slane %v476_v36, 2 }
 0x20d   :  { %v811_v29 = vmul.f32 %v3549_v43, %v810_v19  ;;  %v483_v47 = vsub.f32 1.0, %v482_v45  ;;  %vm486_vm1 = vweird.f32 %v3562_v60  ;;  %vm938_vm7 = vcmask 1042434  }
 0x20e   :  { %v593_v10 = vsel %vm592_vm8, %v3039_v35, %v589_v59  ;;  %v611_v5 = vadd.f32 %v3043_v38, %v610_v58  ;;  %v793_v63 = vpop.f32.mrf.mxu0  ;;  %v929_v59 = vld [vmem:[#allocation5 + $0x88] sm:$0xff]  ;;  %vm939_vm8 = vmor %vm658_vm2, %vm938_vm7 }
 0x20f   :  { %v3051_v0 = vpop.eup %3050  ;;  %v598_v6 = vsel %vm595_vm9, %v597_v61, %v593_v10  ;;  %v3569_v1 = vadd.f32 %v3005_v34, %v793_v63  ;;  %v812_v35 = vadd.f32 %v3549_v43, %v811_v29  ;;  %v928_v61 = vld [vmem:[#allocation5 + $0x80] sm:$0xff]  ;;  %1078 = vmatpush.msrb.mxu1 %v929_v59  ;;  %2981 = vmatpush.msrb.mxu2 %v929_v59  ;;  %v922_v29 = vld [vmem:[#allocation5 + $0x50] sm:$0xff]  ;;  %vm940_vm9 = vcmask 1044484  }
 0x210   :  { %v615_v9 = vsel %vm614_vm10, %v3043_v38, %v611_v5  ;;  %v631_v12 = vmul.f32 %v3051_v0, %v3543_v39  ;;  %v646_v13 = vmul.f32 %v3049_v3, %v598_v6  ;;  %vm636_vm12 = vweird.f32 %v3051_v0 }
 0x211   :  { %v620_v17 = vsel %vm617_vm11, %v619_v7, %v615_v9  ;;  %v800_v18 = vsel %vm287_vm5, %v3569_v1, 0.0  ;;  %v819_v20 = vmul.f32 %v3569_v1, %v3569_v1  ;;  %vm637_vm14 = vmor %vm635_vm13, %vm636_vm12  ;;  %v814_v50 = vsel %vm813_vm15, %v3549_v43, %v812_v35  ;;  %1079 = vmatpush.msrb.mxu1 %v928_v61  ;;  %2982 = vmatpush.msrb.mxu2 %v928_v61  ;;  %v927_v9 = vld [vmem:[#allocation5 + $0x78] sm:$0xff] }
 0x212   :  { %v632_v21 = vsub.f32 1.0, %v631_v12  ;;  %v645_v22 = vmul.f32 %v620_v17, %v3531_v4  ;;  %v801_v24 = vadd.f32 %v800_v18, %v799_v14  ;;  %v639_v4 = vand.u32 2147483647, %v3543_v39  ;;  %v925_v18 = vld [vmem:[#allocation5 + $0x68] sm:$0xff]  ;;  %vm941_vm12 = vmor %vm939_vm8, %vm940_vm9 }
 0x213   :  { %v822_v15 = vsel %vm287_vm5, %v819_v20, 0.0  ;;  %v478_v43 = vadd.f32 %v477_v55, %v476_v36  ;;  %v484_v10 = vmul.f32 %v3562_v60, %v483_v47  ;;  %1080 = vmatpush.msrb.mxu1 %v927_v9  ;;  %2983 = vmatpush.msrb.mxu2 %v927_v9  ;;  %v924_v20 = vld [vmem:[#allocation5 + $0x60] sm:$0xff]  ;;  %v3613_v36 = vld [vmem:[%s4872_s3 + $0x2] ss:$0 sm:$0xff]  ;;  %vm942_vm13 = vcmask 1046534  }
 0x214   :  { %v633_v25 = vmul.f32 %v3051_v0, %v632_v21  ;;  %v647_v26 = vadd.f32 %v646_v13, %v645_v22  ;;  %v802_v27 = vrot.slane %v801_v24, 4  ;;  %v823_v28 = vadd.f32 %v822_v15, %v821_v23  ;;  %v926_v13 = vld [vmem:[#allocation5 + $0x70] sm:$0xff]  ;;  %vm3635_vm15 = vmor %vm941_vm12, %vm942_vm13 }
 0x215   :  { %vm640_vm0 = vcmp.eq.f32.partialorder %v639_v4, 8.507059e+37  ;;  %v485_v8 = vadd.f32 %v3562_v60, %v484_v10  ;;  %1081 = vmatpush.msrb.mxu1 %v926_v13  ;;  %2984 = vmatpush.msrb.mxu2 %v926_v13 }
 0x216   :  { %3052 = vtanh.f32 %v647_v26  ;;  %v803_v16 = vadd.f32 %v802_v27, %v801_v24  ;;  %v824_v32 = vrot.slane %v823_v28, 4  ;;  %v634_v44 = vadd.f32 %v3051_v0, %v633_v25 }
 0x217   :  { %v487_v19 = vsel %vm486_vm1, %v3562_v60, %v485_v8  ;;  %1082 = vmatpush.msrb.mxu1 %v925_v18  ;;  %2985 = vmatpush.msrb.mxu2 %v925_v18 }
 0x218   :  { %v804_v33 = vrot.slane %v803_v16, 2  ;;  %v825_v34 = vadd.f32 %v824_v32, %v823_v28  ;;  %v638_v37 = vsel %vm637_vm14, %v3051_v0, %v634_v44  ;;  %v479_v0 = vrot.slane %v478_v43, 1  ;;  %v923_v28 = vld [vmem:[#allocation5 + $0x58] sm:$0xff] }
 0x219   :  { %v643_v39 = vsel %vm640_vm0, %v642_v42, %v638_v37  ;;  %1083 = vmatpush.msrb.mxu1 %v924_v20  ;;  %2986 = vmatpush.msrb.mxu2 %v924_v20  ;;  %v3006_v44 = vld [vmem:[%s4872_s3 + $0x1] ss:$0 sm:$0xff]  ;;  %vm1057_vm0 = vcmask 523264  }
 0x21a   :  { %v805_v2 = vadd.f32 %v804_v33, %v803_v16  ;;  %v826_v38 = vrot.slane %v825_v34, 2  ;;  %v480_v14 = vadd.f32 %v479_v0, %v478_v43 }
 0x21b   :  { %1084 = vmatpush.msrb.mxu1 %v923_v28  ;;  %2987 = vmatpush.msrb.mxu2 %v923_v28 }
 0x21c   :  { %v3053_v46 = vpop.eup %3052  ;;  %v806_v48 = vrot.slane %v805_v2, 1  ;;  %v827_v49 = vadd.f32 %v826_v38, %v825_v34  ;;  %v488_v23 = vmul.f32 %v487_v19, %v480_v14 }
 0x21d   :  { %v649_v51 = vmul.f32 %v3053_v46, %v643_v39  ;;  %1085 = vmatpush.msrb.mxu1 %v922_v29  ;;  %2988 = vmatpush.msrb.mxu2 %v922_v29 }
 0x21e   :  { %v807_v52 = vadd.f32 %v806_v48, %v805_v2  ;;  %v828_v54 = vrot.slane %v827_v49, 1 }
 0x21f   :  { %v650_v56 = vsel %vm287_vm5, %v649_v51, 0.0 }
 0x220   :  { %v3590_v57 = vmul.f32 %v814_v50, %v807_v52  ;;  %v829_v58 = vadd.f32 %v828_v54, %v827_v49  ;;  %v651_v62 = vrot.slane %v650_v56, 4 }
 0x222   :  { %v830_v3 = vmul.f32 %v829_v58, %v814_v50  ;;  %v831_v7 = vmul.f32 %v3590_v57, %v3590_v57  ;;  %v652_v11 = vadd.f32 %v651_v62, %v650_v56  ;;  %v833_v31 = vsub.f32 %v3545_v40, %v3590_v57 }
 0x223   :  { %v834_v16 = vsub.f32 %v3547_v41, %v3590_v57  ;;  %v835_v32 = vsub.f32 %v3555_v53, %v3590_v57  ;;  %v836_v53 = vsub.f32 %v3569_v1, %v3590_v57 }
 0x224   :  { %v832_v5 = vsub.f32 %v830_v3, %v831_v7  ;;  %v653_v6 = vrot.slane %v652_v11, 2 }
 0x226   :  { %v837_v63 = vadd.f32 1e-05, %v832_v5  ;;  %v654_v12 = vadd.f32 %v653_v6, %v652_v11 }
 0x228   :  { %3054 = vrsqrt.f32 %v837_v63  ;;  %v655_v17 = vrot.slane %v654_v12, 1  ;;  %vm844_vm4 = vweird.f32 %v837_v63 }
 0x22a   :  { %v656_v21 = vadd.f32 %v655_v17, %v654_v12 }
 0x22c   :  { %v657_v24 = vmul.f32 %v656_v21, %v487_v19 }
 0x22e   :  { %v3055_v22 = vpop.eup %3054  ;;  %v3599_v25 = vsel %vm658_vm2, %v488_v23, %v657_v24 }
 0x22f   :  { %v839_v15 = vmul.f32 %v3055_v22, %v837_v63  ;;  %vm845_vm3 = vweird.f32 %v3055_v22 }
 0x230   :  { %vm846_vm6 = vmor %vm844_vm4, %vm845_vm3 }
 0x231   :  { %v840_v26 = vmul.f32 %v3055_v22, %v839_v15 }
 0x233   :  { %v841_v27 = vmul.f32 0.5, %v840_v26 }
 0x235   :  { %v842_v60 = vsub.f32 1.5, %v841_v27 }
 0x237   :  { %v843_v30 = vmul.f32 %v3055_v22, %v842_v60 }
 0x239   :  { %v847_v4 = vsel %vm846_vm6, %v3055_v22, %v843_v30 }
 0x23a   :  { %v848_v33 = vmul.f32 %v847_v4, %v833_v31  ;;  %v849_v34 = vmul.f32 %v847_v4, %v834_v16  ;;  %v850_v35 = vmul.f32 %v847_v4, %v835_v32  ;;  %v851_v45 = vmul.f32 %v847_v4, %v836_v53 }
 0x23c   :  { %v853_v40 = vmul.f32 %v3006_v44, %v848_v33  ;;  %v854_v41 = vmul.f32 %v3006_v44, %v849_v34  ;;  %v855_v37 = vmul.f32 %v3006_v44, %v850_v35  ;;  %v856_v54 = vmul.f32 %v3006_v44, %v851_v45 }
 0x23e   :  { %v858_v2 = vadd.f32 %v3613_v36, %v853_v40  ;;  %v859_v38 = vadd.f32 %v3613_v36, %v854_v41  ;;  %v860_v42 = vadd.f32 %v3613_v36, %v855_v37  ;;  %v861_v27 = vadd.f32 %v3613_v36, %v856_v54 }
 0x240   :  { %vm864_vm10 = vcmp.ge.f32.partialorder %v860_v42, 0.0  ;;  %v868_v46 = vmul.f32 0.01, %v860_v42  ;;  %vm862_vm11 = vcmp.ge.f32.partialorder %v858_v2, 0.0  ;;  %v866_v48 = vmul.f32 0.01, %v858_v2 }
 0x241   :  { %vm863_vm14 = vcmp.ge.f32.partialorder %v859_v38, 0.0  ;;  %v867_v49 = vmul.f32 0.01, %v859_v38  ;;  %v869_v31 = vmul.f32 0.01, %v861_v27  ;;  %vm865_vm1 = vcmp.ge.f32.partialorder %v861_v27, 0.0 }
 0x242   :  { %v3622_v1 = vsel %vm862_vm11, %v858_v2, %v866_v48  ;;  %v3624_v39 = vsel %vm864_vm10, %v860_v42, %v868_v46 }
 0x243   :  { %v3627_v50 = vrot.slane %v3622_v1, 4  ;;  %v3630_v51 = vrot.slane %v3622_v1, 2  ;;  %v3633_v52 = vrot.slane %v3622_v1, 6  ;;  %v2941_v47 = vrot.slane %v3622_v1, 9 }
 0x244   :  { %v3640_v56 = vsel %vm863_vm14, %v859_v38, %v867_v49  ;;  %v965_v57 = vrot.slane %v3624_v39, 7  ;;  %v3649_v62 = vrot.slane %v3624_v39, 2  ;;  %v3663_v9 = vrot.slane %v3624_v39, 4 }
 0x245   :  { %v946_v58 = vrot.slane %v3630_v51, 7  ;;  %v952_v59 = vrot.slane %v3633_v52, 7  ;;  %885 = vrot.lane.b32.xlu2 %v3627_v50, %s3164_s15  ;;  %v949_v61 = vrot.slane %v3627_v50, 7  ;;  %v3652_v3 = vrot.slane %v3640_v56, 4 }
 0x246   :  { %v3655_v7 = vrot.slane %v3640_v56, 2  ;;  %v899_v43 = vrot.slane %v3640_v56, 6  ;;  %v955_v10 = vrot.slane %v3640_v56, 7  ;;  %v967_v12 = vrot.slane %v965_v57, 2 }
 0x247   :  { %v947_v5 = vsel %vm3635_vm15, %v2941_v47, %v946_v58  ;;  %v948_v11 = vrot.slane %v946_v58, 2  ;;  %v954_v63 = vrot.slane %v952_v59, 2  ;;  %v951_v0 = vrot.slane %v949_v61, 2 }
 0x248   :  { %1020 = vst [vmem:[#allocation1] ss:$4 sm:$0xff] %v947_v5  ;;  %v957_v6 = vrot.slane %v955_v10, 2  ;;  %v958_v8 = vrot.slane %v3655_v7, 7  ;;  %v2942_v18 = vrot.slane %v899_v43, 9  ;;  %v961_v21 = vrot.slane %v3652_v3, 7 }
 0x249   :  { %v950_v13 = vsel %vm3635_vm15, %v948_v11, %v949_v61  ;;  %v953_v14 = vsel %vm3635_vm15, %v951_v0, %v952_v59  ;;  %v956_v17 = vsel %vm3635_vm15, %v954_v63, %v955_v10  ;;  %v968_v22 = vrot.slane %v3649_v62, 7 }
 0x24a   :  { %1022 = vst [vmem:[#allocation1 + $0x1] ss:$4 sm:$0xff] %v950_v13  ;;  %v959_v19 = vsel %vm3635_vm15, %v957_v6, %v958_v8  ;;  %v960_v20 = vrot.slane %v958_v8, 2  ;;  %v880_v23 = vsel %vm287_vm5, %v3627_v50, %v3652_v3  ;;  %v966_v15 = vsel %vm3635_vm15, %v2942_v18, %v965_v57 }
 0x24b   :  { %1024 = vst [vmem:[#allocation1 + $0x2] ss:$4 sm:$0xff] %v953_v14  ;;  %v971_v26 = vrot.slane %v3663_v9, 7  ;;  %v969_v28 = vsel %vm3635_vm15, %v967_v12, %v968_v22  ;;  %v3690_v29 = vrot.slane %v3624_v39, 6  ;;  %v970_v60 = vrot.slane %v968_v22, 2 }
 0x24c   :  { %v962_v24 = vsel %vm3635_vm15, %v960_v20, %v961_v21  ;;  %1026 = vst [vmem:[#allocation1 + $0x3] ss:$4 sm:$0xff] %v956_v17  ;;  %v882_v4 = vsel %vm287_vm5, %v3652_v3, %v3663_v9  ;;  %v873_v34 = vsel %vm865_vm1, %v861_v27, %v869_v31  ;;  %v921_v31 = vld [vmem:[#allocation5 + $0x48] sm:$0xff] }
 0x24d   :  { %1028 = vst [vmem:[#allocation1 + $0x20] ss:$4 sm:$0xff] %v959_v19  ;;  %887 = vrot.lane.b32.xlu2 %v880_v23, %s3164_s15  ;;  %v973_v30 = vrot.slane %v971_v26, 2  ;;  %v974_v16 = vrot.slane %v3690_v29, 7  ;;  %v972_v44 = vsel %vm3635_vm15, %v970_v60, %v971_v26  ;;  %v883_v35 = vrot.slane %v873_v34, 4  ;;  %1162 = vmatpush.msra.mxu2 %v921_v31 }
 0x24e   :  { %1030 = vst [vmem:[#allocation1 + $0x21] ss:$4 sm:$0xff] %v962_v24 }
 0x24f   :  { %1032 = vst [vmem:[#allocation1 + $0x22] ss:$4 sm:$0xff] %v966_v15  ;;  %v975_v33 = vsel %vm3635_vm15, %v973_v30, %v974_v16  ;;  %v884_v40 = vsel %vm287_vm5, %v3663_v9, %v883_v35  ;;  %v976_v37 = vrot.slane %v974_v16, 2  ;;  %v919_v35 = vld [vmem:[#allocation5 + $0x38] sm:$0xff] }
 0x250   :  { %1034 = vst [vmem:[#allocation1 + $0x23] ss:$4 sm:$0xff] %v969_v28 }
 0x253   :  { %v1035_v32 = vld.sshfl [vmem:[#allocation1] sm:$0xff pattern:$0x73625140] }
 0x254   :  { %2945 = vmatmul.msk.f32.vlgmr.msrb.gmra.mxu1 %vm1057_vm0, %v1035_v32  ;;  %1037 = vst [vmem:[#allocation1] ss:$4 sm:$0xff] %v972_v44 }
 0x255   :  { %889 = vrot.lane.b32.xlu2 %v882_v4, %s3164_s15  ;;  %1038 = vst [vmem:[#allocation1 + $0x1] ss:$4 sm:$0xff] %v975_v33  ;;  %v920_v4 = vld [vmem:[#allocation5 + $0x40] sm:$0xff] }
 0x256   :  { %1163 = vmatpush.msra.mxu2 %v920_v4  ;;  %v2640_v4 = vld [vmem:[#allocation5 + $0x1d8] sm:$0xff] }
 0x257   :  { %v1036_v36 = vld.sshfl [vmem:[#allocation1 + $0x20] sm:$0xff pattern:$0x73625140] }
 0x258   :  { %1164 = vmatpush.msra.mxu2 %v919_v35 }
 0x25c   :  { %2946 = vmatmul.msk.f32.gmra.mxu1 %vm1057_vm0, %v1036_v36 }
 0x25d   :  { %891 = vrot.lane.b32.xlu2 %v884_v40, %s3164_s15  ;;  %s2915_s15 = sshll.u32 %s4873_s4, 4  ;;  %s2916_s15 = int_to_ptr.hbm [resolvable:$true] %s2915_s15 }
 0x29f   :  { %v886_v41 = vpop.permute.xlu2 %885 }
 0x2a0   :  { %v3707_v53 = vsel %vm287_vm5, %v873_v34, %v886_v41 }
 0x2a1   :  { %v902_v2 = vrot.slane %v3707_v53, 2  ;;  %v903_v38 = vrot.slane %v3707_v53, 4  ;;  %v3712_v42 = vrot.slane %v3707_v53, 6  ;;  %v977_v45 = vrot.slane %v3707_v53, 7 }
 0x2a3   :  { %v978_v46 = vsel %vm3635_vm15, %v976_v37, %v977_v45  ;;  %v979_v48 = vrot.slane %v977_v45, 2  ;;  %v980_v49 = vrot.slane %v902_v2, 7  ;;  %v2943_v54 = vrot.slane %v903_v38, 9 }
 0x2a4   :  { %v984_v47 = vrot.slane %v3712_v42, 7  ;;  %1039 = vst [vmem:[#allocation1 + $0x2] ss:$4 sm:$0xff] %v978_v46  ;;  %v918_v46 = vld [vmem:[#allocation5 + $0x30] sm:$0xff] }
 0x2a5   :  { %v981_v57 = vsel %vm3635_vm15, %v979_v48, %v980_v49  ;;  %1165 = vmatpush.msra.mxu2 %v918_v46 }
 0x2a6   :  { %v985_v58 = vsel %vm3635_vm15, %v2943_v54, %v984_v47  ;;  %1040 = vst [vmem:[#allocation1 + $0x3] ss:$4 sm:$0xff] %v981_v57  ;;  %v986_v59 = vrot.slane %v984_v47, 2  ;;  %v917_v57 = vld [vmem:[#allocation5 + $0x28] sm:$0xff] }
 0x2a7   :  { %1041 = vst [vmem:[#allocation1 + $0x20] ss:$4 sm:$0xff] %v985_v58  ;;  %v3726_v61 = vpop.permute.xlu2 %887  ;;  %1166 = vmatpush.msra.mxu2 %v917_v57 }
 0x2a8   :  { %v3729_v10 = vrot.slane %v3726_v61, 2  ;;  %v3732_v5 = vrot.slane %v3726_v61, 4  ;;  %v3735_v11 = vrot.slane %v3726_v61, 6  ;;  %v987_v63 = vrot.slane %v3726_v61, 7 }
 0x2aa   :  { %v988_v0 = vsel %vm3635_vm15, %v986_v59, %v987_v63  ;;  %v989_v6 = vrot.slane %v987_v63, 2  ;;  %v990_v8 = vrot.slane %v3729_v10, 7  ;;  %v993_v12 = vrot.slane %v3732_v5, 7 }
 0x2ab   :  { %v996_v13 = vrot.slane %v3735_v11, 7  ;;  %1042 = vst [vmem:[#allocation1 + $0x21] ss:$4 sm:$0xff] %v988_v0  ;;  %v916_v0 = vld [vmem:[#allocation5 + $0x20] sm:$0xff] }
 0x2ac   :  { %v991_v14 = vsel %vm3635_vm15, %v989_v6, %v990_v8  ;;  %v992_v17 = vrot.slane %v990_v8, 2  ;;  %v995_v18 = vrot.slane %v993_v12, 2  ;;  %1167 = vmatpush.msra.mxu2 %v916_v0 }
 0x2ad   :  { %v1045_v19 = vld.sshfl [vmem:[#allocation1] sm:$0xff pattern:$0x73625140]  ;;  %1043 = vst [vmem:[#allocation1 + $0x22] ss:$4 sm:$0xff] %v991_v14  ;;  %v998_v22 = vrot.slane %v996_v13, 2 }
 0x2ae   :  { %v994_v20 = vsel %vm3635_vm15, %v992_v17, %v993_v12  ;;  %v997_v21 = vsel %vm3635_vm15, %v995_v18, %v996_v13  ;;  %2947 = vmatmul.msk.f32.gmra.mxu1 %vm1057_vm0, %v1045_v19  ;;  %v915_v12 = vld [vmem:[#allocation5 + $0x18] sm:$0xff]  ;;  %v914_v17 = vld [vmem:[#allocation5 + $0x10] sm:$0xff]  ;;  %v936_v19 = vld [vmem:[#allocation5 + $0xc0] sm:$0xff] }
 0x2af   :  { %1044 = vst [vmem:[#allocation1 + $0x23] ss:$4 sm:$0xff] %v994_v20  ;;  %v3750_v23 = vpop.permute.xlu2 %889  ;;  %1168 = vmatpush.msra.mxu2 %v915_v12  ;;  %v935_v20 = vld [vmem:[#allocation5 + $0xb8] sm:$0xff] }
 0x2b0   :  { %1047 = vst [vmem:[#allocation1] ss:$4 sm:$0xff] %v997_v21  ;;  %v908_v24 = vrot.slane %v3750_v23, 2  ;;  %v3754_v15 = vrot.slane %v3750_v23, 4  ;;  %v3757_v26 = vrot.slane %v3750_v23, 6  ;;  %v999_v27 = vrot.slane %v3750_v23, 7 }
 0x2b1   :  { %1169 = vmatpush.msra.mxu2 %v914_v17  ;;  %v934_v21 = vld [vmem:[#allocation5 + $0xb0] sm:$0xff] }
 0x2b2   :  { %v1000_v28 = vsel %vm3635_vm15, %v998_v22, %v999_v27  ;;  %v2944_v60 = vrot.slane %v908_v24, 9  ;;  %v1003_v30 = vrot.slane %v3754_v15, 7  ;;  %v1006_v44 = vrot.slane %v3757_v26, 7  ;;  %v933_v27 = vld [vmem:[#allocation5 + $0xa8] sm:$0xff] }
 0x2b3   :  { %1048 = vst [vmem:[#allocation1 + $0x1] ss:$4 sm:$0xff] %v1000_v28  ;;  %v932_v28 = vld [vmem:[#allocation5 + $0xa0] sm:$0xff] }
 0x2b4   :  { %v1004_v16 = vsel %vm3635_vm15, %v2944_v60, %v1003_v30  ;;  %v1005_v32 = vrot.slane %v1003_v30, 2  ;;  %v1008_v40 = vrot.slane %v1006_v44, 2  ;;  %v931_v60 = vld [vmem:[#allocation5 + $0x98] sm:$0xff]  ;;  %v930_v30 = vld [vmem:[#allocation5 + $0x90] sm:$0xff] }
 0x2b5   :  { %1049 = vst [vmem:[#allocation1 + $0x2] ss:$4 sm:$0xff] %v1004_v16 }
 0x2b6   :  { %v1046_v33 = vld.sshfl [vmem:[#allocation1 + $0x20] sm:$0xff pattern:$0x73625140]  ;;  %v1007_v34 = vsel %vm3635_vm15, %v1005_v32, %v1006_v44  ;;  %v2645_v32 = vld [vmem:[#allocation5 + $0x200] sm:$0xff] }
 0x2b7   :  { %1050 = vst [vmem:[#allocation1 + $0x3] ss:$4 sm:$0xff] %v1007_v34  ;;  %2948 = vmatmul.msk.f32.gmra.mxu1 %vm1057_vm0, %v1046_v33  ;;  %v3771_v36 = vpop.permute.xlu2 %891  ;;  %v2639_v34 = vld [vmem:[#allocation5 + $0x1d0] sm:$0xff] }
 0x2b8   :  { %v3774_v41 = vrot.slane %v3771_v36, 2  ;;  %v3777_v37 = vrot.slane %v3771_v36, 4  ;;  %v1009_v45 = vrot.slane %v3771_v36, 7  ;;  %v913_v58 = vrot.slane %v3771_v36, 6 }
 0x2ba   :  { %v1010_v48 = vsel %vm3635_vm15, %v1008_v40, %v1009_v45  ;;  %v1011_v49 = vrot.slane %v1009_v45, 2  ;;  %v1012_v54 = vrot.slane %v3774_v41, 7  ;;  %v1015_v47 = vrot.slane %v3777_v37, 7 }
 0x2bb   :  { %1051 = vst [vmem:[#allocation1 + $0x20] ss:$4 sm:$0xff] %v1010_v48  ;;  %v1018_v13 = vrot.slane %v913_v58, 7 }
 0x2bc   :  { %v1013_v59 = vsel %vm3635_vm15, %v1011_v49, %v1012_v54  ;;  %v1014_v63 = vrot.slane %v1012_v54, 2  ;;  %v1017_v6 = vrot.slane %v1015_v47, 2  ;;  %v3165_v49 = vmov 24.0  }
 0x2bd   :  { %1052 = vst [vmem:[#allocation1 + $0x21] ss:$4 sm:$0xff] %v1013_v59  ;;  %3056 = vrcp.f32 %v3165_v49 }
 0x2be   :  { %v1055_v8 = vld.sshfl [vmem:[#allocation1] sm:$0xff pattern:$0x73625140]  ;;  %v1016_v14 = vsel %vm3635_vm15, %v1014_v63, %v1015_v47  ;;  %v1019_v18 = vsel %vm3635_vm15, %v1017_v6, %v1018_v13 }
 0x2bf   :  { %1105 = vst [vmem:[#allocation1] ss:$4 sm:$0xff] %v3622_v1  ;;  %2949 = vmatmul.msk.f32.vlgmr.msrb.gmra.mxu2 %vm1057_vm0, %v1055_v8  ;;  %v937_v1 = vld [vmem:[#allocation5 + $0xc8] sm:$0xff]  ;;  %v3866_v47 = vld [vmem:[%s4872_s3 + $0x3] ss:$0 sm:$0xff] }
 0x2c0   :  { %1107 = vst [vmem:[#allocation1 + $0x1] ss:$4 sm:$0xff] %v3630_v51  ;;  %1246 = vmatpush.msrb.mxu3 %v937_v1 }
 0x2c1   :  { %1109 = vst [vmem:[#allocation1 + $0x2] ss:$4 sm:$0xff] %v3627_v50 }
 0x2c2   :  { %1111 = vst [vmem:[#allocation1 + $0x3] ss:$4 sm:$0xff] %v3633_v52  ;;  %1247 = vmatpush.msrb.mxu3 %v936_v19 }
 0x2c3   :  { %1053 = vst [vmem:[#allocation1 + $0x22] ss:$4 sm:$0xff] %v1016_v14  ;;  %v3057_v59 = vpop.eup %3056 }
 0x2c4   :  { %1054 = vst [vmem:[#allocation1 + $0x23] ss:$4 sm:$0xff] %v1019_v18  ;;  %1248 = vmatpush.msrb.mxu3 %v935_v20  ;;  %v1312_v18 = vmul.f32 24.0, %v3057_v59  ;;  %vm1316_vm5 = vweird.f32 %v3057_v59 }
 0x2c6   :  { %1249 = vmatpush.msrb.mxu3 %v934_v21 }
 0x2c8   :  { %1250 = vmatpush.msrb.mxu3 %v933_v27 }
 0x2c9   :  { %v1120_v22 = vld.sshfl [vmem:[#allocation1] sm:$0xff pattern:$0x73625140] }
 0x2ca   :  { %1122 = vst [vmem:[#allocation1] ss:$4 sm:$0xff] %v3649_v62  ;;  %1251 = vmatpush.msrb.mxu3 %v932_v28 }
 0x2cb   :  { %1123 = vst [vmem:[#allocation1 + $0x1] ss:$4 sm:$0xff] %v3663_v9  ;;  %v1056_v55 = vld.sshfl [vmem:[#allocation1 + $0x20] sm:$0xff pattern:$0x73625140] }
 0x2cc   :  { %1124 = vst [vmem:[#allocation1 + $0x2] ss:$4 sm:$0xff] %v3690_v29  ;;  %2950 = vmatmul.msk.f32.gmra.mxu2 %vm1057_vm0, %v1056_v55  ;;  %1252 = vmatpush.msrb.mxu3 %v931_v60  ;;  %v1313_v55 = vsub.f32 1.0, %v1312_v18 }
 0x2cd   :  { %1125 = vst [vmem:[#allocation1 + $0x3] ss:$4 sm:$0xff] %v3707_v53 }
 0x2ce   :  { %1113 = vst [vmem:[#allocation1 + $0x20] ss:$4 sm:$0xff] %v3640_v56  ;;  %1253 = vmatpush.msrb.mxu3 %v930_v30 }
 0x2cf   :  { %1115 = vst [vmem:[#allocation1 + $0x21] ss:$4 sm:$0xff] %v3655_v7 }
 0x2d0   :  { %1117 = vst [vmem:[#allocation1 + $0x22] ss:$4 sm:$0xff] %v899_v43 }
 0x2d1   :  { %1119 = vst [vmem:[#allocation1 + $0x23] ss:$4 sm:$0xff] %v3624_v39 }
 0x2d4   :  { %v1130_v31 = vld.sshfl [vmem:[#allocation1] sm:$0xff pattern:$0x73625140]  ;;  %2951 = vmatmul.msk.f32.vlgmr.msra.gmra.mxu2 %vm1057_vm0, %v1120_v22 }
 0x2d5   :  { %1134 = vst [vmem:[#allocation1 + $0x2] ss:$4 sm:$0xff] %v908_v24  ;;  %v2646_v24 = vld [vmem:[#allocation5 + $0x208] sm:$0xff] }
 0x2d6   :  { %1135 = vst [vmem:[#allocation1 + $0x3] ss:$4 sm:$0xff] %v3754_v15  ;;  %2648 = vmatpush.msra.mxu3 %v2646_v24 }
 0x2d7   :  { %1132 = vst [vmem:[#allocation1] ss:$4 sm:$0xff] %v3732_v5 }
 0x2d8   :  { %1133 = vst [vmem:[#allocation1 + $0x1] ss:$4 sm:$0xff] %v3735_v11  ;;  %v1121_v16 = vld.sshfl [vmem:[#allocation1 + $0x20] sm:$0xff pattern:$0x73625140]  ;;  %2649 = vmatpush.msra.mxu3 %v2645_v32  ;;  %v1314_v32 = vmul.f32 %v3057_v59, %v1313_v55 }
 0x2d9   :  { %1126 = vst [vmem:[#allocation1 + $0x20] ss:$4 sm:$0xff] %v903_v38  ;;  %v2644_v38 = vld [vmem:[#allocation5 + $0x1f8] sm:$0xff] }
 0x2da   :  { %1127 = vst [vmem:[#allocation1 + $0x21] ss:$4 sm:$0xff] %v3712_v42  ;;  %2650 = vmatpush.msra.mxu3 %v2644_v38 }
 0x2db   :  { %1128 = vst [vmem:[#allocation1 + $0x22] ss:$4 sm:$0xff] %v3726_v61 }
 0x2dc   :  { %1129 = vst [vmem:[#allocation1 + $0x23] ss:$4 sm:$0xff] %v3729_v10  ;;  %2952 = vmatmul.msk.f32.gmra.mxu2 %vm1057_vm0, %v1121_v16 }
 0x2df   :  { %v1140_v43 = vld.sshfl [vmem:[#allocation1] sm:$0xff pattern:$0x73625140] }
 0x2e0   :  { %1189 = vst [vmem:[#allocation1] ss:$4 sm:$0xff] %v3630_v51  ;;  %v2643_v51 = vld [vmem:[#allocation5 + $0x1f0] sm:$0xff] }
 0x2e1   :  { %1191 = vst [vmem:[#allocation1 + $0x1] ss:$4 sm:$0xff] %v3627_v50  ;;  %2651 = vmatpush.msra.mxu3 %v2643_v51 }
 0x2e2   :  { %1193 = vst [vmem:[#allocation1 + $0x2] ss:$4 sm:$0xff] %v3633_v52  ;;  %v2642_v52 = vld [vmem:[#allocation5 + $0x1e8] sm:$0xff] }
 0x2e3   :  { %v1131_v44 = vld.sshfl [vmem:[#allocation1 + $0x20] sm:$0xff pattern:$0x73625140]  ;;  %1195 = vst [vmem:[#allocation1 + $0x3] ss:$4 sm:$0xff] %v3640_v56  ;;  %v2641_v56 = vld [vmem:[#allocation5 + $0x1e0] sm:$0xff]  ;;  %2652 = vmatpush.msra.mxu3 %v2642_v52 }
 0x2e4   :  { %1136 = vst [vmem:[#allocation1 + $0x20] ss:$4 sm:$0xff] %v3757_v26  ;;  %2953 = vmatmul.msk.f32.gmra.mxu2 %vm1057_vm0, %v1130_v31 }
 0x2e5   :  { %1137 = vst [vmem:[#allocation1 + $0x21] ss:$4 sm:$0xff] %v3771_v36  ;;  %2653 = vmatpush.msra.mxu3 %v2641_v56  ;;  %v1315_v56 = vadd.f32 %v3057_v59, %v1314_v32 }
 0x2e6   :  { %1138 = vst [vmem:[#allocation1 + $0x22] ss:$4 sm:$0xff] %v3774_v41 }
 0x2e7   :  { %1139 = vst [vmem:[#allocation1 + $0x23] ss:$4 sm:$0xff] %v3777_v37  ;;  %2654 = vmatpush.msra.mxu3 %v2640_v4 }
 0x2e9   :  { %2655 = vmatpush.msra.mxu3 %v2639_v34 }
 0x2ea   :  { %v1204_v50 = vld.sshfl [vmem:[#allocation1] sm:$0xff pattern:$0x73625140] }
 0x2eb   :  { %2957 = vmatmul.msk.f32.vlgmr.msrb.gmra.mxu3 %vm1057_vm0, %v1204_v50  ;;  %1206 = vst [vmem:[#allocation1] ss:$4 sm:$0xff] %v3663_v9  ;;  %v2638_v9 = vld [vmem:[#allocation5 + $0x1c8] sm:$0xff] }
 0x2ec   :  { %1207 = vst [vmem:[#allocation1 + $0x1] ss:$4 sm:$0xff] %v3690_v29  ;;  %2954 = vmatmul.msk.f32.gmra.mxu2 %vm1057_vm0, %v1131_v44  ;;  %v2637_v29 = vld [vmem:[#allocation5 + $0x1c0] sm:$0xff]  ;;  %2656 = vmatpush.msra.mxu3 %v2638_v9 }
 0x2ed   :  { %1208 = vst [vmem:[#allocation1 + $0x2] ss:$4 sm:$0xff] %v3707_v53  ;;  %v2636_v53 = vld [vmem:[#allocation5 + $0x1b8] sm:$0xff] }
 0x2ee   :  { %v1141_v33 = vld.sshfl [vmem:[#allocation1 + $0x20] sm:$0xff pattern:$0x73625140]  ;;  %1209 = vst [vmem:[#allocation1 + $0x3] ss:$4 sm:$0xff] %v902_v2  ;;  %2657 = vmatpush.msra.mxu3 %v2637_v29 }
 0x2ef   :  { %1199 = vst [vmem:[#allocation1 + $0x21] ss:$4 sm:$0xff] %v3652_v3  ;;  %v2635_v3 = vld [vmem:[#allocation5 + $0x1b0] sm:$0xff]  ;;  %v2632_v2 = vld [vmem:[#allocation5 + $0x198] sm:$0xff] }
 0x2f0   :  { %1197 = vst [vmem:[#allocation1 + $0x20] ss:$4 sm:$0xff] %v3655_v7  ;;  %2658 = vmatpush.msra.mxu3 %v2636_v53  ;;  %v2633_v7 = vld [vmem:[#allocation5 + $0x1a0] sm:$0xff] }
 0x2f1   :  { %1201 = vst [vmem:[#allocation1 + $0x22] ss:$4 sm:$0xff] %v3624_v39 }
 0x2f2   :  { %1203 = vst [vmem:[#allocation1 + $0x23] ss:$4 sm:$0xff] %v3649_v62  ;;  %v2634_v62 = vld [vmem:[#allocation5 + $0x1a8] sm:$0xff]  ;;  %2659 = vmatpush.msra.mxu3 %v2635_v3 }
 0x2f4   :  { %2955 = vmatmul.msk.f32.gmra.mxu2 %vm1057_vm0, %v1140_v43  ;;  %2660 = vmatpush.msra.mxu3 %v2634_v62 }
 0x2f5   :  { %v1214_v35 = vld.sshfl [vmem:[#allocation1] sm:$0xff pattern:$0x73625140] }
 0x2f6   :  { %1216 = vst [vmem:[#allocation1] ss:$4 sm:$0xff] %v3735_v11  ;;  %2661 = vmatpush.msra.mxu3 %v2633_v7  ;;  %v2631_v11 = vld [vmem:[#allocation5 + $0x190] sm:$0xff] }
 0x2f7   :  { %1217 = vst [vmem:[#allocation1 + $0x1] ss:$4 sm:$0xff] %v3750_v23 }
 0x2f8   :  { %1218 = vst [vmem:[#allocation1 + $0x2] ss:$4 sm:$0xff] %v3754_v15  ;;  %2662 = vmatpush.msra.mxu3 %v2632_v2 }
 0x2f9   :  { %v1205_v39 = vld.sshfl [vmem:[#allocation1 + $0x20] sm:$0xff pattern:$0x73625140]  ;;  %1219 = vst [vmem:[#allocation1 + $0x3] ss:$4 sm:$0xff] %v3757_v26  ;;  %v1087_v26 = vpop.f32.mrf.mxu1 }
 0x2fa   :  { %2958 = vmatmul.msk.f32.gmra.mxu3 %vm1057_vm0, %v1205_v39  ;;  %1210 = vst [vmem:[#allocation1 + $0x20] ss:$4 sm:$0xff] %v3712_v42  ;;  %v1317_v39 = vsel %vm1316_vm5, %v3057_v59, %v1315_v56  ;;  %vm1461_vm5 = vcmask 1041409  }
 0x2fb   :  { %1211 = vst [vmem:[#allocation1 + $0x21] ss:$4 sm:$0xff] %v3726_v61  ;;  %2663 = vmatpush.msra.mxu3 %v2631_v11 }
 0x2fc   :  { %1212 = vst [vmem:[#allocation1 + $0x22] ss:$4 sm:$0xff] %v3729_v10  ;;  %2956 = vmatmul.msk.f32.gmra.mxu2 %vm1057_vm0, %v1141_v33 }
 0x2fd   :  { %1213 = vst [vmem:[#allocation1 + $0x23] ss:$4 sm:$0xff] %v3732_v5 }
 0x300   :  { %v1224_v61 = vld.sshfl [vmem:[#allocation1] sm:$0xff pattern:$0x73625140] }
 0x302   :  { %2959 = vmatmul.msk.f32.gmra.mxu3 %vm1057_vm0, %v1214_v35 }
 0x304   :  { %v1215_v42 = vld.sshfl [vmem:[#allocation1 + $0x20] sm:$0xff pattern:$0x73625140] }
 0x305   :  { %1220 = vst [vmem:[#allocation1 + $0x20] ss:$4 sm:$0xff] %v3771_v36 }
 0x306   :  { %1221 = vst [vmem:[#allocation1 + $0x21] ss:$4 sm:$0xff] %v3774_v41 }
 0x307   :  { %1222 = vst [vmem:[#allocation1 + $0x22] ss:$4 sm:$0xff] %v3777_v37  ;;  %v1090_v37 = vpop.f32.mrf.mxu1 }
 0x308   :  { %1223 = vst [vmem:[#allocation1 + $0x23] ss:$4 sm:$0xff] %v913_v58 }
 0x30a   :  { %2960 = vmatmul.msk.f32.gmra.mxu3 %vm1057_vm0, %v1215_v42 }
 0x30f   :  { %v1225_v10 = vld.sshfl [vmem:[#allocation1 + $0x20] sm:$0xff pattern:$0x73625140] }
 0x312   :  { %2961 = vmatmul.msk.f32.gmra.mxu3 %vm1057_vm0, %v1224_v61 }
 0x31a   :  { %2962 = vmatmul.msk.f32.gmra.mxu3 %vm1057_vm0, %v1225_v10 }
 0x322   :  { %2664 = vmatmul.f32.vlgmr.msra.gmra.mxu3 %v3599_v25 }
 0x32b   :  { %v1093_v63 = vpop.f32.mrf.mxu1 }
 0x334   :  { %v1096_v4 = vpop.f32.mrf.mxu1 }
 0x342   :  { %v1099_v5 = vpop.f32.mrf.mxu2 }
 0x34f   :  { %v3861_v23 = vpop.f32.mrf.mxu2 }
 0x357   :  { %v1171_v15 = vpop.f32.mrf.mxu2 }
 0x358   :  { %v1172_v45 = vadd.f32 %v1171_v15, %v1087_v26 }
 0x35f   :  { %v1174_v40 = vpop.f32.mrf.mxu2 }
 0x360   :  { %v1175_v46 = vadd.f32 %v1174_v40, %v1090_v37 }
 0x367   :  { %v1177_v36 = vpop.f32.mrf.mxu2 }
 0x368   :  { %v1178_v0 = vadd.f32 %v1177_v36, %v1093_v63 }
 0x36e   :  { %v1255_v41 = vpop.f32.mrf.mxu3 }
 0x36f   :  { %v1273_v54 = vadd.f32 %v1255_v41, %v1172_v45  ;;  %v1180_v8 = vpop.f32.mrf.mxu2 }
 0x370   :  { %v1181_v9 = vadd.f32 %v1180_v8, %v1096_v4 }
 0x371   :  { %v3872_v58 = vadd.f32 %v3866_v47, %v1273_v54 }
 0x373   :  { %v1320_v13 = vmul.f32 %v3872_v58, %v3872_v58  ;;  %v1289_v1 = vsel %vm1057_vm0, %v3872_v58, 0.0 }
 0x375   :  { %v1326_v22 = vsel %vm1057_vm0, %v1320_v13, 0.0 }
 0x377   :  { %v1183_v44 = vpop.f32.mrf.mxu2 }
 0x378   :  { %v1184_v29 = vadd.f32 %v1183_v44, %v1099_v5 }
 0x37d   :  { %v1258_v48 = vpop.f32.mrf.mxu3 }
 0x37e   :  { %v1274_v25 = vadd.f32 %v1258_v48, %v1175_v46 }
 0x37f   :  { %v1186_v15 = vpop.f32.mrf.mxu2 }
 0x380   :  { %v3869_v57 = vadd.f32 %v3866_v47, %v1274_v25  ;;  %v1187_v41 = vadd.f32 %v1186_v15, %v3861_v23 }
 0x382   :  { %v1321_v6 = vmul.f32 %v3869_v57, %v3869_v57  ;;  %v1290_v14 = vsel %vm1057_vm0, %v3869_v57, 0.0 }
 0x383   :  { %v1291_v21 = vadd.f32 %v1290_v14, %v1289_v1 }
 0x384   :  { %v1327_v19 = vsel %vm1057_vm0, %v1321_v6, 0.0 }
 0x385   :  { %v1261_v12 = vpop.f32.mrf.mxu3  ;;  %v1328_v60 = vadd.f32 %v1327_v19, %v1326_v22 }
 0x386   :  { %v1275_v17 = vadd.f32 %v1261_v12, %v1178_v0 }
 0x388   :  { %v3884_v20 = vadd.f32 %v3866_v47, %v1275_v17 }
 0x38a   :  { %v1292_v27 = vsel %vm1057_vm0, %v3884_v20, 0.0  ;;  %v1322_v28 = vmul.f32 %v3884_v20, %v3884_v20 }
 0x38b   :  { %v1293_v30 = vadd.f32 %v1292_v27, %v1291_v21 }
 0x38c   :  { %v1329_v31 = vsel %vm1057_vm0, %v1322_v28, 0.0 }
 0x38d   :  { %v1294_v16 = vrot.slane %v1293_v30, 4  ;;  %v1330_v43 = vadd.f32 %v1329_v31, %v1328_v60  ;;  %v1264_v24 = vpop.f32.mrf.mxu3 }
 0x38e   :  { %v1276_v62 = vadd.f32 %v1264_v24, %v1181_v9  ;;  %v3935_v9 = vld [vmem:[%s4872_s3 + $0x5] ss:$0 sm:$0xff] }
 0x38f   :  { %v1295_v38 = vadd.f32 %v1294_v16, %v1293_v30  ;;  %v1331_v51 = vrot.slane %v1330_v43, 4 }
 0x390   :  { %v3898_v26 = vadd.f32 %v3866_v47, %v1276_v62 }
 0x391   :  { %v1296_v50 = vrot.slane %v1295_v38, 2  ;;  %v1332_v52 = vadd.f32 %v1331_v51, %v1330_v43 }
 0x392   :  { %v1323_v46 = vmul.f32 %v3898_v26, %v3898_v26  ;;  %v1300_v25 = vsel %vm1057_vm0, %v3898_v26, 0.0 }
 0x393   :  { %v1297_v33 = vadd.f32 %v1296_v50, %v1295_v38  ;;  %v1333_v34 = vrot.slane %v1332_v52, 2  ;;  %v3928_v50 = vld [vmem:[%s4872_s3 + $0x4] ss:$0 sm:$0xff] }
 0x394   :  { %v1337_v0 = vsel %vm1057_vm0, %v1323_v46, 0.0 }
 0x395   :  { %v1298_v35 = vrot.slane %v1297_v33, 1  ;;  %v1334_v53 = vadd.f32 %v1333_v34, %v1332_v52  ;;  %v1267_v3 = vpop.f32.mrf.mxu3 }
 0x396   :  { %v1277_v7 = vadd.f32 %v1267_v3, %v1184_v29 }
 0x397   :  { %v1299_v2 = vadd.f32 %v1298_v35, %v1297_v33  ;;  %v1335_v11 = vrot.slane %v1334_v53, 1 }
 0x398   :  { %v3893_v42 = vadd.f32 %v3866_v47, %v1277_v7 }
 0x399   :  { %v3895_v61 = vmul.f32 %v1317_v39, %v1299_v2  ;;  %v1336_v10 = vadd.f32 %v1335_v11, %v1334_v53 }
 0x39a   :  { %v1324_v37 = vmul.f32 %v3893_v42, %v3893_v42  ;;  %v1301_v48 = vsel %vm1057_vm0, %v3893_v42, 0.0 }
 0x39b   :  { %v1348_v40 = vmul.f32 %v1336_v10, %v1317_v39  ;;  %v1350_v5 = vmul.f32 %v3895_v61, %v3895_v61  ;;  %v1302_v63 = vadd.f32 %v1301_v48, %v1300_v25  ;;  %v1354_v38 = vsub.f32 %v3872_v58, %v3895_v61 }
 0x39c   :  { %v1338_v59 = vsel %vm1057_vm0, %v1324_v37, 0.0  ;;  %v1355_v51 = vsub.f32 %v3869_v57, %v3895_v61  ;;  %v1356_v53 = vsub.f32 %v3884_v20, %v3895_v61 }
 0x39d   :  { %v1352_v36 = vsub.f32 %v1348_v40, %v1350_v5  ;;  %v1270_v45 = vpop.f32.mrf.mxu3  ;;  %v1339_v12 = vadd.f32 %v1338_v59, %v1337_v0 }
 0x39e   :  { %v1278_v49 = vadd.f32 %v1270_v45, %v1187_v41 }
 0x39f   :  { %v1360_v54 = vadd.f32 1e-05, %v1352_v36 }
 0x3a0   :  { %v3913_v23 = vadd.f32 %v3866_v47, %v1278_v49 }
 0x3a1   :  { %3058 = vrsqrt.f32 %v1360_v54  ;;  %vm1368_vm4 = vweird.f32 %v1360_v54 }
 0x3a2   :  { %v1303_v6 = vsel %vm1057_vm0, %v3913_v23, 0.0  ;;  %v1325_v8 = vmul.f32 %v3913_v23, %v3913_v23 }
 0x3a3   :  { %v1304_v13 = vadd.f32 %v1303_v6, %v1302_v63 }
 0x3a4   :  { %v1340_v14 = vsel %vm1057_vm0, %v1325_v8, 0.0 }
 0x3a5   :  { %v1305_v17 = vrot.slane %v1304_v13, 4  ;;  %v1341_v18 = vadd.f32 %v1340_v14, %v1339_v12 }
 0x3a7   :  { %v3059_v1 = vpop.eup %3058  ;;  %v1306_v19 = vadd.f32 %v1305_v17, %v1304_v13  ;;  %v1342_v47 = vrot.slane %v1341_v18, 4 }
 0x3a8   :  { %v1363_v21 = vmul.f32 %v3059_v1, %v1360_v54  ;;  %vm1369_vm3 = vweird.f32 %v3059_v1 }
 0x3a9   :  { %v1307_v22 = vrot.slane %v1306_v19, 2  ;;  %v1343_v27 = vadd.f32 %v1342_v47, %v1341_v18  ;;  %vm1370_vm6 = vmor %vm1368_vm4, %vm1369_vm3  ;;  %vm1466_vm3 = vcmask 1043459   ;;  %vm1898_vm4 = vcmask 261120  }
 0x3aa   :  { %v1364_v55 = vmul.f32 %v3059_v1, %v1363_v21 }
 0x3ab   :  { %v1308_v28 = vadd.f32 %v1307_v22, %v1306_v19  ;;  %v1344_v60 = vrot.slane %v1343_v27, 2 }
 0x3ac   :  { %v1365_v30 = vmul.f32 0.5, %v1364_v55 }
 0x3ad   :  { %v1309_v31 = vrot.slane %v1308_v28, 1  ;;  %v1345_v16 = vadd.f32 %v1344_v60, %v1343_v27 }
 0x3ae   :  { %v1366_v43 = vsub.f32 1.5, %v1365_v30 }
 0x3af   :  { %v1310_v24 = vadd.f32 %v1309_v31, %v1308_v28  ;;  %v1346_v32 = vrot.slane %v1345_v16, 1 }
 0x3b0   :  { %v1367_v44 = vmul.f32 %v3059_v1, %v1366_v43 }
 0x3b1   :  { %v3930_v52 = vmul.f32 %v1317_v39, %v1310_v24  ;;  %v1347_v56 = vadd.f32 %v1346_v32, %v1345_v16 }
 0x3b2   :  { %v1371_v4 = vsel %vm1370_vm6, %v3059_v1, %v1367_v44  ;;  %vm1902_vm6 = vcmask 259072  }
 0x3b3   :  { %v1382_v33 = vmul.f32 %v1371_v4, %v1354_v38  ;;  %v1383_v34 = vmul.f32 %v1371_v4, %v1355_v51  ;;  %v1349_v58 = vmul.f32 %v1347_v56, %v1317_v39  ;;  %v1351_v57 = vmul.f32 %v3930_v52, %v3930_v52 }
 0x3b4   :  { %v1384_v7 = vmul.f32 %v1371_v4, %v1356_v53  ;;  %v1357_v27 = vsub.f32 %v3898_v26, %v3930_v52  ;;  %v1358_v28 = vsub.f32 %v3893_v42, %v3930_v52  ;;  %v1359_v43 = vsub.f32 %v3913_v23, %v3930_v52 }
 0x3b5   :  { %v1389_v29 = vmul.f32 %v3928_v50, %v1382_v33  ;;  %v1353_v35 = vsub.f32 %v1349_v58, %v1351_v57  ;;  %v1390_v3 = vmul.f32 %v3928_v50, %v1383_v34 }
 0x3b6   :  { %v1391_v40 = vmul.f32 %v3928_v50, %v1384_v7 }
 0x3b7   :  { %v1396_v62 = vadd.f32 %v3935_v9, %v1389_v29  ;;  %v1361_v11 = vadd.f32 1e-05, %v1353_v35  ;;  %v1397_v10 = vadd.f32 %v3935_v9, %v1390_v3 }
 0x3b8   :  { %v1398_v61 = vadd.f32 %v3935_v9, %v1391_v40 }
 0x3b9   :  { %vm1402_vm8 = vcmp.ge.f32.partialorder %v1396_v62, 0.0  ;;  %v1408_v2 = vmul.f32 0.01, %v1396_v62  ;;  %3060 = vrsqrt.f32 %v1361_v11  ;;  %v1409_v20 = vmul.f32 0.01, %v1397_v10 }
 0x3ba   :  { %vm1403_vm9 = vcmp.ge.f32.partialorder %v1397_v10, 0.0  ;;  %v1410_v46 = vmul.f32 0.01, %v1398_v61  ;;  %vm1404_vm10 = vcmp.ge.f32.partialorder %v1398_v61, 0.0  ;;  %vm1378_vm12 = vweird.f32 %v1361_v11 }
 0x3bb   :  { %v3945_v39 = vsel %vm1402_vm8, %v1396_v62, %v1408_v2  ;;  %v3954_v5 = vsel %vm1403_vm9, %v1397_v10, %v1409_v20 }
 0x3bc   :  { %v3948_v15 = vrot.slane %v3945_v39, 4  ;;  %1538 = vst [vmem:[#allocation1] sm:$0xff] %v3945_v39  ;;  %v3967_v54 = vrot.slane %v3954_v5, 4  ;;  %v3975_v6 = vsel %vm1404_vm10, %v1398_v61, %v1410_v46 }
 0x3bd   :  { %v3978_v12 = vrot.slane %v3975_v6, 4 }
 0x3be   :  { %1539 = vst [vmem:[#allocation1 + $0x20] sm:$0xff] %v3948_v15 }
 0x3bf   :  { %v3061_v41 = vpop.eup %3060 }
 0x3c0   :  { %v1373_v63 = vmul.f32 %v3061_v41, %v1361_v11  ;;  %vm1379_vm11 = vweird.f32 %v3061_v41 }
 0x3c1   :  { %vm1380_vm13 = vmor %vm1378_vm12, %vm1379_vm11 }
 0x3c2   :  { %v1374_v0 = vmul.f32 %v3061_v41, %v1373_v63 }
 0x3c3   :  { %v3956_v37 = vld [vmem:[#allocation1 + $0x1] ss:$4 sm:$0xff]  ;;  %v3958_v36 = vld [vmem:[#allocation1 + $0x2] ss:$4 sm:$0xff]  ;;  %v3960_v45 = vld [vmem:[#allocation1 + $0x3] ss:$4 sm:$0xff] }
 0x3c4   :  { %1554 = vst [vmem:[#allocation1] sm:$0xff] %v3954_v5  ;;  %v1375_v8 = vmul.f32 0.5, %v1374_v0 }
 0x3c5   :  { %v3962_v48 = vld [vmem:[#allocation1 + $0x20] ss:$4 sm:$0xff]  ;;  %v3964_v49 = vld [vmem:[#allocation1 + $0x21] ss:$4 sm:$0xff]  ;;  %v3969_v25 = vld [vmem:[#allocation1 + $0x22] ss:$4 sm:$0xff] }
 0x3c6   :  { %v3971_v59 = vld [vmem:[#allocation1 + $0x23] ss:$4 sm:$0xff]  ;;  %v1376_v13 = vsub.f32 1.5, %v1375_v8 }
 0x3c7   :  { %1559 = vst [vmem:[#allocation1 + $0x20] sm:$0xff] %v3967_v54 }
 0x3c8   :  { %v1377_v21 = vmul.f32 %v3061_v41, %v1376_v13 }
 0x3ca   :  { %v1381_v55 = vsel %vm1380_vm13, %v3061_v41, %v1377_v21 }
 0x3cb   :  { %v3980_v14 = vld [vmem:[#allocation1] ss:$4 sm:$0xff]  ;;  %v3982_v17 = vld [vmem:[#allocation1 + $0x1] ss:$4 sm:$0xff]  ;;  %v3984_v18 = vld [vmem:[#allocation1 + $0x2] ss:$4 sm:$0xff]  ;;  %v1385_v60 = vmul.f32 %v1381_v55, %v1357_v27  ;;  %v1386_v30 = vmul.f32 %v1381_v55, %v1358_v28  ;;  %v1387_v42 = vmul.f32 %v1381_v55, %v1359_v43 }
 0x3cc   :  { %v3986_v1 = vld [vmem:[#allocation1 + $0x3] ss:$4 sm:$0xff] }
 0x3cd   :  { %1563 = vst [vmem:[#allocation1] sm:$0xff] %v3975_v6  ;;  %v1392_v31 = vmul.f32 %v3928_v50, %v1385_v60  ;;  %v1393_v24 = vmul.f32 %v3928_v50, %v1386_v30  ;;  %v1394_v57 = vmul.f32 %v3928_v50, %v1387_v42 }
 0x3ce   :  { %v3988_v19 = vld [vmem:[#allocation1 + $0x21] ss:$4 sm:$0xff]  ;;  %v3990_v47 = vld [vmem:[#allocation1 + $0x22] ss:$4 sm:$0xff]  ;;  %v3992_v22 = vld [vmem:[#allocation1 + $0x23] ss:$4 sm:$0xff] }
 0x3cf   :  { %1564 = vst [vmem:[#allocation1 + $0x20] sm:$0xff] %v3978_v12  ;;  %v1399_v16 = vadd.f32 %v3935_v9, %v1392_v31  ;;  %v1400_v52 = vadd.f32 %v3935_v9, %v1393_v24  ;;  %v1401_v35 = vadd.f32 %v3935_v9, %v1394_v57 }
 0x3d1   :  { %vm1405_vm14 = vcmp.ge.f32.partialorder %v1399_v16, 0.0  ;;  %v1411_v51 = vmul.f32 0.01, %v1399_v16  ;;  %v1412_v29 = vmul.f32 0.01, %v1400_v52  ;;  %vm1406_vm15 = vcmp.ge.f32.partialorder %v1400_v52, 0.0 }
 0x3d2   :  { %v1413_v2 = vmul.f32 0.01, %v1401_v35  ;;  %vm1407_vm1 = vcmp.ge.f32.partialorder %v1401_v35, 0.0 }
 0x3d3   :  { %v4022_v34 = vsel %vm1405_vm14, %v1399_v16, %v1411_v51  ;;  %v4031_v53 = vsel %vm1406_vm15, %v1400_v52, %v1412_v29 }
 0x3d4   :  { %v4005_v32 = vld [vmem:[#allocation1] ss:$4 sm:$0xff]  ;;  %v4007_v26 = vld [vmem:[#allocation1 + $0x1] ss:$4 sm:$0xff]  ;;  %v4009_v44 = vld [vmem:[#allocation1 + $0x2] ss:$4 sm:$0xff]  ;;  %v4048_v9 = vsel %vm1407_vm1, %v1401_v35, %v1413_v2 }
 0x3d5   :  { %v4011_v38 = vld [vmem:[#allocation1 + $0x3] ss:$4 sm:$0xff]  ;;  %v4025_v58 = vrot.slane %v4022_v34, 4  ;;  %v4040_v40 = vrot.slane %v4031_v53, 4  ;;  %v4051_v61 = vrot.slane %v4048_v9, 4 }
 0x3d6   :  { %v4013_v56 = vld [vmem:[#allocation1 + $0x20] ss:$4 sm:$0xff]  ;;  %v4015_v4 = vld [vmem:[#allocation1 + $0x21] ss:$4 sm:$0xff]  ;;  %v4017_v33 = vld [vmem:[#allocation1 + $0x22] ss:$4 sm:$0xff] }
 0x3d7   :  { %v4019_v23 = vld [vmem:[#allocation1 + $0x23] ss:$4 sm:$0xff]  ;;  %1573 = vst [vmem:[#allocation1] sm:$0xff] %v4022_v34 }
 0x3d8   :  { %1574 = vst [vmem:[#allocation1 + $0x20] sm:$0xff] %v4025_v58 }
 0x3de   :  { %v1575_v3 = vld [vmem:[#allocation1 + $0x1] ss:$4 sm:$0xff]  ;;  %v1576_v62 = vld [vmem:[#allocation1 + $0x2] ss:$4 sm:$0xff]  ;;  %v4033_v7 = vld [vmem:[#allocation1 + $0x3] ss:$4 sm:$0xff] }
 0x3df   :  { %v4035_v11 = vld [vmem:[#allocation1 + $0x20] ss:$4 sm:$0xff]  ;;  %v4037_v10 = vld [vmem:[#allocation1 + $0x21] ss:$4 sm:$0xff]  ;;  %v4042_v50 = vld [vmem:[#allocation1 + $0x22] ss:$4 sm:$0xff] }
 0x3e0   :  { %v4044_v20 = vld [vmem:[#allocation1 + $0x23] ss:$4 sm:$0xff]  ;;  %1582 = vst [vmem:[#allocation1] sm:$0xff] %v4031_v53 }
 0x3e1   :  { %1587 = vst [vmem:[#allocation1 + $0x20] sm:$0xff] %v4040_v40 }
 0x3e7   :  { %v1583_v41 = vld [vmem:[#allocation1] ss:$4 sm:$0xff]  ;;  %v4053_v46 = vld [vmem:[#allocation1 + $0x1] ss:$4 sm:$0xff]  ;;  %v4055_v63 = vld [vmem:[#allocation1 + $0x2] ss:$4 sm:$0xff] }
 0x3e8   :  { %v4057_v0 = vld [vmem:[#allocation1 + $0x3] ss:$4 sm:$0xff]  ;;  %v4059_v8 = vld [vmem:[#allocation1 + $0x21] ss:$4 sm:$0xff]  ;;  %v4061_v13 = vld [vmem:[#allocation1 + $0x22] ss:$4 sm:$0xff] }
 0x3e9   :  { %v4063_v21 = vld [vmem:[#allocation1 + $0x23] ss:$4 sm:$0xff]  ;;  %1591 = vst [vmem:[#allocation1] sm:$0xff] %v4048_v9 }
 0x3ea   :  { %1592 = vst [vmem:[#allocation1 + $0x20] sm:$0xff] %v4051_v61 }
 0x3f0   :  { %v4067_v27 = vld [vmem:[#allocation1] ss:$4 sm:$0xff]  ;;  %v4069_v55 = vld [vmem:[#allocation1 + $0x1] ss:$4 sm:$0xff]  ;;  %v4071_v28 = vld [vmem:[#allocation1 + $0x2] ss:$4 sm:$0xff] }
 0x3f1   :  { %v4073_v60 = vld [vmem:[#allocation1 + $0x20] ss:$4 sm:$0xff]  ;;  %v4075_v30 = vld [vmem:[#allocation1 + $0x21] ss:$4 sm:$0xff]  ;;  %v4077_v31 = vld [vmem:[#allocation1 + $0x3] ss:$4 sm:$0xff] }
 0x3f2   :  { %v4079_v16 = vld [vmem:[#allocation1 + $0x22] ss:$4 sm:$0xff]  ;;  %v4081_v43 = vld [vmem:[#allocation1 + $0x23] ss:$4 sm:$0xff] }
 0x3f3   :  { %1601 = vst [vmem:[#allocation1] ss:$9 sm:$0xff] %v3956_v37 }
 0x3f4   :  { %1603 = vst [vmem:[#allocation1 + $0x1] ss:$9 sm:$0xff] %v3958_v36  ;;  %v1447_v36 = vld [vmem:[#allocation5 + $0x148] sm:$0xff] }
 0x3f5   :  { %1605 = vst [vmem:[#allocation1 + $0x2] ss:$9 sm:$0xff] %v3960_v45  ;;  %1678 = vmatpush.msra.mxu0 %v1447_v36  ;;  %v1446_v45 = vld [vmem:[#allocation5 + $0x140] sm:$0xff] }
 0x3f6   :  { %1607 = vst [vmem:[#allocation1 + $0x3] ss:$9 sm:$0xff] %v3962_v48  ;;  %v1445_v48 = vld [vmem:[#allocation5 + $0x138] sm:$0xff] }
 0x3f7   :  { %1609 = vst [vmem:[#allocation1 + $0x4] ss:$9 sm:$0xff] %v3964_v49  ;;  %1679 = vmatpush.msra.mxu0 %v1446_v45  ;;  %v1444_v49 = vld [vmem:[#allocation5 + $0x130] sm:$0xff] }
 0x3f8   :  { %1611 = vst [vmem:[#allocation1 + $0x5] ss:$9 sm:$0xff] %v3969_v25 }
 0x3f9   :  { %1613 = vst [vmem:[#allocation1 + $0x6] ss:$9 sm:$0xff] %v3971_v59  ;;  %1680 = vmatpush.msra.mxu0 %v1445_v48  ;;  %v1443_v59 = vld [vmem:[#allocation5 + $0x128] sm:$0xff]  ;;  %v1454_v48 = vrot.slane %v4022_v34, 3 }
 0x3fa   :  { %1615 = vst [vmem:[#allocation1 + $0x7] ss:$9 sm:$0xff] %v3980_v14  ;;  %v1442_v14 = vld [vmem:[#allocation5 + $0x120] sm:$0xff] }
 0x3fb   :  { %1681 = vmatpush.msra.mxu0 %v1444_v49 }
 0x3fd   :  { %1682 = vmatpush.msra.mxu0 %v1443_v59 }
 0x3ff   :  { %1683 = vmatpush.msra.mxu0 %v1442_v14 }
 0x401   :  { %v1616_v24 = vld [vmem:[#allocation1] sm:$0xff] }
 0x402   :  { %1617 = vst [vmem:[#allocation1] ss:$9 sm:$0xff] %v3982_v17  ;;  %v1441_v17 = vld [vmem:[#allocation5 + $0x118] sm:$0xff] }
 0x403   :  { %1618 = vst [vmem:[#allocation1 + $0x1] ss:$9 sm:$0xff] %v3984_v18  ;;  %1684 = vmatpush.msra.mxu0 %v1441_v17  ;;  %v1440_v18 = vld [vmem:[#allocation5 + $0x110] sm:$0xff] }
 0x404   :  { %1619 = vst [vmem:[#allocation1 + $0x2] ss:$9 sm:$0xff] %v3986_v1 }
 0x405   :  { %1620 = vst [vmem:[#allocation1 + $0x3] ss:$9 sm:$0xff] %v3988_v19  ;;  %1685 = vmatpush.msra.mxu0 %v1440_v18 }
 0x406   :  { %1621 = vst [vmem:[#allocation1 + $0x4] ss:$9 sm:$0xff] %v3990_v47  ;;  %2963 = vmatmul.msk.f32.vlgmr.msra.gmra.mxu0 %vm1057_vm0, %v1616_v24  ;;  %v1448_v47 = vrot.slane %v3945_v39, 3  ;;  %v1453_v24 = vrot.slane %v3978_v12, 3 }
 0x407   :  { %1622 = vst [vmem:[#allocation1 + $0x5] ss:$9 sm:$0xff] %v3992_v22  ;;  %v1449_v22 = vrot.slane %v3948_v15, 3 }
 0x408   :  { %1623 = vst [vmem:[#allocation1 + $0x6] ss:$9 sm:$0xff] %v4005_v32  ;;  %v1462_v32 = vsel %vm1461_vm5, %v3945_v39, %v1448_v47  ;;  %v1460_v42 = vsel %vm658_vm2, %v3945_v39, %v1448_v47  ;;  %v1498_v17 = vsel %vm938_vm7, %v3978_v12, %v1453_v24  ;;  %v1495_v18 = vsel %vm658_vm2, %v3978_v12, %v1453_v24 }
 0x409   :  { %1624 = vst [vmem:[#allocation1 + $0x7] ss:$9 sm:$0xff] %v4007_v26  ;;  %v1464_v26 = vsel %vm938_vm7, %v3945_v39, %v1448_v47  ;;  %v1463_v51 = vrot.slane %v1462_v32, 1  ;;  %v1472_v57 = vsel %vm938_vm7, %v3948_v15, %v1449_v22  ;;  %v1474_v29 = vsel %vm1466_vm3, %v3948_v15, %v1449_v22 }
 0x40a   :  { %v1469_v35 = vsel %vm658_vm2, %v3948_v15, %v1449_v22  ;;  %v1475_v2 = vrot.slane %v1474_v29, 3  ;;  %v1455_v32 = vrot.slane %v4025_v58, 3 }
 0x410   :  { %v1625_v37 = vld [vmem:[#allocation1] sm:$0xff] }
 0x411   :  { %1626 = vst [vmem:[#allocation1] ss:$9 sm:$0xff] %v4009_v44  ;;  %2964 = vmatmul.msk.f32.gmra.mxu0 %vm1057_vm0, %v1625_v37  ;;  %v1467_v44 = vsel %vm1466_vm3, %v3945_v39, %v1448_v47  ;;  %v1437_v39 = vld [vmem:[#allocation5 + $0xf8] sm:$0xff]  ;;  %v1500_v47 = vsel %vm658_vm2, %v4022_v34, %v1454_v48 }
 0x412   :  { %1627 = vst [vmem:[#allocation1 + $0x1] ss:$9 sm:$0xff] %v4011_v38  ;;  %v1439_v38 = vld [vmem:[#allocation5 + $0x108] sm:$0xff]  ;;  %v1468_v52 = vrot.slane %v1467_v44, 3  ;;  %v1456_v44 = vrot.slane %v4031_v53, 3 }
 0x413   :  { %1628 = vst [vmem:[#allocation1 + $0x2] ss:$9 sm:$0xff] %v4013_v56  ;;  %1782 = vmatpush.msra.mxu1 %v1439_v38 }
 0x414   :  { %1629 = vst [vmem:[#allocation1 + $0x3] ss:$9 sm:$0xff] %v4015_v4  ;;  %v1465_v4 = vrot.slane %v1464_v26, 2  ;;  %v1505_v26 = vsel %vm1466_vm3, %v4022_v34, %v1454_v48 }
 0x415   :  { %1630 = vst [vmem:[#allocation1 + $0x4] ss:$9 sm:$0xff] %v4017_v33  ;;  %v1470_v33 = vsel %vm1461_vm5, %v3948_v15, %v1449_v22  ;;  %v1451_v15 = vrot.slane %v3967_v54, 3 }
 0x416   :  { %1631 = vst [vmem:[#allocation1 + $0x5] ss:$9 sm:$0xff] %v4019_v23  ;;  %v1438_v23 = vld [vmem:[#allocation5 + $0x100] sm:$0xff] }
 0x417   :  { %1632 = vst [vmem:[#allocation1 + $0x6] ss:$9 sm:$0xff] %v1575_v3  ;;  %1783 = vmatpush.msra.mxu1 %v1438_v23  ;;  %v1471_v3 = vrot.slane %v1470_v33, 1  ;;  %v1512_v33 = vsel %vm1466_vm3, %v4025_v58, %v1455_v32 }
 0x418   :  { %1633 = vst [vmem:[#allocation1 + $0x7] ss:$9 sm:$0xff] %v1576_v62  ;;  %v1473_v62 = vrot.slane %v1472_v57, 2  ;;  %v1515_v57 = vsel %vm1461_vm5, %v4031_v53, %v1456_v44  ;;  %v1513_v29 = vrot.slane %v1512_v33, 3 }
 0x419   :  { %1784 = vmatpush.msra.mxu1 %v1437_v39  ;;  %v1514_v39 = vsel %vm658_vm2, %v4031_v53, %v1456_v44 }
 0x41f   :  { %v1634_v25 = vld [vmem:[#allocation1] sm:$0xff] }
 0x420   :  { %1635 = vst [vmem:[#allocation1] ss:$9 sm:$0xff] %v4033_v7  ;;  %2965 = vmatmul.msk.f32.gmra.mxu0 %vm1057_vm0, %v1634_v25  ;;  %v1436_v7 = vld [vmem:[#allocation5 + $0xf0] sm:$0xff]  ;;  %v1496_v25 = vsel %vm1461_vm5, %v3978_v12, %v1453_v24  ;;  %v1503_v12 = vsel %vm938_vm7, %v4022_v34, %v1454_v48 }
 0x421   :  { %1636 = vst [vmem:[#allocation1 + $0x1] ss:$9 sm:$0xff] %v4035_v11  ;;  %1785 = vmatpush.msra.mxu1 %v1436_v7  ;;  %v1435_v11 = vld [vmem:[#allocation5 + $0xe8] sm:$0xff]  ;;  %v1504_v38 = vrot.slane %v1503_v12, 2 }
 0x422   :  { %1637 = vst [vmem:[#allocation1 + $0x2] ss:$9 sm:$0xff] %v4037_v10  ;;  %v1450_v10 = vrot.slane %v3954_v5, 3 }
 0x423   :  { %1638 = vst [vmem:[#allocation1 + $0x3] ss:$9 sm:$0xff] %v4042_v50  ;;  %1786 = vmatpush.msra.mxu1 %v1435_v11  ;;  %v1434_v50 = vld [vmem:[#allocation5 + $0xe0] sm:$0xff] }
 0x424   :  { %1639 = vst [vmem:[#allocation1 + $0x4] ss:$9 sm:$0xff] %v4044_v20  ;;  %v1433_v20 = vld [vmem:[#allocation5 + $0xd8] sm:$0xff] }
 0x425   :  { %1640 = vst [vmem:[#allocation1 + $0x5] ss:$9 sm:$0xff] %v1583_v41  ;;  %1787 = vmatpush.msra.mxu1 %v1434_v50  ;;  %v1477_v41 = vsel %vm1461_vm5, %v3954_v5, %v1450_v10 }
 0x426   :  { %1641 = vst [vmem:[#allocation1 + $0x6] ss:$9 sm:$0xff] %v4053_v46  ;;  %v1479_v46 = vsel %vm938_vm7, %v3954_v5, %v1450_v10 }
 0x427   :  { %1642 = vst [vmem:[#allocation1 + $0x7] ss:$9 sm:$0xff] %v4055_v63  ;;  %1788 = vmatpush.msra.mxu1 %v1433_v20  ;;  %v1432_v63 = vld [vmem:[#allocation5 + $0xd0] sm:$0xff] }
 0x429   :  { %1789 = vmatpush.msra.mxu1 %v1432_v63 }
 0x42e   :  { %v1643_v1 = vld [vmem:[#allocation1] sm:$0xff] }
 0x42f   :  { %1644 = vst [vmem:[#allocation1] ss:$9 sm:$0xff] %v4057_v0  ;;  %2966 = vmatmul.msk.f32.gmra.mxu0 %vm1057_vm0, %v1643_v1  ;;  %v1476_v0 = vsel %vm658_vm2, %v3954_v5, %v1450_v10  ;;  %v1481_v5 = vsel %vm658_vm2, %v3967_v54, %v1451_v15  ;;  %v1501_v1 = vsel %vm1461_vm5, %v4022_v34, %v1454_v48 }
 0x430   :  { %1645 = vst [vmem:[#allocation1 + $0x1] ss:$9 sm:$0xff] %v4059_v8  ;;  %v1478_v8 = vrot.slane %v1477_v41, 1  ;;  %v1502_v22 = vrot.slane %v1501_v1, 1  ;;  %v1507_v34 = vsel %vm658_vm2, %v4025_v58, %v1455_v32 }
 0x431   :  { %1646 = vst [vmem:[#allocation1 + $0x2] ss:$9 sm:$0xff] %v4061_v13  ;;  %v1482_v13 = vsel %vm1461_vm5, %v3967_v54, %v1451_v15 }
 0x432   :  { %1647 = vst [vmem:[#allocation1 + $0x3] ss:$9 sm:$0xff] %v4063_v21 }
 0x433   :  { %1648 = vst [vmem:[#allocation1 + $0x4] ss:$9 sm:$0xff] %v4067_v27  ;;  %v1480_v27 = vrot.slane %v1479_v46, 2 }
 0x434   :  { %1649 = vst [vmem:[#allocation1 + $0x5] ss:$9 sm:$0xff] %v4069_v55  ;;  %v1484_v55 = vsel %vm938_vm7, %v3967_v54, %v1451_v15 }
 0x435   :  { %1650 = vst [vmem:[#allocation1 + $0x6] ss:$9 sm:$0xff] %v4071_v28  ;;  %v1486_v28 = vsel %vm1466_vm3, %v3967_v54, %v1451_v15 }
 0x436   :  { %1651 = vst [vmem:[#allocation1 + $0x7] ss:$9 sm:$0xff] %v4077_v31  ;;  %v1485_v31 = vrot.slane %v1484_v55, 2 }
 0x43d   :  { %v1652_v19 = vld [vmem:[#allocation1] sm:$0xff] }
 0x43e   :  { %1653 = vst [vmem:[#allocation1] ss:$9 sm:$0xff] %v4073_v60  ;;  %2967 = vmatmul.msk.f32.gmra.mxu0 %vm1057_vm0, %v1652_v19  ;;  %v1452_v60 = vrot.slane %v3975_v6, 3  ;;  %v1499_v19 = vrot.slane %v1498_v17, 2 }
 0x43f   :  { %1654 = vst [vmem:[#allocation1 + $0x1] ss:$9 sm:$0xff] %v4075_v30  ;;  %v1483_v30 = vrot.slane %v1482_v13, 1  ;;  %v1459_v13 = vrot.slane %v4051_v61, 3 }
 0x440   :  { %1655 = vst [vmem:[#allocation1 + $0x2] ss:$9 sm:$0xff] %v4079_v16  ;;  %v1487_v16 = vrot.slane %v1486_v28, 3  ;;  %v1489_v37 = vsel %vm1461_vm5, %v3975_v6, %v1452_v60  ;;  %v1491_v54 = vsel %vm938_vm7, %v3975_v6, %v1452_v60  ;;  %v1493_v36 = vsel %vm1466_vm3, %v3975_v6, %v1452_v60 }
 0x441   :  { %1656 = vst [vmem:[#allocation1 + $0x3] ss:$9 sm:$0xff] %v4081_v43  ;;  %v1488_v43 = vsel %vm658_vm2, %v3975_v6, %v1452_v60  ;;  %v1490_v45 = vrot.slane %v1489_v37, 1  ;;  %v1492_v49 = vrot.slane %v1491_v54, 2  ;;  %v1494_v14 = vrot.slane %v1493_v36, 3 }
 0x442   :  { %v1497_v6 = vrot.slane %v1496_v25, 1  ;;  %v1536_v28 = vsel %vm938_vm7, %v4051_v61, %v1459_v13 }
 0x448   :  { %v1657_v56 = vld [vmem:[#allocation1] sm:$0xff] }
 0x449   :  { %1705 = vst [vmem:[#allocation1] ss:$9 sm:$0xff] %v1460_v42  ;;  %2968 = vmatmul.msk.f32.gmra.mxu0 %vm1057_vm0, %v1657_v56  ;;  %v1508_v42 = vsel %vm1461_vm5, %v4025_v58, %v1455_v32  ;;  %v1510_v56 = vsel %vm938_vm7, %v4025_v58, %v1455_v32  ;;  %v1517_v58 = vsel %vm938_vm7, %v4031_v53, %v1456_v44 }
 0x44a   :  { %1707 = vst [vmem:[#allocation1 + $0x1] ss:$9 sm:$0xff] %v1463_v51  ;;  %v1506_v51 = vrot.slane %v1505_v26, 3  ;;  %v1509_v23 = vrot.slane %v1508_v42, 1 }
 0x44b   :  { %1709 = vst [vmem:[#allocation1 + $0x2] ss:$9 sm:$0xff] %v1465_v4 }
 0x44c   :  { %1711 = vst [vmem:[#allocation1 + $0x3] ss:$9 sm:$0xff] %v1468_v52  ;;  %v1511_v52 = vrot.slane %v1510_v56, 2 }
 0x44d   :  { %1713 = vst [vmem:[#allocation1 + $0x4] ss:$9 sm:$0xff] %v1469_v35  ;;  %v1516_v35 = vrot.slane %v1515_v57, 1 }
 0x44e   :  { %1715 = vst [vmem:[#allocation1 + $0x5] ss:$9 sm:$0xff] %v1471_v3  ;;  %v1457_v3 = vrot.slane %v4040_v40, 3 }
 0x44f   :  { %1717 = vst [vmem:[#allocation1 + $0x6] ss:$9 sm:$0xff] %v1473_v62  ;;  %v1458_v62 = vrot.slane %v4048_v9, 3 }
 0x450   :  { %1719 = vst [vmem:[#allocation1 + $0x7] ss:$9 sm:$0xff] %v1475_v2  ;;  %v1520_v7 = vsel %vm1461_vm5, %v4040_v40, %v1457_v3  ;;  %v1518_v2 = vrot.slane %v1517_v58, 2  ;;  %v1522_v11 = vsel %vm938_vm7, %v4040_v40, %v1457_v3  ;;  %v1524_v10 = vsel %vm1466_vm3, %v4040_v40, %v1457_v3 }
 0x451   :  { %v1519_v15 = vsel %vm658_vm2, %v4040_v40, %v1457_v3  ;;  %v1521_v20 = vrot.slane %v1520_v7, 1  ;;  %v1523_v53 = vrot.slane %v1522_v11, 2  ;;  %v1527_v41 = vsel %vm1461_vm5, %v4048_v9, %v1458_v62 }
 0x452   :  { %v1525_v46 = vrot.slane %v1524_v10, 3  ;;  %v1529_v63 = vsel %vm938_vm7, %v4048_v9, %v1458_v62 }
 0x453   :  { %v1530_v40 = vrot.slane %v1529_v63, 2 }
 0x457   :  { %v1720_v21 = vld [vmem:[#allocation1] sm:$0xff] }
 0x458   :  { %1721 = vst [vmem:[#allocation1] ss:$9 sm:$0xff] %v1476_v0  ;;  %2969 = vmatmul.msk.f32.vlgmr.msra.gmra.mxu1 %vm1057_vm0, %v1720_v21  ;;  %v1526_v0 = vsel %vm658_vm2, %v4048_v9, %v1458_v62  ;;  %v1531_v21 = vsel %vm1466_vm3, %v4048_v9, %v1458_v62 }
 0x459   :  { %1722 = vst [vmem:[#allocation1 + $0x1] ss:$9 sm:$0xff] %v1478_v8  ;;  %v1528_v8 = vrot.slane %v1527_v41, 1  ;;  %v1532_v55 = vrot.slane %v1531_v21, 3 }
 0x45a   :  { %1723 = vst [vmem:[#allocation1 + $0x2] ss:$9 sm:$0xff] %v1480_v27  ;;  %v1534_v27 = vsel %vm1461_vm5, %v4051_v61, %v1459_v13 }
 0x45b   :  { %1724 = vst [vmem:[#allocation1 + $0x3] ss:$9 sm:$0xff] %v1481_v5  ;;  %v1533_v5 = vsel %vm658_vm2, %v4051_v61, %v1459_v13 }
 0x45c   :  { %1725 = vst [vmem:[#allocation1 + $0x4] ss:$9 sm:$0xff] %v1483_v30  ;;  %v1535_v30 = vrot.slane %v1534_v27, 1 }
 0x45d   :  { %1726 = vst [vmem:[#allocation1 + $0x5] ss:$9 sm:$0xff] %v1485_v31  ;;  %v1537_v31 = vrot.slane %v1536_v28, 2 }
 0x45e   :  { %1727 = vst [vmem:[#allocation1 + $0x6] ss:$9 sm:$0xff] %v1487_v16  ;;  %v4239_v16 = vld [vmem:[%s4872_s3 + $0x6] ss:$0 sm:$0xff] }
 0x45f   :  { %1728 = vst [vmem:[#allocation1 + $0x7] ss:$9 sm:$0xff] %v1488_v43 }
 0x466   :  { %v1729_v59 = vld [vmem:[#allocation1] sm:$0xff] }
 0x467   :  { %1730 = vst [vmem:[#allocation1] ss:$9 sm:$0xff] %v1490_v45  ;;  %2970 = vmatmul.msk.f32.gmra.mxu1 %vm1057_vm0, %v1729_v59 }
 0x468   :  { %1731 = vst [vmem:[#allocation1 + $0x1] ss:$9 sm:$0xff] %v1492_v49 }
 0x469   :  { %1732 = vst [vmem:[#allocation1 + $0x2] ss:$9 sm:$0xff] %v1494_v14 }
 0x46a   :  { %1733 = vst [vmem:[#allocation1 + $0x3] ss:$9 sm:$0xff] %v1495_v18 }
 0x46b   :  { %1734 = vst [vmem:[#allocation1 + $0x4] ss:$9 sm:$0xff] %v1497_v6 }
 0x46c   :  { %1735 = vst [vmem:[#allocation1 + $0x5] ss:$9 sm:$0xff] %v1499_v19 }
 0x46d   :  { %1736 = vst [vmem:[#allocation1 + $0x6] ss:$9 sm:$0xff] %v1500_v47 }
 0x46e   :  { %1737 = vst [vmem:[#allocation1 + $0x7] ss:$9 sm:$0xff] %v1502_v22 }
 0x475   :  { %v1738_v4 = vld [vmem:[#allocation1] sm:$0xff] }
 0x476   :  { %1739 = vst [vmem:[#allocation1] ss:$9 sm:$0xff] %v1504_v38  ;;  %2971 = vmatmul.msk.f32.gmra.mxu1 %vm1057_vm0, %v1738_v4 }
 0x477   :  { %1740 = vst [vmem:[#allocation1 + $0x1] ss:$9 sm:$0xff] %v1506_v51 }
 0x478   :  { %1741 = vst [vmem:[#allocation1 + $0x2] ss:$9 sm:$0xff] %v1507_v34 }
 0x479   :  { %1742 = vst [vmem:[#allocation1 + $0x3] ss:$9 sm:$0xff] %v1509_v23 }
 0x47a   :  { %1743 = vst [vmem:[#allocation1 + $0x4] ss:$9 sm:$0xff] %v1511_v52 }
 0x47b   :  { %1744 = vst [vmem:[#allocation1 + $0x5] ss:$9 sm:$0xff] %v1513_v29 }
 0x47c   :  { %1745 = vst [vmem:[#allocation1 + $0x6] ss:$9 sm:$0xff] %v1514_v39 }
 0x47d   :  { %1746 = vst [vmem:[#allocation1 + $0x7] ss:$9 sm:$0xff] %v1516_v35 }
 0x483   :  { %v1687_v43 = vpop.f32.mrf.mxu0 }
 0x484   :  { %v1747_v50 = vld [vmem:[#allocation1] sm:$0xff] }
 0x485   :  { %1748 = vst [vmem:[#allocation1] ss:$9 sm:$0xff] %v1518_v2  ;;  %2972 = vmatmul.msk.f32.gmra.mxu1 %vm1057_vm0, %v1747_v50 }
 0x486   :  { %1749 = vst [vmem:[#allocation1 + $0x1] ss:$9 sm:$0xff] %v1519_v15 }
 0x487   :  { %1750 = vst [vmem:[#allocation1 + $0x2] ss:$9 sm:$0xff] %v1521_v20 }
 0x488   :  { %1751 = vst [vmem:[#allocation1 + $0x3] ss:$9 sm:$0xff] %v1523_v53 }
 0x489   :  { %1752 = vst [vmem:[#allocation1 + $0x4] ss:$9 sm:$0xff] %v1525_v46 }
 0x48a   :  { %1753 = vst [vmem:[#allocation1 + $0x5] ss:$9 sm:$0xff] %v1526_v0 }
 0x48b   :  { %1754 = vst [vmem:[#allocation1 + $0x6] ss:$9 sm:$0xff] %v1528_v8 }
 0x48c   :  { %1755 = vst [vmem:[#allocation1 + $0x7] ss:$9 sm:$0xff] %v1530_v40 }
 0x48e   :  { %v1690_v48 = vpop.f32.mrf.mxu0 }
 0x493   :  { %v1756_v60 = vld [vmem:[#allocation1] sm:$0xff] }
 0x494   :  { %1757 = vst [vmem:[#allocation1] ss:$9 sm:$0xff] %v1532_v55  ;;  %2973 = vmatmul.msk.f32.gmra.mxu1 %vm1057_vm0, %v1756_v60 }
 0x495   :  { %1758 = vst [vmem:[#allocation1 + $0x1] ss:$9 sm:$0xff] %v1533_v5 }
 0x496   :  { %1759 = vst [vmem:[#allocation1 + $0x2] ss:$9 sm:$0xff] %v1535_v30 }
 0x497   :  { %1760 = vst [vmem:[#allocation1 + $0x3] ss:$9 sm:$0xff] %v1537_v31 }
 0x49d   :  { %v1693_v6 = vpop.f32.mrf.mxu0 }
 0x49e   :  { %v1761_v9 = vld [vmem:[#allocation1] sm:$0xff] }
 0x49f   :  { %2974 = vmatmul.msk.f32.gmra.mxu1 %vm1057_vm0, %v1761_v9 }
 0x4ac   :  { %v1696_v38 = vpop.f32.mrf.mxu0 }
 0x4bb   :  { %v1699_v52 = vpop.f32.mrf.mxu0 }
 0x4c6   :  { %v1702_v7 = vpop.f32.mrf.mxu0 }
 0x4d5   :  { %v1791_v24 = vpop.f32.mrf.mxu1 }
 0x4d6   :  { %v1792_v37 = vadd.f32 %v1791_v24, %v1687_v43 }
 0x4d8   :  { %v4242_v61 = vadd.f32 %v4239_v16, %v1792_v37 }
 0x4da   :  { %v4245_v54 = vrot.slane %v4242_v61, 2  ;;  %v4248_v36 = vrot.slane %v4242_v61, 4  ;;  %v4251_v45 = vrot.slane %v4242_v61, 6  ;;  %1857 = vst [vmem:[#allocation1] ss:$4 sm:$0xff] %v4242_v61  ;;  %v1931_v50 = vmul.f32 %v4242_v61, %v4242_v61 }
 0x4dc   :  { %1859 = vst [vmem:[#allocation1 + $0x1] ss:$4 sm:$0xff] %v4245_v54  ;;  %v1932_v15 = vmul.f32 %v4245_v54, %v4245_v54  ;;  %v1933_v53 = vmul.f32 %v4248_v36, %v4248_v36  ;;  %v1934_v46 = vmul.f32 %v4251_v45, %v4251_v45 }
 0x4dd   :  { %1861 = vst [vmem:[#allocation1 + $0x2] ss:$4 sm:$0xff] %v4248_v36 }
 0x4de   :  { %1863 = vst [vmem:[#allocation1 + $0x3] ss:$4 sm:$0xff] %v4251_v45 }
 0x4e4   :  { %v1794_v49 = vpop.f32.mrf.mxu1 }
 0x4e5   :  { %v1795_v25 = vadd.f32 %v1794_v49, %v1690_v48  ;;  %v4276_v22 = vld.sshfl [vmem:[#allocation1] sm:$0xff pattern:$0x73625140] }
 0x4e7   :  { %v4258_v59 = vadd.f32 %v4239_v16, %v1795_v25 }
 0x4e9   :  { %v4261_v14 = vrot.slane %v4258_v59, 2  ;;  %v4264_v17 = vrot.slane %v4258_v59, 4  ;;  %v4267_v18 = vrot.slane %v4258_v59, 6  ;;  %1865 = vst [vmem:[#allocation1 + $0x20] ss:$4 sm:$0xff] %v4258_v59  ;;  %v1935_v21 = vmul.f32 %v4258_v59, %v4258_v59 }
 0x4eb   :  { %1867 = vst [vmem:[#allocation1 + $0x21] ss:$4 sm:$0xff] %v4261_v14  ;;  %v1936_v27 = vmul.f32 %v4261_v14, %v4261_v14  ;;  %v1937_v55 = vmul.f32 %v4264_v17, %v4264_v17  ;;  %v1938_v28 = vmul.f32 %v4267_v18, %v4267_v18 }
 0x4ec   :  { %1869 = vst [vmem:[#allocation1 + $0x22] ss:$4 sm:$0xff] %v4264_v17 }
 0x4ed   :  { %1871 = vst [vmem:[#allocation1 + $0x23] ss:$4 sm:$0xff] %v4267_v18 }
 0x4f3   :  { %v1797_v1 = vpop.f32.mrf.mxu1 }
 0x4f4   :  { %v1798_v19 = vadd.f32 %v1797_v1, %v1693_v6  ;;  %v4288_v44 = vld.sshfl [vmem:[#allocation1 + $0x20] sm:$0xff pattern:$0x73625140] }
 0x4f5   :  { %v1900_v1 = vsel %vm1898_vm4, %v4288_v44, 0.0 }
 0x4f6   :  { %v4274_v47 = vadd.f32 %v4239_v16, %v1798_v19 }
 0x4f8   :  { %v4279_v32 = vrot.slane %v4274_v47, 2  ;;  %v4282_v12 = vrot.slane %v4274_v47, 4  ;;  %v4285_v26 = vrot.slane %v4274_v47, 6  ;;  %1874 = vst [vmem:[#allocation1] ss:$4 sm:$0xff] %v4274_v47  ;;  %v1939_v63 = vmul.f32 %v4274_v47, %v4274_v47 }
 0x4fa   :  { %1875 = vst [vmem:[#allocation1 + $0x1] ss:$4 sm:$0xff] %v4279_v32  ;;  %v1940_v0 = vmul.f32 %v4279_v32, %v4279_v32  ;;  %v1941_v40 = vmul.f32 %v4282_v12, %v4282_v12 }
 0x4fb   :  { %1876 = vst [vmem:[#allocation1 + $0x2] ss:$4 sm:$0xff] %v4282_v12 }
 0x4fc   :  { %1878 = vst [vmem:[#allocation1 + $0x20] ss:$4 sm:$0xff] %v4285_v26 }
 0x502   :  { %v1800_v42 = vpop.f32.mrf.mxu1  ;;  %v4306_v23 = vld.sshfl [vmem:[#allocation1] sm:$0xff pattern:$0x73625140] }
 0x503   :  { %v1801_v51 = vadd.f32 %v1800_v42, %v1696_v38  ;;  %v1899_v38 = vsel %vm1898_vm4, %v4276_v22, 0.0  ;;  %v1903_v42 = vsel %vm1902_vm6, %v4306_v23, 0.0 }
 0x505   :  { %v4294_v56 = vadd.f32 %v4239_v16, %v1801_v51 }
 0x507   :  { %4930 = vst [vmem:[#allocation15_spill] sm:$0xff] %v4294_v56  ;;  %v4297_v4 = vrot.slane %v4294_v56, 2  ;;  %v4300_v33 = vrot.slane %v4294_v56, 4  ;;  %v4303_v34 = vrot.slane %v4294_v56, 6  ;;  %v1943_v43 = vmul.f32 %v4294_v56, %v4294_v56 }
 0x508   :  { %1879 = vst [vmem:[#allocation1 + $0x21] ss:$4 sm:$0xff] %v4294_v56 }
 0x509   :  { %4931 = vst [vmem:[#allocation13_spill] sm:$0xff] %v4297_v4  ;;  %v1946_v60 = vmul.f32 %v4303_v34, %v4303_v34  ;;  %v1944_v48 = vmul.f32 %v4297_v4, %v4297_v4  ;;  %v1945_v49 = vmul.f32 %v4300_v33, %v4300_v33 }
 0x50a   :  { %4932 = vst [vmem:[#allocation17_spill] sm:$0xff] %v4300_v33 }
 0x50b   :  { %1880 = vst [vmem:[#allocation1 + $0x22] ss:$4 sm:$0xff] %v4297_v4 }
 0x50c   :  { %1881 = vst [vmem:[#allocation1 + $0x23] ss:$4 sm:$0xff] %v4300_v33 }
 0x50d   :  { %1883 = vst [vmem:[#allocation1] ss:$4 sm:$0xff] %v4303_v34 }
 0x511   :  { %v1803_v57 = vpop.f32.mrf.mxu1 }
 0x512   :  { %v1804_v29 = vadd.f32 %v1803_v57, %v1699_v52  ;;  %v1901_v52 = vadd.f32 %v1900_v1, %v1899_v38 }
 0x513   :  { %v1882_v62 = vld.sshfl [vmem:[#allocation1 + $0x20] sm:$0xff pattern:$0x73625140] }
 0x514   :  { %v4312_v39 = vadd.f32 %v4239_v16, %v1804_v29  ;;  %v1911_v25 = vsel %vm1898_vm4, %v1882_v62, 0.0  ;;  %v3166_v29 = vmov 22.0   ;;  %v1904_v62 = vadd.f32 %v1903_v42, %v1901_v52 }
 0x515   :  { %3062 = vrcp.f32 %v3166_v29 }
 0x516   :  { %1884 = vst [vmem:[#allocation1 + $0x1] ss:$4 sm:$0xff] %v4312_v39  ;;  %v4316_v35 = vrot.slane %v4312_v39, 2  ;;  %v4319_v3 = vrot.slane %v4312_v39, 4  ;;  %v4322_v58 = vrot.slane %v4312_v39, 6  ;;  %v1947_v5 = vmul.f32 %v4312_v39, %v4312_v39 }
 0x518   :  { %1885 = vst [vmem:[#allocation1 + $0x2] ss:$4 sm:$0xff] %v4316_v35  ;;  %v1948_v31 = vmul.f32 %v4316_v35, %v4316_v35  ;;  %v1949_v9 = vmul.f32 %v4319_v3, %v4319_v3 }
 0x519   :  { %1886 = vst [vmem:[#allocation1 + $0x3] ss:$4 sm:$0xff] %v4319_v3 }
 0x51a   :  { %1887 = vst [vmem:[#allocation1 + $0x20] ss:$4 sm:$0xff] %v4322_v58 }
 0x51c   :  { %v1806_v2 = vpop.f32.mrf.mxu1 }
 0x51d   :  { %v1807_v11 = vadd.f32 %v1806_v2, %v1702_v7 }
 0x51f   :  { %v4328_v10 = vadd.f32 %v4239_v16, %v1807_v11  ;;  %v1942_v16 = vmul.f32 %v4285_v26, %v4285_v26  ;;  %v1950_v11 = vmul.f32 %v4322_v58, %v4322_v58 }
 0x520   :  { %v1890_v20 = vld.sshfl [vmem:[#allocation1] sm:$0xff pattern:$0x73625140] }
 0x521   :  { %1888 = vst [vmem:[#allocation1 + $0x21] ss:$4 sm:$0xff] %v4328_v10  ;;  %v4338_v41 = vrot.slane %v4328_v10, 2  ;;  %v1912_v24 = vsel %vm1898_vm4, %v1890_v20, 0.0  ;;  %v1951_v22 = vmul.f32 %v4328_v10, %v4328_v10  ;;  %v1905_v20 = vrot.slane %v1904_v62, 4 }
 0x522   :  { %1975 = vst [vmem:[#allocation1] ss:$4 sm:$0xff] %v1931_v50  ;;  %v1913_v19 = vadd.f32 %v1912_v24, %v1911_v25 }
 0x523   :  { %1977 = vst [vmem:[#allocation1 + $0x1] ss:$4 sm:$0xff] %v1932_v15 }
 0x524   :  { %1979 = vst [vmem:[#allocation1 + $0x2] ss:$4 sm:$0xff] %v1933_v53  ;;  %v1952_v53 = vmul.f32 %v4338_v41, %v4338_v41 }
 0x525   :  { %1981 = vst [vmem:[#allocation1 + $0x3] ss:$4 sm:$0xff] %v1934_v46  ;;  %v3063_v46 = vpop.eup %3062 }
 0x526   :  { %1889 = vst [vmem:[#allocation1 + $0x22] ss:$4 sm:$0xff] %v4338_v41  ;;  %vm1927_vm8 = vweird.f32 %v3063_v46 }
 0x52c   :  { %v1990_v8 = vld.sshfl [vmem:[#allocation1] sm:$0xff pattern:$0x73625140] }
 0x52d   :  { %1992 = vst [vmem:[#allocation1] ss:$4 sm:$0xff] %v1939_v63  ;;  %v1891_v13 = vld.sshfl [vmem:[#allocation1 + $0x20] sm:$0xff pattern:$0x73625140]  ;;  %v2016_v7 = vsel %vm1898_vm4, %v1990_v8, 0.0 }
 0x52e   :  { %1993 = vst [vmem:[#allocation1 + $0x1] ss:$4 sm:$0xff] %v1940_v0  ;;  %v1914_v6 = vsel %vm1902_vm6, %v1891_v13, 0.0  ;;  %v1906_v13 = vadd.f32 %v1905_v20, %v1904_v62 }
 0x52f   :  { %1994 = vst [vmem:[#allocation1 + $0x2] ss:$4 sm:$0xff] %v1941_v40  ;;  %v1915_v51 = vadd.f32 %v1914_v6, %v1913_v19  ;;  %v1923_v40 = vmul.f32 22.0, %v3063_v46 }
 0x530   :  { %1983 = vst [vmem:[#allocation1 + $0x20] ss:$4 sm:$0xff] %v1935_v21 }
 0x531   :  { %1985 = vst [vmem:[#allocation1 + $0x21] ss:$4 sm:$0xff] %v1936_v27  ;;  %v1916_v2 = vrot.slane %v1915_v51, 4 }
 0x532   :  { %1987 = vst [vmem:[#allocation1 + $0x22] ss:$4 sm:$0xff] %v1937_v55 }
 0x533   :  { %1989 = vst [vmem:[#allocation1 + $0x23] ss:$4 sm:$0xff] %v1938_v28  ;;  %v1917_v63 = vadd.f32 %v1916_v2, %v1915_v51 }
 0x535   :  { %v1918_v21 = vrot.slane %v1917_v63, 2 }
 0x536   :  { %v1995_v30 = vld.sshfl [vmem:[#allocation1] sm:$0xff pattern:$0x73625140] }
 0x537   :  { %2001 = vst [vmem:[#allocation1] ss:$4 sm:$0xff] %v1946_v60  ;;  %v2019_v50 = vsel %vm1902_vm6, %v1995_v30, 0.0  ;;  %v1924_v60 = vsub.f32 1.0, %v1923_v40  ;;  %v1919_v30 = vadd.f32 %v1918_v21, %v1917_v63  ;;  %v1817_v21 = vld [vmem:[%s4872_s3 + $0x7] sm:$0x1] }
 0x538   :  { %2002 = vst [vmem:[#allocation1 + $0x1] ss:$4 sm:$0xff] %v1947_v5  ;;  %v1907_v5 = vrot.slane %v1906_v13, 2 }
 0x539   :  { %2003 = vst [vmem:[#allocation1 + $0x2] ss:$4 sm:$0xff] %v1948_v31 }
 0x53a   :  { %2004 = vst [vmem:[#allocation1 + $0x3] ss:$4 sm:$0xff] %v1949_v9  ;;  %v1991_v37 = vld.sshfl [vmem:[#allocation1 + $0x20] sm:$0xff pattern:$0x73625140] }
 0x53b   :  { %1996 = vst [vmem:[#allocation1 + $0x20] ss:$4 sm:$0xff] %v1942_v16  ;;  %v2017_v57 = vsel %vm1898_vm4, %v1991_v37, 0.0  ;;  %v1925_v37 = vmul.f32 %v3063_v46, %v1924_v60 }
 0x53c   :  { %1997 = vst [vmem:[#allocation1 + $0x21] ss:$4 sm:$0xff] %v1943_v43  ;;  %v2018_v44 = vadd.f32 %v2017_v57, %v2016_v7 }
 0x53d   :  { %1998 = vst [vmem:[#allocation1 + $0x22] ss:$4 sm:$0xff] %v1944_v48  ;;  %v1908_v48 = vadd.f32 %v1907_v5, %v1906_v13  ;;  %v1926_v19 = vadd.f32 %v3063_v46, %v1925_v37  ;;  %v1818_v5 = vld [vmem:[%s4872_s3 + $0x8] sm:$0x1] }
 0x53e   :  { %1999 = vst [vmem:[#allocation1 + $0x23] ss:$4 sm:$0xff] %v1945_v49  ;;  %v2020_v15 = vadd.f32 %v2019_v50, %v2018_v44  ;;  %v1920_v49 = vrot.slane %v1919_v30, 1  ;;  %v4424_v37 = vperm.slane %v1818_v5, 0 }
 0x53f   :  { %v1909_v38 = vrot.slane %v1908_v48, 1  ;;  %v1928_v29 = vsel %vm1927_vm8, %v3063_v46, %v1926_v19  ;;  %vm2354_vm8 = vcmask 1041408  }
 0x540   :  { %v2021_v0 = vrot.slane %v2020_v15, 4  ;;  %v1921_v42 = vadd.f32 %v1920_v49, %v1919_v30 }
 0x541   :  { %v2008_v8 = vld.sshfl [vmem:[#allocation1] sm:$0xff pattern:$0x73625140]  ;;  %v1910_v62 = vadd.f32 %v1909_v38, %v1908_v48 }
 0x542   :  { %v2028_v55 = vsel %vm1898_vm4, %v2008_v8, 0.0  ;;  %v2022_v28 = vadd.f32 %v2021_v0, %v2020_v15  ;;  %v4394_v7 = vmul.f32 %v1928_v29, %v1921_v42 }
 0x543   :  { %v4396_v50 = vmul.f32 %v1928_v29, %v1910_v62 }
 0x544   :  { %v2023_v43 = vrot.slane %v2022_v28, 2  ;;  %v4414_v30 = vrot.slane %v4394_v7, 2 }
 0x545   :  { %v2000_v23 = vld.sshfl [vmem:[#allocation1 + $0x20] sm:$0xff pattern:$0x73625140] }
 0x546   :  { %2005 = vst [vmem:[#allocation1 + $0x20] ss:$4 sm:$0xff] %v1950_v11  ;;  %v2027_v27 = vsel %vm1898_vm4, %v2000_v23, 0.0  ;;  %v2024_v6 = vadd.f32 %v2023_v43, %v2022_v28  ;;  %v2041_v23 = vmul.f32 %v4394_v7, %v4394_v7  ;;  %v4408_v28 = vperm.slane %v1817_v21, 0 }
 0x547   :  { %2006 = vst [vmem:[#allocation1 + $0x21] ss:$4 sm:$0xff] %v1951_v22  ;;  %v2029_v9 = vadd.f32 %v2028_v55, %v2027_v27  ;;  %v2074_v49 = vsub.f32 %v4312_v39, %v4414_v30  ;;  %v2078_v42 = vsub.f32 %v4328_v10, %v4414_v30 }
 0x548   :  { %2007 = vst [vmem:[#allocation1 + $0x22] ss:$4 sm:$0xff] %v1952_v53  ;;  %v2025_v52 = vrot.slane %v2024_v6, 1  ;;  %v2040_v53 = vmul.f32 %v4396_v50, %v4396_v50 }
 0x54a   :  { %v2026_v44 = vadd.f32 %v2025_v52, %v2024_v6  ;;  %v4450_v52 = vrot.slane %v4408_v28, 6 }
 0x54c   :  { %v2038_v15 = vmul.f32 %v2026_v44, %v1928_v29 }
 0x54e   :  { %v2042_v0 = vsub.f32 %v2038_v15, %v2040_v53 }
 0x54f   :  { %v2009_v31 = vld.sshfl [vmem:[#allocation1 + $0x20] sm:$0xff pattern:$0x73625140] }
 0x550   :  { %v2030_v16 = vsel %vm1902_vm6, %v2009_v31, 0.0  ;;  %v4402_v46 = vadd.f32 1e-05, %v2042_v0  ;;  %v4417_v31 = vrot.slane %v4394_v7, 4 }
 0x551   :  { %v2031_v24 = vadd.f32 %v2030_v16, %v2029_v9  ;;  %v4889_v9 = vrot.slane %v4394_v7, 6 }
 0x552   :  { %4933 = vst [vmem:[#allocation14_spill] sm:$0xff] %v4417_v31  ;;  %v2075_v19 = vsub.f32 %v4316_v35, %v4417_v31  ;;  %v2079_v39 = vsub.f32 %v4338_v41, %v4417_v31  ;;  %v4459_v41 = vrot.slane %v4424_v37, 2  ;;  %vm2088_vm13 = vweird.f32 %v4402_v46 }
 0x553   :  { %v2032_v25 = vrot.slane %v2031_v24, 4  ;;  %v2076_v38 = vsub.f32 %v4319_v3, %v4889_v9 }
 0x555   :  { %v2033_v1 = vadd.f32 %v2032_v25, %v2031_v24  ;;  %v4422_v24 = vrot.slane %v4408_v28, 2 }
 0x557   :  { %v2034_v51 = vrot.slane %v2033_v1, 2 }
 0x559   :  { %v2035_v57 = vadd.f32 %v2034_v51, %v2033_v1  ;;  %v4447_v51 = vrot.slane %v4408_v28, 4 }
 0x55b   :  { %v2036_v2 = vrot.slane %v2035_v57, 1 }
 0x55d   :  { %v2037_v11 = vadd.f32 %v2036_v2, %v2035_v57  ;;  %v4462_v2 = vrot.slane %v4424_v37, 4 }
 0x55f   :  { %v2039_v22 = vmul.f32 %v2037_v11, %v1928_v29 }
 0x561   :  { %v2043_v20 = vsub.f32 %v2039_v22, %v2041_v23  ;;  %v4468_v23 = vrot.slane %v4424_v37, 6 }
 0x563   :  { %v2081_v63 = vadd.f32 1e-05, %v2043_v20 }
 0x565   :  { %3064 = vrsqrt.f32 %v2081_v63  ;;  %vm2098_vm10 = vweird.f32 %v2081_v63 }
 0x566   :  { %3066 = vrsqrt.f32 %v4402_v46 }
 0x56b   :  { %v3065_v8 = vpop.eup %3064 }
 0x56c   :  { %v2093_v40 = vmul.f32 %v3065_v8, %v2081_v63  ;;  %v3067_v55 = vpop.eup %3066  ;;  %vm2099_vm9 = vweird.f32 %v3065_v8  ;;  %v2073_v63 = vsub.f32 %v4303_v34, %v4394_v7 }
 0x56d   :  { %vm2100_vm11 = vmor %vm2098_vm10, %vm2099_vm9  ;;  %v2083_v43 = vmul.f32 %v3067_v55, %v4402_v46  ;;  %vm2089_vm12 = vweird.f32 %v3067_v55  ;;  %v2062_v46 = vsub.f32 %v4258_v59, %v4396_v50 }
 0x56e   :  { %v2094_v13 = vmul.f32 %v3065_v8, %v2093_v40  ;;  %vm2090_vm14 = vmor %vm2088_vm13, %vm2089_vm12  ;;  %vm2358_vm13 = vcmask 1042433  }
 0x56f   :  { %v2084_v29 = vmul.f32 %v3067_v55, %v2083_v43 }
 0x570   :  { %v2095_v27 = vmul.f32 0.5, %v2094_v13 }
 0x571   :  { %v2085_v53 = vmul.f32 0.5, %v2084_v29  ;;  %v2058_v29 = vsub.f32 %v4242_v61, %v4396_v50 }
 0x572   :  { %v2096_v60 = vsub.f32 1.5, %v2095_v27  ;;  %v2077_v27 = vsub.f32 %v4322_v58, %v4394_v7 }
 0x573   :  { %v2086_v5 = vsub.f32 1.5, %v2085_v53 }
 0x574   :  { %v2097_v16 = vmul.f32 %v3065_v8, %v2096_v60 }
 0x575   :  { %v2087_v43 = vmul.f32 %v3067_v55, %v2086_v5 }
 0x576   :  { %v4426_v48 = vsel %vm2100_vm11, %v3065_v8, %v2097_v16 }
 0x577   :  { %4934 = vst [vmem:[#allocation19_spill] sm:$0xff] %v4426_v48  ;;  %v4431_v25 = vrot.slane %v4426_v48, 2  ;;  %v4434_v6 = vrot.slane %v4426_v48, 4  ;;  %v4888_v1 = vrot.slane %v4426_v48, 6  ;;  %v2131_v60 = vmul.f32 %v4426_v48, %v2073_v63 }
 0x578   :  { %v2135_v16 = vmul.f32 %v4426_v48, %v2077_v27 }
 0x579   :  { %4935 = vst [vmem:[#allocation16_spill] sm:$0xff] %v4431_v25  ;;  %v2132_v57 = vmul.f32 %v4431_v25, %v2074_v49  ;;  %v2133_v35 = vmul.f32 %v4434_v6, %v2075_v19  ;;  %v2134_v3 = vmul.f32 %v4888_v1, %v2076_v38  ;;  %v2136_v62 = vmul.f32 %v4431_v25, %v2078_v42  ;;  %v2630_v42 = vld [vmem:[#allocation5 + $0x188] sm:$0xff] }
 0x57a   :  { %4936 = vst [vmem:[#allocation18_spill] sm:$0xff] %v4434_v6  ;;  %v2137_v10 = vmul.f32 %v4434_v6, %v2079_v39  ;;  %v2161_v34 = vmul.f32 %v4408_v28, %v2131_v60  ;;  %v4485_v49 = vrot.slane %v4396_v50, 2  ;;  %v4488_v19 = vrot.slane %v4396_v50, 4  ;;  %2713 = vmatpush.msrb.mxu2 %v2630_v42 }
 0x57b   :  { %v2162_v44 = vmul.f32 %v4422_v24, %v2132_v57  ;;  %v2163_v11 = vmul.f32 %v4447_v51, %v2133_v35  ;;  %v2164_v22 = vmul.f32 %v4450_v52, %v2134_v3  ;;  %v2166_v15 = vmul.f32 %v4422_v24, %v2136_v62 }
 0x57c   :  { %v2167_v20 = vmul.f32 %v4447_v51, %v2137_v10  ;;  %v2165_v38 = vmul.f32 %v4408_v28, %v2135_v16  ;;  %v2191_v58 = vadd.f32 %v4424_v37, %v2161_v34  ;;  %v4493_v39 = vsel %vm2090_vm14, %v3067_v55, %v2087_v43 }
 0x57d   :  { %v2192_v0 = vadd.f32 %v4459_v41, %v2162_v44  ;;  %v2193_v8 = vadd.f32 %v4462_v2, %v2163_v11  ;;  %v2194_v40 = vadd.f32 %v4468_v23, %v2164_v22  ;;  %v2196_v13 = vadd.f32 %v4459_v41, %v2166_v15 }
 0x57e   :  { %v2197_v21 = vadd.f32 %v4462_v2, %v2167_v20  ;;  %v4890_v57 = vrot.slane %v4396_v50, 6  ;;  %v2059_v35 = vsub.f32 %v4245_v54, %v4485_v49  ;;  %v2060_v3 = vsub.f32 %v4248_v36, %v4488_v19 }
 0x57f   :  { %v2195_v62 = vadd.f32 %v4424_v37, %v2165_v38  ;;  %v4508_v10 = vrot.slane %v4493_v39, 2  ;;  %v4511_v44 = vrot.slane %v4493_v39, 4  ;;  %v4891_v61 = vrot.slane %v4493_v39, 6 }
 0x580   :  { %vm2213_vm15 = vcmp.ge.f32.partialorder %v2191_v58, 0.0  ;;  %v2235_v54 = vmul.f32 0.01, %v2191_v58  ;;  %v2236_v11 = vmul.f32 0.01, %v2192_v0  ;;  %v2116_v36 = vmul.f32 %v4493_v39, %v2058_v29 }
 0x581   :  { %vm2214_vm1 = vcmp.ge.f32.partialorder %v2192_v0, 0.0  ;;  %vm2215_vm6 = vcmp.ge.f32.partialorder %v2193_v8, 0.0  ;;  %v2237_v59 = vmul.f32 0.01, %v2193_v8  ;;  %v2238_v22 = vmul.f32 0.01, %v2194_v40 }
 0x582   :  { %v2061_v15 = vsub.f32 %v4251_v45, %v4890_v57  ;;  %v2239_v20 = vmul.f32 0.01, %v2195_v62  ;;  %v2240_v53 = vmul.f32 0.01, %v2196_v13  ;;  %v2241_v63 = vmul.f32 0.01, %v2197_v21 }
 0x583   :  { %vm2216_vm9 = vcmp.ge.f32.partialorder %v2194_v40, 0.0  ;;  %vm2217_vm10 = vcmp.ge.f32.partialorder %v2195_v62, 0.0  ;;  %vm2218_vm11 = vcmp.ge.f32.partialorder %v2196_v13, 0.0  ;;  %vm2219_vm12 = vcmp.ge.f32.partialorder %v2197_v21, 0.0 }
 0x584   :  { %v2257_v27 = vsel %vm2213_vm15, %v2191_v58, %v2235_v54  ;;  %v2258_v60 = vsel %vm2214_vm1, %v2192_v0, %v2236_v11  ;;  %v2117_v5 = vmul.f32 %v4508_v10, %v2059_v35  ;;  %v4521_v16 = vmul.f32 %v4493_v39, %v2062_v46 }
 0x585   :  { %v2259_v34 = vsel %vm2215_vm6, %v2193_v8, %v2237_v59  ;;  %v4525_v45 = vmul.f32 %v4511_v44, %v2060_v3  ;;  %v4529_v43 = vmul.f32 %v4891_v61, %v2061_v15  ;;  %v4532_v38 = vmul.f32 %v4408_v28, %v2116_v36 }
 0x586   :  { %v2260_v42 = vsel %vm2216_vm9, %v2194_v40, %v2238_v22  ;;  %v2261_v58 = vsel %vm2217_vm10, %v2195_v62, %v2239_v20  ;;  %v2262_v0 = vsel %vm2218_vm11, %v2196_v13, %v2240_v53  ;;  %v4534_v29 = vsel %vm2219_vm12, %v2197_v21, %v2241_v63 }
 0x587   :  { %v2331_v35 = vrot.slane %v2257_v27, 1  ;;  %v2332_v46 = vrot.slane %v2257_v27, 2  ;;  %v2333_v54 = vrot.slane %v2257_v27, 3  ;;  %v2334_v11 = vrot.slane %v2258_v60, 1 }
 0x588   :  { %v2335_v8 = vrot.slane %v2258_v60, 2  ;;  %v2336_v59 = vrot.slane %v2258_v60, 3  ;;  %v2337_v3 = vrot.slane %v2259_v34, 1  ;;  %v2338_v1 = vrot.slane %v2259_v34, 2 }
 0x589   :  { %v2339_v9 = vrot.slane %v2259_v34, 3  ;;  %v2340_v57 = vrot.slane %v2260_v42, 1  ;;  %v2341_v15 = vrot.slane %v2260_v42, 2  ;;  %v2342_v61 = vrot.slane %v2260_v42, 3 }
 0x58a   :  { %v2343_v55 = vrot.slane %v2261_v58, 1  ;;  %v2344_v36 = vrot.slane %v2261_v58, 2  ;;  %v2345_v6 = vrot.slane %v2261_v58, 3  ;;  %v2346_v40 = vrot.slane %v2262_v0, 1 }
 0x58b   :  { %v2347_v62 = vrot.slane %v2262_v0, 2  ;;  %v2459_v13 = vsel %vm658_vm2, %v2257_v27, %v2331_v35  ;;  %v2460_v21 = vsel %vm938_vm7, %v2332_v46, %v2333_v54  ;;  %v2462_v22 = vsel %vm1461_vm5, %v2257_v27, %v2331_v35 }
 0x58c   :  { %v2348_v20 = vrot.slane %v2262_v0, 3  ;;  %v4540_v53 = vsel %vm2354_vm8, %v2459_v13, %v2460_v21  ;;  %v2463_v63 = vsel %vm1466_vm3, %v2332_v46, %v2333_v54  ;;  %v2466_v33 = vsel %vm658_vm2, %v2258_v60, %v2334_v11 }
 0x58d   :  { %v4545_v25 = vsel %vm2358_vm13, %v2462_v22, %v2463_v63  ;;  %v2467_v48 = vsel %vm938_vm7, %v2335_v8, %v2336_v59  ;;  %v2469_v4 = vsel %vm1461_vm5, %v2258_v60, %v2334_v11  ;;  %v2470_v31 = vsel %vm1466_vm3, %v2335_v8, %v2336_v59 }
 0x58e   :  { %v2349_v56 = vrot.slane %v4534_v29, 1  ;;  %v4552_v27 = vsel %vm2354_vm8, %v2466_v33, %v2467_v48  ;;  %v4555_v35 = vsel %vm2358_vm13, %v2469_v4, %v2470_v31  ;;  %v2473_v46 = vsel %vm658_vm2, %v2259_v34, %v2337_v3 }
 0x58f   :  { %v2350_v54 = vrot.slane %v4534_v29, 2  ;;  %v2474_v13 = vsel %vm938_vm7, %v2338_v1, %v2339_v9  ;;  %v2476_v21 = vsel %vm1461_vm5, %v2259_v34, %v2337_v3  ;;  %v2477_v60 = vsel %vm1466_vm3, %v2338_v1, %v2339_v9 }
 0x590   :  { %v4563_v11 = vsel %vm2354_vm8, %v2473_v46, %v2474_v13  ;;  %v4566_v8 = vsel %vm2358_vm13, %v2476_v21, %v2477_v60  ;;  %v2480_v33 = vsel %vm658_vm2, %v2260_v42, %v2340_v57  ;;  %v2481_v4 = vsel %vm938_vm7, %v2341_v15, %v2342_v61 }
 0x591   :  { %v2351_v31 = vrot.slane %v4534_v29, 3  ;;  %v4572_v48 = vsel %vm2354_vm8, %v2480_v33, %v2481_v4  ;;  %v2483_v59 = vsel %vm1461_vm5, %v2260_v42, %v2340_v57  ;;  %v2484_v34 = vsel %vm1466_vm3, %v2341_v15, %v2342_v61 }
 0x592   :  { %v4577_v9 = vsel %vm2358_vm13, %v2483_v59, %v2484_v34  ;;  %v2487_v1 = vsel %vm658_vm2, %v2261_v58, %v2343_v55  ;;  %v2488_v3 = vsel %vm938_vm7, %v2344_v36, %v2345_v6  ;;  %v2490_v22 = vsel %vm1461_vm5, %v2261_v58, %v2343_v55 }
 0x593   :  { %v4583_v63 = vsel %vm2354_vm8, %v2487_v1, %v2488_v3  ;;  %v2491_v46 = vsel %vm1466_vm3, %v2344_v36, %v2345_v6  ;;  %v2494_v13 = vsel %vm658_vm2, %v2262_v0, %v2346_v40  ;;  %v2147_v57 = vmul.f32 %v4422_v24, %v2117_v5  ;;  %v2626_v3 = vld [vmem:[#allocation5 + $0x168] sm:$0xff] }
 0x594   :  { %v4589_v61 = vsel %vm2358_vm13, %v2490_v22, %v2491_v46  ;;  %v2495_v42 = vsel %vm938_vm7, %v2347_v62, %v2348_v20  ;;  %v2497_v15 = vsel %vm1461_vm5, %v2262_v0, %v2346_v40  ;;  %v2498_v21 = vsel %vm1466_vm3, %v2347_v62, %v2348_v20  ;;  %v2625_v22 = vld [vmem:[#allocation5 + $0x160] sm:$0xff]  ;;  %2687 = vmatpush.msrb.mxu3 %v2626_v3 }
 0x595   :  { %v4595_v55 = vsel %vm2354_vm8, %v2494_v13, %v2495_v42  ;;  %v4598_v58 = vsel %vm2358_vm13, %v2497_v15, %v2498_v21  ;;  %v2501_v6 = vsel %vm658_vm2, %v4534_v29, %v2349_v56  ;;  %v2148_v5 = vmul.f32 %v4447_v51, %v4525_v45  ;;  %v2629_v46 = vld [vmem:[#allocation5 + $0x180] sm:$0xff] }
 0x596   :  { %v2502_v36 = vsel %vm938_vm7, %v2350_v54, %v2351_v31  ;;  %v2504_v60 = vsel %vm1461_vm5, %v4534_v29, %v2349_v56  ;;  %v2505_v0 = vsel %vm1466_vm3, %v2350_v54, %v2351_v31  ;;  %v2149_v40 = vmul.f32 %v4450_v52, %v4529_v43  ;;  %2714 = vmatpush.msrb.mxu2 %v2629_v46 }
 0x597   :  { %v4611_v62 = vsel %vm2354_vm8, %v2501_v6, %v2502_v36  ;;  %v4614_v20 = vsel %vm2358_vm13, %v2504_v60, %v2505_v0  ;;  %v2176_v33 = vadd.f32 %v4424_v37, %v4532_v38  ;;  %v4937_v45 = vsub.f32 %v4261_v14, %v4485_v49  ;;  %v2624_v6 = vld [vmem:[#allocation5 + $0x158] sm:$0xff]  ;;  %2688 = vmatpush.msrb.mxu3 %v2625_v22 }
 0x598   :  { %v2150_v56 = vmul.f32 %v4408_v28, %v4521_v16  ;;  %v2177_v29 = vadd.f32 %v4459_v41, %v2147_v57  ;;  %v2064_v43 = vsub.f32 %v4264_v17, %v4488_v19  ;;  %v2178_v54 = vadd.f32 %v4462_v2, %v2148_v5 }
 0x599   :  { %v2121_v4 = vmul.f32 %v4508_v10, %v4937_v45  ;;  %v2179_v31 = vadd.f32 %v4468_v23, %v2149_v40  ;;  %v2066_v38 = vsub.f32 %v4274_v47, %v4396_v50  ;;  %v2220_v14 = vmul.f32 0.01, %v2176_v33  ;;  %2689 = vmatpush.msrb.mxu3 %v2624_v6 }
 0x59a   :  { %v2122_v59 = vmul.f32 %v4511_v44, %v2064_v43  ;;  %v2180_v1 = vadd.f32 %v4424_v37, %v2150_v56  ;;  %vm2198_vm14 = vcmp.ge.f32.partialorder %v2176_v33, 0.0  ;;  %v2221_v16 = vmul.f32 0.01, %v2177_v29 }
 0x59b   :  { %v2151_v34 = vmul.f32 %v4422_v24, %v2121_v4  ;;  %v2067_v17 = vsub.f32 %v4279_v32, %v4485_v49  ;;  %v4938_v13 = vrot.slane %v4396_v50, 6  ;;  %vm2199_vm15 = vcmp.ge.f32.partialorder %v2177_v29, 0.0 }
 0x59c   :  { %v2222_v47 = vmul.f32 0.01, %v2178_v54  ;;  %v2068_v42 = vsub.f32 %v4282_v12, %v4488_v19  ;;  %v2124_v15 = vmul.f32 %v4493_v39, %v2066_v38  ;;  %vm2200_vm1 = vcmp.ge.f32.partialorder %v2178_v54, 0.0  ;;  %v2623_v19 = vld [vmem:[#allocation5 + $0x150] sm:$0xff] }
 0x59d   :  { %v2065_v57 = vsub.f32 %v4267_v18, %v4938_v13  ;;  %v2223_v21 = vmul.f32 0.01, %v2179_v31  ;;  %v4939_v5 = vrot.slane %v4493_v39, 6  ;;  %v2152_v32 = vmul.f32 %v4447_v51, %v2122_v59  ;;  %2690 = vmatpush.msrb.mxu3 %v2623_v19 }
 0x59e   :  { %vm2201_vm6 = vcmp.ge.f32.partialorder %v2179_v31, 0.0  ;;  %v2242_v18 = vsel %vm2198_vm14, %v2176_v33, %v2220_v14  ;;  %v4647_v50 = vadd.f32 %v4459_v41, %v2151_v34  ;;  %v2224_v49 = vmul.f32 0.01, %v2180_v1 }
 0x59f   :  { %v2123_v36 = vmul.f32 %v4939_v5, %v2065_v57  ;;  %v2243_v12 = vsel %vm2199_vm15, %v2177_v29, %v2221_v16  ;;  %v4651_v60 = vmul.f32 %v4508_v10, %v2067_v17  ;;  %v4654_v0 = vmul.f32 %v4511_v44, %v2068_v42 }
 0x5a0   :  { %vm2202_vm9 = vcmp.ge.f32.partialorder %v2180_v1, 0.0  ;;  %v2244_v39 = vsel %vm2200_vm1, %v2178_v54, %v2222_v47  ;;  %v2245_v40 = vsel %vm2201_vm6, %v2179_v31, %v2223_v21  ;;  %v2286_v33 = vrot.slane %v2242_v18, 1 }
 0x5a1   :  { %v2287_v45 = vrot.slane %v2242_v18, 2  ;;  %v2288_v4 = vrot.slane %v2242_v18, 3  ;;  %v2153_v56 = vmul.f32 %v4450_v52, %v2123_v36  ;;  %v2154_v43 = vmul.f32 %v4408_v28, %v2124_v15 }
 0x5a2   :  { %v4660_v29 = vadd.f32 %v4462_v2, %v2152_v32  ;;  %v2289_v10 = vrot.slane %v2243_v12, 1  ;;  %vm2203_vm10 = vcmp.ge.f32.partialorder %v4647_v50, 0.0  ;;  %v2225_v44 = vmul.f32 0.01, %v4647_v50 }
 0x5a3   :  { %v4664_v38 = vsel %vm2202_vm9, %v2180_v1, %v2224_v49  ;;  %v2290_v54 = vrot.slane %v2243_v12, 2  ;;  %v2291_v31 = vrot.slane %v2243_v12, 3  ;;  %v2292_v59 = vrot.slane %v2244_v39, 1 }
 0x5a4   :  { %v2293_v14 = vrot.slane %v2244_v39, 2  ;;  %v2294_v34 = vrot.slane %v2244_v39, 3  ;;  %v2295_v16 = vrot.slane %v2245_v40, 1  ;;  %v2296_v3 = vrot.slane %v2245_v40, 2 }
 0x5a5   :  { %v2297_v22 = vrot.slane %v2245_v40, 3  ;;  %v2352_v46 = vsel %vm658_vm2, %v2242_v18, %v2286_v33  ;;  %v2353_v17 = vsel %vm938_vm7, %v2287_v45, %v2288_v4  ;;  %v2356_v57 = vsel %vm1461_vm5, %v2242_v18, %v2286_v33 }
 0x5a6   :  { %v2355_v13 = vsel %vm2354_vm8, %v2352_v46, %v2353_v17  ;;  %v2357_v47 = vsel %vm1466_vm3, %v2287_v45, %v2288_v4  ;;  %v2361_v1 = vsel %vm658_vm2, %v2243_v12, %v2289_v10  ;;  %v2362_v15 = vsel %vm938_vm7, %v2290_v54, %v2291_v31 }
 0x5a7   :  { %v2359_v42 = vsel %vm2358_vm13, %v2356_v57, %v2357_v47  ;;  %v2364_v21 = vsel %vm1461_vm5, %v2243_v12, %v2289_v10  ;;  %v2365_v6 = vsel %vm1466_vm3, %v2290_v54, %v2291_v31  ;;  %2508 = vst [vmem:[#allocation1] ss:$9 sm:$0xff] %v2355_v13  ;;  %v2363_v36 = vsel %vm2354_vm8, %v2361_v1, %v2362_v15 }
 0x5a8   :  { %v2360_v5 = vrot.slane %v2359_v42, 1  ;;  %v2366_v32 = vsel %vm2358_vm13, %v2364_v21, %v2365_v6  ;;  %v2368_v18 = vsel %vm658_vm2, %v2244_v39, %v2292_v59  ;;  %v2369_v19 = vsel %vm938_vm7, %v2293_v14, %v2294_v34  ;;  %2512 = vst [vmem:[#allocation1 + $0x2] ss:$9 sm:$0xff] %v2363_v36 }
 0x5a9   :  { %v2367_v49 = vrot.slane %v2366_v32, 1  ;;  %v2371_v33 = vsel %vm1461_vm5, %v2244_v39, %v2292_v59  ;;  %v2372_v45 = vsel %vm1466_vm3, %v2293_v14, %v2294_v34  ;;  %v2370_v12 = vsel %vm2354_vm8, %v2368_v18, %v2369_v19  ;;  %v4940_v32 = vld [vmem:[#allocation15_spill] sm:$0xff]  ;;  %v4942_v19 = vld [vmem:[#allocation13_spill] sm:$0xff] }
 0x5aa   :  { %v2373_v4 = vsel %vm2358_vm13, %v2371_v33, %v2372_v45  ;;  %v2375_v10 = vsel %vm658_vm2, %v2245_v40, %v2295_v16  ;;  %v2376_v54 = vsel %vm938_vm7, %v2296_v3, %v2297_v22  ;;  %2510 = vst [vmem:[#allocation1 + $0x1] ss:$9 sm:$0xff] %v2360_v5  ;;  %v2378_v17 = vsel %vm1461_vm5, %v2245_v40, %v2295_v16 }
 0x5ab   :  { %v2374_v31 = vrot.slane %v2373_v4, 1  ;;  %v2377_v46 = vsel %vm2354_vm8, %v2375_v10, %v2376_v54  ;;  %v2379_v13 = vsel %vm1466_vm3, %v2296_v3, %v2297_v22  ;;  %2514 = vst [vmem:[#allocation1 + $0x3] ss:$9 sm:$0xff] %v2367_v49  ;;  %v2298_v39 = vrot.slane %v4664_v38, 1  ;;  %v4941_v49 = vld [vmem:[#allocation14_spill] sm:$0xff] }
 0x5ac   :  { %v2299_v59 = vrot.slane %v4664_v38, 2  ;;  %v2300_v14 = vrot.slane %v4664_v38, 3  ;;  %v2380_v34 = vsel %vm2358_vm13, %v2378_v17, %v2379_v13  ;;  %2516 = vst [vmem:[#allocation1 + $0x4] ss:$9 sm:$0xff] %v2370_v12  ;;  %v2183_v57 = vadd.f32 %v4468_v23, %v2153_v56 }
 0x5ad   :  { %v2381_v47 = vrot.slane %v2380_v34, 1  ;;  %2518 = vst [vmem:[#allocation1 + $0x5] ss:$9 sm:$0xff] %v2374_v31  ;;  %v2155_v1 = vmul.f32 %v4422_v24, %v4651_v60  ;;  %v2247_v40 = vsel %vm2203_vm10, %v4647_v50, %v2225_v44  ;;  %v2156_v16 = vmul.f32 %v4447_v51, %v4654_v0 }
 0x5ae   :  { %2520 = vst [vmem:[#allocation1 + $0x6] ss:$9 sm:$0xff] %v2377_v46  ;;  %v2184_v3 = vadd.f32 %v4424_v37, %v2154_v43  ;;  %vm2204_vm11 = vcmp.ge.f32.partialorder %v4660_v29, 0.0  ;;  %v2226_v56 = vmul.f32 0.01, %v4660_v29  ;;  %v2385_v22 = vsel %vm1461_vm5, %v4664_v38, %v2298_v39 }
 0x5af   :  { %2522 = vst [vmem:[#allocation1 + $0x7] ss:$9 sm:$0xff] %v2381_v47  ;;  %v2386_v60 = vsel %vm1466_vm3, %v2299_v59, %v2300_v14  ;;  %v2227_v42 = vmul.f32 0.01, %v2183_v57  ;;  %v2301_v15 = vrot.slane %v2247_v40, 1  ;;  %v2302_v21 = vrot.slane %v2247_v40, 2 }
 0x5b0   :  { %v2303_v50 = vrot.slane %v2247_v40, 3  ;;  %v2069_v44 = vsub.f32 %v4285_v26, %v4394_v7  ;;  %v2185_v0 = vadd.f32 %v4459_v41, %v2155_v1  ;;  %vm2205_vm12 = vcmp.ge.f32.partialorder %v2183_v57, 0.0 }
 0x5b1   :  { %v2228_v43 = vmul.f32 0.01, %v2184_v3  ;;  %v2382_v6 = vsel %vm658_vm2, %v4664_v38, %v2298_v39  ;;  %v2383_v5 = vsel %vm938_vm7, %v2299_v59, %v2300_v14  ;;  %v2387_v36 = vsel %vm2358_vm13, %v2385_v22, %v2386_v60  ;;  %v4944_v14 = vld [vmem:[#allocation16_spill] sm:$0xff]  ;;  %v4946_v60 = vld [vmem:[#allocation17_spill] sm:$0xff] }
 0x5b2   :  { %v2070_v18 = vsub.f32 %v4940_v32, %v4414_v30  ;;  %v2071_v33 = vsub.f32 %v4942_v19, %v4941_v49  ;;  %vm2206_vm14 = vcmp.ge.f32.partialorder %v2184_v3, 0.0  ;;  %v2248_v26 = vsel %vm2204_vm11, %v4660_v29, %v2226_v56  ;;  %v4943_v29 = vld [vmem:[#allocation19_spill] sm:$0xff] }
 0x5b3   :  { %v4722_v45 = vadd.f32 %v4462_v2, %v2156_v16  ;;  %v2249_v12 = vsel %vm2205_vm12, %v2183_v57, %v2227_v42  ;;  %v2389_v38 = vsel %vm658_vm2, %v2247_v40, %v2301_v15  ;;  %v2390_v4 = vsel %vm938_vm7, %v2302_v21, %v2303_v50 }
 0x5b4   :  { %vm2207_vm15 = vcmp.ge.f32.partialorder %v2185_v0, 0.0  ;;  %v2229_v10 = vmul.f32 0.01, %v2185_v0  ;;  %v2384_v30 = vsel %vm2354_vm8, %v2382_v6, %v2383_v5  ;;  %v2388_v54 = vrot.slane %v2387_v36, 1 }
 0x5b5   :  { %v2250_v46 = vsel %vm2206_vm14, %v2184_v3, %v2228_v43  ;;  %v2304_v17 = vrot.slane %v2248_v26, 1  ;;  %v2305_v13 = vrot.slane %v2248_v26, 2  ;;  %v2306_v39 = vrot.slane %v2248_v26, 3  ;;  %v4947_v43 = vld [vmem:[#allocation18_spill] sm:$0xff] }
 0x5b6   :  { %v4727_v31 = vld [vmem:[#allocation1] sm:$0xff]  ;;  %v2127_v59 = vmul.f32 %v4943_v29, %v2069_v44  ;;  %v2128_v34 = vmul.f32 %v4944_v14, %v2070_v18  ;;  %v2307_v57 = vrot.slane %v2249_v12, 1  ;;  %v2391_v47 = vsel %vm2354_vm8, %v2389_v38, %v2390_v4 }
 0x5b7   :  { %2524 = vst [vmem:[#allocation1] ss:$9 sm:$0xff] %v2384_v30  ;;  %v2308_v1 = vrot.slane %v2249_v12, 2  ;;  %v2309_v16 = vrot.slane %v2249_v12, 3  ;;  %v2392_v56 = vsel %vm1461_vm5, %v2247_v40, %v2301_v15  ;;  %v2393_v22 = vsel %vm1466_vm3, %v2302_v21, %v2303_v50 }
 0x5b8   :  { %2525 = vst [vmem:[#allocation1 + $0x1] ss:$9 sm:$0xff] %v2388_v54  ;;  %v4945_v3 = vrot.slane %v4394_v7, 6  ;;  %v2129_v6 = vmul.f32 %v4947_v43, %v2071_v33  ;;  %v4739_v44 = vsel %vm2207_vm15, %v2185_v0, %v2229_v10  ;;  %v2310_v5 = vrot.slane %v2250_v46, 1 }
 0x5b9   :  { %2526 = vst [vmem:[#allocation1 + $0x2] ss:$9 sm:$0xff] %v2391_v47  ;;  %v2311_v36 = vrot.slane %v2250_v46, 2  ;;  %v2312_v32 = vrot.slane %v2250_v46, 3  ;;  %v2399_v18 = vsel %vm1461_vm5, %v2248_v26, %v2304_v17  ;;  %v2400_v49 = vsel %vm1466_vm3, %v2305_v13, %v2306_v39 }
 0x5ba   :  { %v2072_v42 = vsub.f32 %v4946_v60, %v4945_v3  ;;  %v4948_v40 = vrot.slane %v4943_v29, 6  ;;  %v2157_v21 = vmul.f32 %v4408_v28, %v2127_v59  ;;  %v2158_v7 = vmul.f32 %v4422_v24, %v2128_v34 }
 0x5bb   :  { %v2394_v50 = vsel %vm2358_vm13, %v2392_v56, %v2393_v22  ;;  %vm2208_vm1 = vcmp.ge.f32.partialorder %v4722_v45, 0.0  ;;  %v2230_v0 = vmul.f32 0.01, %v4722_v45  ;;  %v2406_v19 = vsel %vm1461_vm5, %v2249_v12, %v2307_v57 }
 0x5bc   :  { %v2130_v15 = vmul.f32 %v4948_v40, %v2072_v42  ;;  %v2407_v33 = vsel %vm1466_vm3, %v2308_v1, %v2309_v16  ;;  %v2313_v38 = vrot.slane %v4739_v44, 1  ;;  %v2396_v4 = vsel %vm658_vm2, %v2248_v26, %v2304_v17 }
 0x5bd   :  { %v2397_v10 = vsel %vm938_vm7, %v2305_v13, %v2306_v39  ;;  %v2401_v28 = vsel %vm2358_vm13, %v2399_v18, %v2400_v49  ;;  %v2314_v24 = vrot.slane %v4739_v44, 2  ;;  %v2395_v30 = vrot.slane %v2394_v50, 1 }
 0x5be   :  { %v2413_v54 = vsel %vm1461_vm5, %v2250_v46, %v2310_v5  ;;  %v2414_v29 = vsel %vm1466_vm3, %v2311_v36, %v2312_v32  ;;  %v2315_v59 = vrot.slane %v4739_v44, 3  ;;  %v2403_v14 = vsel %vm658_vm2, %v2249_v12, %v2307_v57 }
 0x5bf   :  { %v2404_v34 = vsel %vm938_vm7, %v2308_v1, %v2309_v16  ;;  %v2408_v47 = vsel %vm2358_vm13, %v2406_v19, %v2407_v33  ;;  %v2159_v17 = vmul.f32 %v4447_v51, %v2129_v6  ;;  %v2398_v13 = vsel %vm2354_vm8, %v2396_v4, %v2397_v10  ;;  %v2627_v4 = vld [vmem:[#allocation5 + $0x170] sm:$0xff] }
 0x5c0   :  { %v2527_v26 = vld [vmem:[#allocation1] sm:$0xff]  ;;  %v2402_v39 = vrot.slane %v2401_v28, 1  ;;  %v2160_v56 = vmul.f32 %v4450_v52, %v2130_v15  ;;  %v2410_v22 = vsel %vm658_vm2, %v2250_v46, %v2310_v5  ;;  %v2411_v3 = vsel %vm938_vm7, %v2311_v36, %v2312_v32 }
 0x5c1   :  { %2528 = vst [vmem:[#allocation1] ss:$9 sm:$0xff] %v2395_v30  ;;  %v2415_v60 = vsel %vm2358_vm13, %v2413_v54, %v2414_v29  ;;  %v2187_v12 = vadd.f32 %v4424_v37, %v2157_v21  ;;  %v2252_v57 = vsel %vm2208_vm1, %v4722_v45, %v2230_v0  ;;  %v2405_v51 = vsel %vm2354_vm8, %v2403_v14, %v2404_v34 }
 0x5c2   :  { %2529 = vst [vmem:[#allocation1 + $0x1] ss:$9 sm:$0xff] %v2398_v13  ;;  %v2409_v1 = vrot.slane %v2408_v47, 1  ;;  %v2188_v16 = vadd.f32 %v4459_v41, %v2158_v7  ;;  %v2417_v52 = vsel %vm658_vm2, %v4739_v44, %v2313_v38  ;;  %v2418_v46 = vsel %vm938_vm7, %v2314_v24, %v2315_v59 }
 0x5c3   :  { %2530 = vst [vmem:[#allocation1 + $0x2] ss:$9 sm:$0xff] %v2402_v39  ;;  %v2189_v42 = vadd.f32 %v4462_v2, %v2159_v17  ;;  %v2412_v37 = vsel %vm2354_vm8, %v2410_v22, %v2411_v3  ;;  %v2416_v43 = vrot.slane %v2415_v60, 1  ;;  %v2316_v6 = vrot.slane %v2252_v57, 1 }
 0x5c4   :  { %2531 = vst [vmem:[#allocation1 + $0x3] ss:$9 sm:$0xff] %v2405_v51  ;;  %v2317_v45 = vrot.slane %v2252_v57, 2  ;;  %v2318_v5 = vrot.slane %v2252_v57, 3  ;;  %v2190_v36 = vadd.f32 %v4468_v23, %v2160_v56  ;;  %v2231_v32 = vmul.f32 0.01, %v2187_v12 }
 0x5c5   :  { %2532 = vst [vmem:[#allocation1 + $0x4] ss:$9 sm:$0xff] %v2409_v1  ;;  %v2419_v41 = vsel %vm2354_vm8, %v2417_v52, %v2418_v46  ;;  %vm2576_vm6 = vcmask 256000   ;;  %vm2209_vm9 = vcmp.ge.f32.partialorder %v2187_v12, 0.0  ;;  %v2232_v18 = vmul.f32 0.01, %v2188_v16 }
 0x5c6   :  { %2533 = vst [vmem:[#allocation1 + $0x5] ss:$9 sm:$0xff] %v2412_v37  ;;  %v2420_v2 = vsel %vm1461_vm5, %v4739_v44, %v2313_v38  ;;  %v2421_v49 = vsel %vm1466_vm3, %v2314_v24, %v2315_v59  ;;  %vm2210_vm10 = vcmp.ge.f32.partialorder %v2188_v16, 0.0  ;;  %vm2211_vm11 = vcmp.ge.f32.partialorder %v2189_v42, 0.0  ;;  %v2628_v38 = vld [vmem:[#allocation5 + $0x178] sm:$0xff] }
 0x5c7   :  { %2534 = vst [vmem:[#allocation1 + $0x6] ss:$9 sm:$0xff] %v2416_v43  ;;  %v2427_v40 = vsel %vm1461_vm5, %v2252_v57, %v2316_v6  ;;  %v2428_v15 = vsel %vm1466_vm3, %v2317_v45, %v2318_v5  ;;  %v2577_v23 = vsel %vm2576_vm6, %v2527_v26, 0.0  ;;  %vm2212_vm12 = vcmp.ge.f32.partialorder %v2190_v36, 0.0  ;;  %2715 = vmatpush.msrb.mxu2 %v2628_v38 }
 0x5c8   :  { %2535 = vst [vmem:[#allocation1 + $0x7] ss:$9 sm:$0xff] %v2419_v41  ;;  %v2233_v21 = vmul.f32 0.01, %v2189_v42  ;;  %v2253_v7 = vsel %vm2209_vm9, %v2187_v12, %v2231_v32  ;;  %v2422_v50 = vsel %vm2358_vm13, %v2420_v2, %v2421_v49  ;;  %v2234_v0 = vmul.f32 0.01, %v2190_v36 }
 0x5c9   :  { %v2254_v19 = vsel %vm2210_vm10, %v2188_v16, %v2232_v18  ;;  %v2424_v44 = vsel %vm658_vm2, %v2252_v57, %v2316_v6  ;;  %v2575_v33 = vsel %vm1898_vm4, %v4727_v31, 0.0  ;;  %v2425_v10 = vsel %vm938_vm7, %v2317_v45, %v2318_v5  ;;  %2716 = vmatpush.msrb.mxu2 %v2627_v4 }
 0x5ca   :  { %v2429_v28 = vsel %vm2358_vm13, %v2427_v40, %v2428_v15  ;;  %v2578_v24 = vadd.f32 %v2577_v23, %v2575_v33  ;;  %v3167_v30 = vmov 11.0   ;;  %v2319_v54 = vrot.slane %v2253_v7, 1 }
 0x5cb   :  { %3068 = vrcp.f32 %v3167_v30  ;;  %v2320_v29 = vrot.slane %v2253_v7, 2  ;;  %v2321_v59 = vrot.slane %v2253_v7, 3  ;;  %v2423_v14 = vrot.slane %v2422_v50, 1 }
 0x5cc   :  { %v2255_v47 = vsel %vm2211_vm11, %v2189_v42, %v2233_v21  ;;  %v2256_v31 = vsel %vm2212_vm12, %v2190_v36, %v2234_v0  ;;  %v2426_v26 = vsel %vm2354_vm8, %v2424_v44, %v2425_v10  ;;  %v2430_v17 = vrot.slane %v2429_v28, 1 }
 0x5cd   :  { %v2322_v13 = vrot.slane %v2254_v19, 1  ;;  %v2323_v39 = vrot.slane %v2254_v19, 2  ;;  %v2324_v56 = vrot.slane %v2254_v19, 3  ;;  %v2579_v22 = vrot.slane %v2578_v24, 4 }
 0x5ce   :  { %v2434_v3 = vsel %vm1461_vm5, %v2253_v7, %v2319_v54  ;;  %v2435_v60 = vsel %vm1466_vm3, %v2320_v29, %v2321_v59  ;;  %v2325_v57 = vrot.slane %v2255_v47, 1  ;;  %v2326_v51 = vrot.slane %v2255_v47, 2 }
 0x5cf   :  { %v2536_v34 = vld [vmem:[#allocation1] sm:$0xff]  ;;  %v2327_v1 = vrot.slane %v2255_v47, 3  ;;  %v2328_v16 = vrot.slane %v2256_v31, 1  ;;  %v2329_v52 = vrot.slane %v2256_v31, 2  ;;  %v2330_v46 = vrot.slane %v2256_v31, 3 }
 0x5d0   :  { %2537 = vst [vmem:[#allocation1] ss:$9 sm:$0xff] %v2423_v14  ;;  %v2431_v42 = vsel %vm658_vm2, %v2253_v7, %v2319_v54  ;;  %v2432_v37 = vsel %vm938_vm7, %v2320_v29, %v2321_v59  ;;  %v2436_v43 = vsel %vm2358_vm13, %v2434_v3, %v2435_v60  ;;  %v2441_v6 = vsel %vm1461_vm5, %v2254_v19, %v2322_v13 }
 0x5d1   :  { %2538 = vst [vmem:[#allocation1 + $0x1] ss:$9 sm:$0xff] %v2426_v26  ;;  %v3069_v12 = vpop.eup %3068  ;;  %v2442_v45 = vsel %vm1466_vm3, %v2323_v39, %v2324_v56  ;;  %v2580_v5 = vadd.f32 %v2579_v22, %v2578_v24  ;;  %v2433_v32 = vsel %vm2354_vm8, %v2431_v42, %v2432_v37  ;;  %v2438_v41 = vsel %vm658_vm2, %v2254_v19, %v2322_v13 }
 0x5d2   :  { %2539 = vst [vmem:[#allocation1 + $0x2] ss:$9 sm:$0xff] %v2430_v17  ;;  %v2613_v36 = vmul.f32 11.0, %v3069_v12  ;;  %v2448_v18 = vsel %vm1461_vm5, %v2255_v47, %v2325_v57  ;;  %v2449_v2 = vsel %vm1466_vm3, %v2326_v51, %v2327_v1  ;;  %v2437_v49 = vrot.slane %v2436_v43, 1 }
 0x5d3   :  { %v2439_v40 = vsel %vm938_vm7, %v2323_v39, %v2324_v56  ;;  %v2443_v15 = vsel %vm2358_vm13, %v2441_v6, %v2442_v45  ;;  %v2445_v23 = vsel %vm658_vm2, %v2255_v47, %v2325_v57  ;;  %v2446_v21 = vsel %vm938_vm7, %v2326_v51, %v2327_v1 }
 0x5d4   :  { %v2455_v7 = vsel %vm1461_vm5, %v2256_v31, %v2328_v16  ;;  %v2456_v50 = vsel %vm1466_vm3, %v2329_v52, %v2330_v46  ;;  %v2581_v44 = vrot.slane %v2580_v5, 2  ;;  %v2450_v19 = vsel %vm2358_vm13, %v2448_v18, %v2449_v2 }
 0x5d5   :  { %v2585_v33 = vsel %vm1898_vm4, %v2536_v34, 0.0  ;;  %v2614_v4 = vsub.f32 1.0, %v2613_v36  ;;  %v2440_v10 = vsel %vm2354_vm8, %v2438_v41, %v2439_v40  ;;  %v2444_v28 = vrot.slane %v2443_v15, 1 }
 0x5d6   :  { %v2452_v30 = vsel %vm658_vm2, %v2256_v31, %v2328_v16  ;;  %v2453_v54 = vsel %vm938_vm7, %v2329_v52, %v2330_v46  ;;  %v2457_v29 = vsel %vm2358_vm13, %v2455_v7, %v2456_v50  ;;  %v2447_v59 = vsel %vm2354_vm8, %v2445_v23, %v2446_v21  ;;  %v2665_v50 = vpop.f32.mrf.mxu3 }
 0x5d7   :  { %v2451_v14 = vrot.slane %v2450_v19, 1  ;;  %v2582_v34 = vadd.f32 %v2581_v44, %v2580_v5  ;;  %v2615_v26 = vmul.f32 %v3069_v12, %v2614_v4  ;;  %v2454_v17 = vsel %vm2354_vm8, %v2452_v30, %v2453_v54  ;;  %v3011_v44 = vld [vmem:[%s4872_s3 + $0x9] ss:$0 sm:$0xff] }
 0x5d8   :  { %v2458_v13 = vrot.slane %v2457_v29, 1  ;;  %vm2617_vm2 = vweird.f32 %v3069_v12  ;;  %v2465_v16 = vrot.slane %v4545_v25, 1  ;;  %v2472_v43 = vrot.slane %v4555_v35, 1 }
 0x5d9   :  { %v2540_v0 = vld [vmem:[#allocation1] sm:$0xff]  ;;  %v2583_v31 = vrot.slane %v2582_v34, 1  ;;  %v2616_v22 = vadd.f32 %v3069_v12, %v2615_v26  ;;  %v2486_v25 = vrot.slane %v4577_v9, 1  ;;  %v2507_v9 = vrot.slane %v4614_v20, 1  ;;  %v2777_v26 = vld [vmem:[#allocation5 + $0x240] sm:$0xff] }
 0x5da   :  { %v2586_v38 = vsel %vm2576_vm6, %v2540_v0, 0.0  ;;  %2541 = vst [vmem:[#allocation1] ss:$9 sm:$0xff] %v2433_v32  ;;  %v3168_v0 = vmov 2.0   ;;  %vm2724_vm7 = vcmask 517120   ;;  %vm2906_vm9 = vcmask 9216  }
 0x5db   :  { %v2587_v24 = vadd.f32 %v2586_v38, %v2585_v33  ;;  %2542 = vst [vmem:[#allocation1 + $0x1] ss:$9 sm:$0xff] %v2437_v49  ;;  %v2584_v60 = vadd.f32 %v2583_v31, %v2582_v34  ;;  %v2618_v51 = vsel %vm2617_vm2, %v3069_v12, %v2616_v22  ;;  %v2479_v12 = vrot.slane %v4566_v8, 1 }
 0x5dc   :  { %2543 = vst [vmem:[#allocation1 + $0x2] ss:$9 sm:$0xff] %v2440_v10  ;;  %3070 = vrcp.f32 %v3168_v0  ;;  %v2669_v38 = vadd.f32 %v3011_v44, %v2665_v50  ;;  %v3016_v50 = vld [vmem:[%s4872_s3 + $0xd] ss:$0 sm:$0xff] }
 0x5dd   :  { %v2588_v47 = vrot.slane %v2587_v24, 4  ;;  %2544 = vst [vmem:[#allocation1 + $0x3] ss:$9 sm:$0xff] %v2444_v28  ;;  %v2619_v46 = vmul.f32 %v2618_v51, %v2584_v60 }
 0x5de   :  { %2545 = vst [vmem:[#allocation1 + $0x4] ss:$9 sm:$0xff] %v2447_v59  ;;  %v2778_v59 = vld [vmem:[#allocation5 + $0x248] sm:$0xff] }
 0x5df   :  { %v2589_v39 = vadd.f32 %v2588_v47, %v2587_v24  ;;  %2546 = vst [vmem:[#allocation1 + $0x5] ss:$9 sm:$0xff] %v2451_v14  ;;  %2792 = vmatpush.msra.mxu3 %v2778_v59  ;;  %v2880_v59 = vld [vmem:[#allocation5 + $0x288] sm:$0xff] }
 0x5e0   :  { %2547 = vst [vmem:[#allocation1 + $0x6] ss:$9 sm:$0xff] %v2454_v17  ;;  %2898 = vmatpush.msrb.mxu0 %v2880_v59 }
 0x5e1   :  { %v2590_v56 = vrot.slane %v2589_v39, 2  ;;  %2548 = vst [vmem:[#allocation1 + $0x7] ss:$9 sm:$0xff] %v2458_v13  ;;  %2793 = vmatpush.msra.mxu3 %v2777_v26 }
 0x5e2   :  { %v3071_v19 = vpop.eup %3070 }
 0x5e3   :  { %v2591_v3 = vadd.f32 %v2590_v56, %v2589_v39  ;;  %v2733_v4 = vmul.f32 2.0, %v3071_v19  ;;  %v2776_v39 = vld [vmem:[#allocation5 + $0x238] sm:$0xff] }
 0x5e4   :  { %2794 = vmatpush.msra.mxu3 %v2776_v39  ;;  %v2877_v39 = vld [vmem:[#allocation5 + $0x270] sm:$0xff] }
 0x5e5   :  { %v2592_v57 = vrot.slane %v2591_v3, 1  ;;  %v2734_v30 = vsub.f32 1.0, %v2733_v4 }
 0x5e7   :  { %v2593_v1 = vadd.f32 %v2592_v57, %v2591_v3  ;;  %v2735_v34 = vmul.f32 %v3071_v19, %v2734_v30  ;;  %v2775_v3 = vld [vmem:[#allocation5 + $0x230] sm:$0xff] }
 0x5e8   :  { %v2549_v52 = vld [vmem:[#allocation1] sm:$0xff]  ;;  %2795 = vmatpush.msra.mxu3 %v2775_v3 }
 0x5e9   :  { %v2620_v42 = vmul.f32 %v2618_v51, %v2593_v1  ;;  %2550 = vst [vmem:[#allocation1] ss:$9 sm:$0xff] %v4540_v53  ;;  %v2493_v53 = vrot.slane %v4589_v61, 1  ;;  %v2594_v35 = vsel %vm1898_vm4, %v2549_v52, 0.0  ;;  %v2736_v22 = vadd.f32 %v3071_v19, %v2735_v34  ;;  %v2773_v52 = vld [vmem:[#allocation5 + $0x220] sm:$0xff] }
 0x5ea   :  { %2551 = vst [vmem:[#allocation1 + $0x1] ss:$9 sm:$0xff] %v2465_v16 }
 0x5eb   :  { %v2672_v37 = vsel %vm1461_vm5, %v2620_v42, %v2619_v46  ;;  %2552 = vst [vmem:[#allocation1 + $0x2] ss:$9 sm:$0xff] %v4552_v27  ;;  %v2772_v42 = vld [vmem:[#allocation5 + $0x218] sm:$0xff] }
 0x5ec   :  { %2975 = vmatmul.msk.f32.vlgmr.msrb.gmra.mxu3 %vm1898_vm4, %v2672_v37 }
 0x5f2   :  { %v2553_v6 = vld [vmem:[#allocation1] sm:$0xff] }
 0x5f3   :  { %2554 = vst [vmem:[#allocation1] ss:$9 sm:$0xff] %v2472_v43  ;;  %v2595_v27 = vsel %vm2576_vm6, %v2553_v6, 0.0  ;;  %v2771_v6 = vld [vmem:[#allocation5 + $0x210] sm:$0xff] }
 0x5f4   :  { %2555 = vst [vmem:[#allocation1 + $0x1] ss:$9 sm:$0xff] %v4563_v11  ;;  %v2596_v8 = vadd.f32 %v2595_v27, %v2594_v35  ;;  %v2500_v11 = vrot.slane %v4598_v58, 1  ;;  %v2807_v35 = vld [vmem:[#allocation5 + $0x268] sm:$0xff] }
 0x5f5   :  { %2556 = vst [vmem:[#allocation1 + $0x2] ss:$9 sm:$0xff] %v2479_v12  ;;  %2825 = vmatpush.msra.mxu2 %v2807_v35 }
 0x5f6   :  { %2557 = vst [vmem:[#allocation1 + $0x3] ss:$9 sm:$0xff] %v4572_v48  ;;  %v2597_v48 = vrot.slane %v2596_v8, 4 }
 0x5f7   :  { %2558 = vst [vmem:[#allocation1 + $0x4] ss:$9 sm:$0xff] %v2486_v25 }
 0x5f8   :  { %2559 = vst [vmem:[#allocation1 + $0x5] ss:$9 sm:$0xff] %v4583_v63  ;;  %v2598_v61 = vadd.f32 %v2597_v48, %v2596_v8  ;;  %v2806_v8 = vld [vmem:[#allocation5 + $0x260] sm:$0xff] }
 0x5f9   :  { %2560 = vst [vmem:[#allocation1 + $0x6] ss:$9 sm:$0xff] %v2493_v53  ;;  %2826 = vmatpush.msra.mxu2 %v2806_v8 }
 0x5fa   :  { %2561 = vst [vmem:[#allocation1 + $0x7] ss:$9 sm:$0xff] %v4595_v55  ;;  %v2599_v5 = vrot.slane %v2598_v61, 2 }
 0x5fc   :  { %v2600_v41 = vadd.f32 %v2599_v5, %v2598_v61 }
 0x5fe   :  { %v2601_v58 = vrot.slane %v2600_v41, 1 }
 0x600   :  { %v2602_v20 = vadd.f32 %v2601_v58, %v2600_v41  ;;  %v3013_v41 = vld [vmem:[%s4872_s3 + $0xa] ss:$0 sm:$0xff]  ;;  %v3014_v58 = vld [vmem:[%s4872_s3 + $0xb] ss:$0 sm:$0xff] }
 0x601   :  { %v2562_v45 = vld [vmem:[#allocation1] sm:$0xff] }
 0x602   :  { %2563 = vst [vmem:[#allocation1] ss:$9 sm:$0xff] %v2500_v11  ;;  %v2603_v55 = vsel %vm1898_vm4, %v2562_v45, 0.0  ;;  %v2805_v45 = vld [vmem:[#allocation5 + $0x258] sm:$0xff] }
 0x603   :  { %2564 = vst [vmem:[#allocation1 + $0x1] ss:$9 sm:$0xff] %v4611_v62  ;;  %v2621_v62 = vmul.f32 %v2618_v51, %v2602_v20  ;;  %2827 = vmatpush.msra.mxu2 %v2805_v45 }
 0x604   :  { %2565 = vst [vmem:[#allocation1 + $0x2] ss:$9 sm:$0xff] %v2507_v9 }
 0x60b   :  { %v2566_v63 = vld [vmem:[#allocation1] sm:$0xff] }
 0x60c   :  { %v2604_v36 = vsel %vm2576_vm6, %v2566_v63, 0.0 }
 0x60d   :  { %v2605_v32 = vadd.f32 %v2604_v36, %v2603_v55 }
 0x60f   :  { %v2606_v18 = vrot.slane %v2605_v32, 4 }
 0x611   :  { %v2607_v2 = vadd.f32 %v2606_v18, %v2605_v32 }
 0x613   :  { %v2608_v49 = vrot.slane %v2607_v2, 2 }
 0x615   :  { %v2609_v40 = vadd.f32 %v2608_v49, %v2607_v2 }
 0x617   :  { %v2610_v15 = vrot.slane %v2609_v40, 1 }
 0x619   :  { %v2611_v23 = vadd.f32 %v2610_v15, %v2609_v40 }
 0x61b   :  { %v2622_v21 = vmul.f32 %v2618_v51, %v2611_v23  ;;  %v2774_v51 = vld [vmem:[#allocation5 + $0x228] sm:$0xff]  ;;  %v2804_v23 = vld [vmem:[#allocation5 + $0x250] sm:$0xff] }
 0x61c   :  { %2796 = vmatpush.msra.mxu3 %v2774_v51  ;;  %2828 = vmatpush.msra.mxu2 %v2804_v23 }
 0x61d   :  { %v2698_v7 = vsel %vm1461_vm5, %v2622_v21, %v2621_v62  ;;  %vm2737_vm5 = vweird.f32 %v3071_v19  ;;  %v3015_v62 = vld [vmem:[%s4872_s3 + $0xc] ss:$0 sm:$0xff] }
 0x61e   :  { %2976 = vmatmul.msk.f32.vlgmr.msrb.gmra.mxu2 %vm1898_vm4, %v2698_v7  ;;  %v2738_v46 = vsel %vm2737_vm5, %v3071_v19, %v2736_v22  ;;  %2797 = vmatpush.msra.mxu3 %v2773_v52 }
 0x620   :  { %2798 = vmatpush.msra.mxu3 %v2772_v42 }
 0x622   :  { %2799 = vmatpush.msra.mxu3 %v2771_v6 }
 0x66f   :  { %v2692_v33 = vpop.f32.mrf.mxu3 }
 0x670   :  { %v2695_v10 = vadd.f32 %v2692_v33, %v2669_v38 }
 0x6a1   :  { %v2718_v28 = vpop.f32.mrf.mxu2 }
 0x6a2   :  { %v2721_v24 = vadd.f32 %v2718_v28, %v2695_v10 }
 0x6a4   :  { %v2725_v54 = vsel %vm2724_vm7, %v2721_v24, 0.0  ;;  %v2740_v29 = vmul.f32 %v2721_v24, %v2721_v24 }
 0x6a5   :  { %v2726_v14 = vrot.slane %v2725_v54, 4 }
 0x6a6   :  { %v2741_v47 = vsel %vm2724_vm7, %v2740_v29, 0.0 }
 0x6a7   :  { %v2727_v17 = vadd.f32 %v2726_v14, %v2725_v54  ;;  %v2742_v13 = vrot.slane %v2741_v47, 4 }
 0x6a9   :  { %v2728_v31 = vrot.slane %v2727_v17, 2  ;;  %v2743_v56 = vadd.f32 %v2742_v13, %v2741_v47  ;;  %v2879_v47 = vld [vmem:[#allocation5 + $0x280] sm:$0xff] }
 0x6aa   :  { %2899 = vmatpush.msrb.mxu0 %v2879_v47 }
 0x6ab   :  { %v2729_v60 = vadd.f32 %v2728_v31, %v2727_v17  ;;  %v2744_v57 = vrot.slane %v2743_v56, 2  ;;  %v2878_v17 = vld [vmem:[#allocation5 + $0x278] sm:$0xff] }
 0x6ac   :  { %2900 = vmatpush.msrb.mxu0 %v2878_v17 }
 0x6ad   :  { %v2730_v1 = vrot.slane %v2729_v60, 1  ;;  %v2745_v16 = vadd.f32 %v2744_v57, %v2743_v56 }
 0x6ae   :  { %2901 = vmatpush.msrb.mxu0 %v2877_v39 }
 0x6af   :  { %v2731_v37 = vadd.f32 %v2730_v1, %v2729_v60  ;;  %v2746_v43 = vrot.slane %v2745_v16, 1 }
 0x6b1   :  { %v2739_v12 = vmul.f32 %v2738_v46, %v2731_v37  ;;  %v2747_v25 = vadd.f32 %v2746_v43, %v2745_v16 }
 0x6b3   :  { %v2748_v53 = vmul.f32 %v2747_v25, %v2738_v46  ;;  %v2749_v27 = vmul.f32 %v2739_v12, %v2739_v12  ;;  %v2751_v32 = vsub.f32 %v2721_v24, %v2739_v12 }
 0x6b5   :  { %v2750_v11 = vsub.f32 %v2748_v53, %v2749_v27 }
 0x6b7   :  { %v2752_v9 = vadd.f32 1e-05, %v2750_v11 }
 0x6b9   :  { %3072 = vrsqrt.f32 %v2752_v9  ;;  %vm2759_vm8 = vweird.f32 %v2752_v9 }
 0x6bf   :  { %v3073_v48 = vpop.eup %3072 }
 0x6c0   :  { %v2754_v61 = vmul.f32 %v3073_v48, %v2752_v9  ;;  %vm2760_vm3 = vweird.f32 %v3073_v48 }
 0x6c1   :  { %vm2761_vm13 = vmor %vm2759_vm8, %vm2760_vm3 }
 0x6c2   :  { %v2755_v63 = vmul.f32 %v3073_v48, %v2754_v61  ;;  %v3017_v61 = vld [vmem:[%s4872_s3 + $0xe] ss:$0 sm:$0xff] }
 0x6c4   :  { %v2756_v5 = vmul.f32 0.5, %v2755_v63 }
 0x6c6   :  { %v2757_v55 = vsub.f32 1.5, %v2756_v5 }
 0x6c8   :  { %v2758_v36 = vmul.f32 %v3073_v48, %v2757_v55 }
 0x6ca   :  { %v2762_v18 = vsel %vm2761_vm13, %v3073_v48, %v2758_v36 }
 0x6cb   :  { %v2763_v2 = vmul.f32 %v2762_v18, %v2751_v32 }
 0x6cd   :  { %v2765_v49 = vmul.f32 %v3013_v41, %v2763_v2 }
 0x6cf   :  { %v2767_v40 = vadd.f32 %v3014_v58, %v2765_v49 }
 0x6d1   :  { %vm2768_vm14 = vcmp.ge.f32.partialorder %v2767_v40, 0.0  ;;  %v2769_v20 = vmul.f32 0.01, %v2767_v40 }
 0x6d3   :  { %v2770_v15 = vsel %vm2768_vm14, %v2767_v40, %v2769_v20 }
 0x6d4   :  { %2977 = vmatmul.msk.f32.vlgmr.msra.gmra.mxu3 %vm1057_vm0, %v2770_v15 }
 0x757   :  { %v2801_v21 = vpop.f32.mrf.mxu3 }
 0x758   :  { %v2802_v7 = vadd.f32 %v3015_v62, %v2801_v21 }
 0x75a   :  { %2978 = vmatmul.msk.f32.vlgmr.msra.gmra.mxu2 %vm1898_vm4, %v2802_v7 }
 0x7dd   :  { %v2830_v0 = vpop.f32.mrf.mxu2 }
 0x7de   :  { %v2831_v44 = vadd.f32 %v3016_v50, %v2830_v0 }
 0x7e0   :  { %v2834_v19 = vmul.f32 0.70710677, %v2831_v44  ;;  %v2833_v45 = vmul.f32 0.5, %v2831_v44 }
 0x7e2   :  { %v2835_v33 = vmul.f32 %v2834_v19, %v2834_v19 }
 0x7e4   :  { %v2836_v38 = vmin.f32 %v2835_v33, 16.0 }
 0x7e6   :  { %v2837_v4 = vmul.f32 2.1237322e-06, %v2836_v38  ;;  %v2848_v10 = vmul.f32 3.8918573e-05, %v2836_v38 }
 0x7e8   :  { %v2838_v28 = vadd.f32 0.00028619796, %v2837_v4  ;;  %v2849_v24 = vadd.f32 0.001143296, %v2848_v10 }
 0x7ea   :  { %v2839_v30 = vmul.f32 %v2838_v28, %v2836_v38  ;;  %v2850_v54 = vmul.f32 %v2849_v24, %v2836_v38 }
 0x7ec   :  { %v2851_v29 = vadd.f32 0.014752088, %v2850_v54  ;;  %v2840_v14 = vadd.f32 0.0036580483, %v2839_v30 }
 0x7ee   :  { %v2852_v34 = vmul.f32 %v2851_v29, %v2836_v38  ;;  %v2841_v13 = vmul.f32 %v2840_v14, %v2836_v38 }
 0x7f0   :  { %v2853_v26 = vadd.f32 0.112945676, %v2852_v34  ;;  %v2842_v22 = vadd.f32 0.05243302, %v2841_v13 }
 0x7f2   :  { %v2854_v31 = vmul.f32 %v2853_v26, %v2836_v38  ;;  %v2843_v57 = vmul.f32 %v2842_v22, %v2836_v38 }
 0x7f4   :  { %v2855_v56 = vadd.f32 0.4994258, %v2854_v31  ;;  %v2844_v51 = vadd.f32 0.18741608, %v2843_v57 }
 0x7f6   :  { %v2856_v3 = vmul.f32 %v2855_v56, %v2836_v38  ;;  %v2845_v16 = vmul.f32 %v2844_v51, %v2836_v38 }
 0x7f8   :  { %v2857_v60 = vadd.f32 1.0, %v2856_v3  ;;  %v2846_v37 = vadd.f32 1.1283791, %v2845_v16 }
 0x7fa   :  { %3074 = vrcp.f32 %v2857_v60  ;;  %v2869_v42 = vand.u32 2147483648, %v2857_v60  ;;  %v2867_v6 = vand.u32 2147483647, %v2857_v60  ;;  %vm2863_vm15 = vweird.f32 %v2857_v60 }
 0x7fb   :  { %v2847_v53 = vmul.f32 %v2846_v37, %v2834_v19 }
 0x7fc   :  { %v2870_v25 = vor.u32 1.1754944e-38, %v2869_v42  ;;  %vm2868_vm6 = vcmp.eq.f32.partialorder %v2867_v6, 8.507059e+37 }
 0x800   :  { %v3075_v1 = vpop.eup %3074 }
 0x801   :  { %v2859_v52 = vmul.f32 %v3075_v1, %v2857_v60  ;;  %vm2864_vm0 = vweird.f32 %v3075_v1 }
 0x802   :  { %vm2865_vm1 = vmor %vm2863_vm15, %vm2864_vm0 }
 0x803   :  { %v2860_v46 = vsub.f32 1.0, %v2859_v52 }
 0x805   :  { %v2861_v43 = vmul.f32 %v3075_v1, %v2860_v46 }
 0x807   :  { %v2862_v12 = vadd.f32 %v3075_v1, %v2861_v43 }
 0x809   :  { %v2866_v27 = vsel %vm2865_vm1, %v3075_v1, %v2862_v12 }
 0x80a   :  { %v2871_v35 = vsel %vm2868_vm6, %v2870_v25, %v2866_v27 }
 0x80b   :  { %v2872_v8 = vmul.f32 %v2871_v35, %v2847_v53 }
 0x80d   :  { %v2979_v11 = vclamps-f32 %v2872_v8, 1.0 }
 0x80f   :  { %v2875_v9 = vadd.f32 1.0, %v2979_v11 }
 0x811   :  { %v2876_v48 = vmul.f32 %v2875_v9, %v2833_v45 }
 0x813   :  { %2980 = vmatmul.msk.f32.vlgmr.msrb.gmra.mxu0 %vm1898_vm4, %v2876_v48 }
 0x890   :  { %v2903_v63 = vpop.f32.mrf.mxu0 }
 0x891   :  { %v2904_v5 = vadd.f32 %v3017_v61, %v2903_v63 }
 0x893   :  { %2907 = vst.msk [vmem:[#allocation7] sm:$0x3] %vm2906_vm9, %v2904_v5 }
 0x894   :  { %2918 = dma.vmem_to_hbm [thread:$0]  %s2914_s12, 32, %s2916_s15, [#allocation4]  }
 0x895   :  { %3152 = dma.done.wait [#allocation4], 32  }
 0x896   :  { %3153 = vsyncadd [#allocation4], 4294967264 }
 0x897   :  { %2923 = vsyncpa [#allocation3], 1 }
 0x898   :  { %2924 = vsyncpa [#allocation6], 1 }
 0x899   :  { %2925 = vsyncpa [#allocation4], 1 }

</bundles_post_ra>
